<compile_context>
chip_gen: v6e
topology: v6e:2x2x1
jax: 0.10.0
libtpu: 0.0.40
codegen_flags: <defaults>
</compile_context>

<pallas_src>
import functools

import jax
import jax.numpy as jnp
from jax.experimental import pallas as pl
from jax.experimental.pallas import tpu as pltpu

EPSILON = 1e-8
DT = 100  # diffusion steps (CGRNN_cell.dt)


# ----------------------------------------------------------------------------
# Single fused kernel: full sequence, all layers, hidden state in VMEM scratch.
# ----------------------------------------------------------------------------
def _cgrnn_seq_kernel(x_ref, mlast_ref, acoef_ref, bcoef_ref, sel_ref, nz_ref,
                      a1_ref, a2_ref, emb_ref, wg_ref, bg_ref,
                      wqkv_ref, bqkv_ref, wo_ref, bo_ref,
                      ln1_ref, wff_ref, bff_ref, ln2_ref, wms_ref, bms_ref,
                      out_ref, h_ref, *, batch, nodes, n_heads):
    n_steps = x_ref.shape[0]
    n_layers = h_ref.shape[0]
    dm = h_ref.shape[-1]
    dh = dm // n_heads
    scale = 1.0 / float(dh) ** 0.5

    def layer_norm(y, g, b):
        m = jnp.mean(y, axis=-1, keepdims=True)
        v = jnp.mean((y - m) * (y - m), axis=-1, keepdims=True)
        return (y - m) * jax.lax.rsqrt(v + 1e-5) * g + b

    # Recurrent state + output slab stay on-chip for the whole sequence.
    h_ref[...] = jnp.zeros_like(h_ref)
    out_ref[...] = jnp.zeros_like(out_ref)

    a1 = a1_ref[...]          # block-diag  kron(I_B, A)
    a2 = a2_ref[...]          # block-diag  kron(I_B, A @ A)

    def step_body(step, carry):
        mask_last = mlast_ref[step]            # (R, 1)
        a_coef = acoef_ref[step]               # (R, 1)
        b_coef = bcoef_ref[step]               # (R, 1)
        sel = sel_ref[step]                    # (R, 1)
        nz_step = nz_ref[step]                 # (L, R, Dm)
        out = x_ref[step]                      # (R, Dm)  layer-0 input (x padded to Dm lanes)

        for l in range(n_layers):
            # ---- diffusion-noise hidden-state update (epsilon transformer),
            #      skipped at step 0 exactly like the reference ----
            @pl.when(step > 0)
            def _update_h(l=l, nz_step=nz_step, mask_last=mask_last,
                          a_coef=a_coef, b_coef=b_coef):
                src = h_ref[l] + emb_ref[l] * mask_last            # (R, Dm)
                # fused QKV projection for both heads: one (Dm, 3*Dm) matmul
                qkv = (jnp.dot(src, wqkv_ref[l],
                               preferred_element_type=jnp.float32)
                       + bqkv_ref[l])                              # (R, 3*Dm)
                # attention over the (tiny) node axis, per batch, per head
                per_batch = []
                for bi in range(batch):
                    r0 = bi * nodes
                    heads = []
                    for hd in range(n_heads):
                        q = qkv[r0:r0 + nodes, hd * dh:(hd + 1) * dh]
                        k = qkv[r0:r0 + nodes, dm + hd * dh:dm + (hd + 1) * dh]
                        v = qkv[r0:r0 + nodes,
                                2 * dm + hd * dh:2 * dm + (hd + 1) * dh]
                        s = jax.lax.dot_general(
                            q, k, (((1,), (1,)), ((), ())),
                            preferred_element_type=jnp.float32) * scale
                        s = s - jnp.max(s, axis=-1, keepdims=True)
                        p = jnp.exp(s)
                        p = p * pl.reciprocal(
                            jnp.sum(p, axis=-1, keepdims=True), approx=True)
                        heads.append(
                            jnp.dot(p, v, preferred_element_type=jnp.float32))
                    per_batch.append(jnp.concatenate(heads, axis=-1))   # (N, Dm)
                attn_in = jnp.concatenate(per_batch, axis=0)            # (R, Dm)
                attn = (jnp.dot(attn_in, wo_ref[l],
                                preferred_element_type=jnp.float32)
                        + bo_ref[l])
                # TODO(synk): dropout (p=0.3) is eval-mode identity here.
                s1 = layer_norm(src + attn, ln1_ref[l, 0], ln1_ref[l, 1])
                ff = jnp.maximum(
                    jnp.dot(s1, wff_ref[l, 0],
                            preferred_element_type=jnp.float32) + bff_ref[l, 0],
                    0.0)
                ff = (jnp.dot(ff, wff_ref[l, 1],
                              preferred_element_type=jnp.float32)
                      + bff_ref[l, 1])
                s2 = layer_norm(s1 + ff, ln2_ref[l, 0], ln2_ref[l, 1])
                # fused linear_mu / linear_sigma heads: one (Dm, 2*Dm) matmul
                musig = (jnp.dot(s2, wms_ref[l],
                                 preferred_element_type=jnp.float32)
                         + bms_ref[l])                              # (R, 2*Dm)
                noise = musig[:, :dm] + nz_step[l] * musig[:, dm:]
                h_ref[l] = a_coef * h_ref[l] + b_coef * noise

            h = h_ref[l]
            # ---- order-2 graph conv (A, A^2 as independent matmuls) +
            #      fused update/candidate 1x1-conv gates + GRU combine ----
            x0 = jnp.concatenate([out, h], axis=-1)                 # (R, 2*Dm)
            x1 = jnp.dot(a1, x0, preferred_element_type=jnp.float32)
            x2 = jnp.dot(a2, x0, preferred_element_type=jnp.float32)
            xcat = jnp.concatenate([x0, x1, x2], axis=-1)           # (R, 6*Dm)
            g = (jnp.dot(xcat, wg_ref[l], preferred_element_type=jnp.float32)
                 + bg_ref[l])                                       # (R, 2*Dm)
            u = jax.nn.sigmoid(g[:, :dm])
            c = jnp.tanh(g[:, dm:])
            h_new = c + u * (h - c)
            h_ref[l] = h_new
            out = h_new

        # capture output at step == lengths - 1 (per batch element)
        out_ref[...] = jnp.where(sel > 0.5, out, out_ref[...])
        return carry

    jax.lax.fori_loop(0, n_steps, step_body, 0)


# ----------------------------------------------------------------------------
# Parameters (fused / stacked weight layout), diffusion constants, wrapper.
# ----------------------------------------------------------------------------
def init_cgrnn_params(key, d_in, d_model, n_layers, num_nodes, n_heads=2):
    assert d_in <= d_model
    cin = 2 * d_model   # per-hop channel count after padding x features to d_model

    def nrm(k, shape, s=0.1):
        return (s * jax.random.normal(k, shape)).astype(jnp.float32)

    wg, emb, wqkv, wo, wff, wms = [], [], [], [], [], []
    for l in range(n_layers):
        key, *ks = jax.random.split(key, 8)
        d_x = d_in if l == 0 else d_model

        def pad_hops(w, d_x=d_x):
            # (3, d_x + d_model, d_model) -> (3, 2*d_model, d_model):
            # zero rows for the padded x channels keep layer-0 math identical.
            pad = jnp.zeros((3, d_model - d_x, d_model), jnp.float32)
            return jnp.concatenate([w[:, :d_x, :], pad, w[:, d_x:, :]], axis=1)

        wu = pad_hops(nrm(ks[0], (3, d_x + d_model, d_model))).reshape(
            3 * cin, d_model)
        wc = pad_hops(nrm(ks[1], (3, d_x + d_model, d_model))).reshape(
            3 * cin, d_model)
        wg.append(jnp.concatenate([wu, wc], axis=-1))              # (3*cin, 2*Dm)
        emb.append(nrm(ks[2], (num_nodes, d_model)))
        wqkv.append(nrm(ks[3], (d_model, 3 * d_model)))            # cols [Q | K | V]
        wo.append(nrm(ks[4], (d_model, d_model)))
        wff.append(nrm(ks[5], (2, d_model, d_model)))              # linear1.T, linear2.T
        w_ms = nrm(ks[6], (2, d_model, d_model))
        wms.append(jnp.concatenate([w_ms[0], w_ms[1]], axis=-1))   # cols [mu | sigma]

    ln = jnp.stack([jnp.ones((1, d_model), jnp.float32),
                    jnp.zeros((1, d_model), jnp.float32)], axis=0)  # (2,1,Dm)
    ln = jnp.broadcast_to(ln[None], (n_layers, 2, 1, d_model))
    return dict(
        wg=jnp.stack(wg),
        bg=jnp.zeros((n_layers, 1, 2 * d_model), jnp.float32),
        embed=jnp.stack(emb),
        wqkv=jnp.stack(wqkv),
        bqkv=jnp.zeros((n_layers, 1, 3 * d_model), jnp.float32),
        wo=jnp.stack(wo),
        bo=jnp.zeros((n_layers, 1, d_model), jnp.float32),
        ln1=ln, ln2=ln,
        wff=jnp.stack(wff),
        bff=jnp.zeros((n_layers, 2, 1, d_model), jnp.float32),
        wms=jnp.stack(wms),
        bms=jnp.zeros((n_layers, 1, 2 * d_model), jnp.float32),
        n_heads=n_heads,
    )


def diffusion_constants(dt=DT, beta_start=1e-5, beta_end=2e-5):
    betas = jnp.linspace(beta_end ** 0.5, beta_start ** 0.5, dt + 1)
    alphas = 1.0 - betas
    ac = jnp.cumprod(alphas)
    return jnp.sqrt(ac), jnp.sqrt(1.0 - ac)


def cgrnn_forward(params, x, adj, delta_t_tensor, lengths, time_encoding, mask,
                  d_model, noise_key):
    # x, mask: (B, F, N, S) -- PyTorch layout at the API boundary.
    # time_encoding is accepted but unused (matches the reference forward).
    del time_encoding
    B, F, N, S = x.shape
    L = params['wg'].shape[0]
    R = B * N
    n_heads = params['n_heads']
    sqrt_ac, sqrt_omac = diffusion_constants()

    # ---- per-step, per-row (B*N flattened, batch-major) sequences ----------
    x_seq = jnp.transpose(x, (3, 0, 2, 1)).reshape(S, R, F)
    x_seq = jnp.pad(x_seq, ((0, 0), (0, 0), (0, d_model - F)))      # pad F -> Dm lanes
    # mask_last at step s is mask[..., s-1] (s>0) else mask[..., 0]; broadcast assumes F == 1
    m_seq = jnp.transpose(mask, (3, 0, 2, 1)).reshape(S, R, F)[:, :, :1]
    mask_last_seq = jnp.concatenate([m_seq[:1], m_seq[:-1]], axis=0)  # (S,R,1)

    dstep = jnp.clip(jnp.floor(delta_t_tensor / (1.0 / DT)), 0, DT).astype(jnp.int32)
    a_seq = jnp.repeat(sqrt_ac[dstep].T, N, axis=1)[:, :, None]       # (S,R,1)
    b_seq = jnp.repeat(sqrt_omac[dstep].T, N, axis=1)[:, :, None]     # (S,R,1)
    sel = (jnp.arange(S)[:, None] == (lengths[None, :] - 1)).astype(jnp.float32)
    sel_seq = jnp.repeat(sel, N, axis=1)[:, :, None]                  # (S,R,1)

    noise_seq = jax.random.normal(noise_key, (S, L, R, d_model), jnp.float32)

    eye_b = jnp.eye(B, dtype=jnp.float32)
    a1 = jnp.kron(eye_b, adj)                                         # (R,R)
    a2 = jnp.kron(eye_b, jnp.dot(adj, adj))                           # (R,R), A^2 precomputed
    emb_bn = jnp.tile(params['embed'], (1, B, 1))                     # (L,R,Dm)

    inputs = (x_seq, mask_last_seq, a_seq, b_seq, sel_seq, noise_seq,
              a1, a2, emb_bn,
              params['wg'], params['bg'], params['wqkv'], params['bqkv'],
              params['wo'], params['bo'], params['ln1'], params['wff'],
              params['bff'], params['ln2'], params['wms'], params['bms'])

    def full(a):
        nd = a.ndim
        return pl.BlockSpec(a.shape, lambda i, nd=nd: (0,) * nd)

    kernel = functools.partial(_cgrnn_seq_kernel, batch=B, nodes=N,
                               n_heads=n_heads)
    out_flat = pl.pallas_call(
        kernel,
        out_shape=jax.ShapeDtypeStruct((R, d_model), jnp.float32),
        grid_spec=pltpu.PrefetchScalarGridSpec(
            num_scalar_prefetch=0,
            grid=(1,),
            in_specs=[full(a) for a in inputs],
            out_specs=pl.BlockSpec((R, d_model), lambda i: (0, 0)),
            scratch_shapes=[pltpu.VMEM((L, R, d_model), jnp.float32)],
        ),
        compiler_params=pltpu.CompilerParams(
            dimension_semantics=("arbitrary",)),
    )(*inputs)
    return jnp.transpose(out_flat.reshape(B, N, d_model), (0, 2, 1))  # (B, Dm, N)


if __name__ == "__main__":
    B, F, N, S = 2, 1, 8, 6          # batch, d_in, num_nodes, seq steps
    d_model, n_layers = 32, 2
    key = jax.random.PRNGKey(0)
    k_x, k_adj, k_dt, k_mask, k_param, k_noise = jax.random.split(key, 6)

    x = jax.random.normal(k_x, (B, F, N, S), jnp.float32)
    adj = jnp.abs(jax.random.normal(k_adj, (N, N), jnp.float32))
    delta_t_tensor = jax.random.uniform(k_dt, (B, S), jnp.float32, 0.0, 0.999)
    lengths = jnp.array([S, S - 2], jnp.int32)
    time_encoding = jnp.zeros((S, N), jnp.float32)   # unused by forward
    mask = (jax.random.uniform(k_mask, (B, F, N, S)) > 0.5).astype(jnp.float32)

    params = init_cgrnn_params(k_param, F, d_model, n_layers, N)
    out = cgrnn_forward(params, x, adj, delta_t_tensor, lengths, time_encoding,
                        mask, d_model, k_noise)
    jax.block_until_ready(out)
    assert out.shape == (B, d_model, N)
    print("KERNEL_OK")
</pallas_src>

<mosaic_0001>
module attributes {stable_mosaic.version = 11 : i64} {
  func.func @_cgrnn_seq_kernel(%arg0: i32, %arg1: memref<6x16x32xf32, #tpu.memory_space<vmem>>, %arg2: memref<6x16x1xf32, #tpu.memory_space<vmem>>, %arg3: memref<6x16x1xf32, #tpu.memory_space<vmem>>, %arg4: memref<6x16x1xf32, #tpu.memory_space<vmem>>, %arg5: memref<6x16x1xf32, #tpu.memory_space<vmem>>, %arg6: memref<6x2x16x32xf32, #tpu.memory_space<vmem>>, %arg7: memref<16x16xf32, #tpu.memory_space<vmem>>, %arg8: memref<16x16xf32, #tpu.memory_space<vmem>>, %arg9: memref<2x16x32xf32, #tpu.memory_space<vmem>>, %arg10: memref<2x192x64xf32, #tpu.memory_space<vmem>>, %arg11: memref<2x1x64xf32, #tpu.memory_space<vmem>>, %arg12: memref<2x32x96xf32, #tpu.memory_space<vmem>>, %arg13: memref<2x1x96xf32, #tpu.memory_space<vmem>>, %arg14: memref<2x32x32xf32, #tpu.memory_space<vmem>>, %arg15: memref<2x1x32xf32, #tpu.memory_space<vmem>>, %arg16: memref<2x2x1x32xf32, #tpu.memory_space<vmem>>, %arg17: memref<2x2x32x32xf32, #tpu.memory_space<vmem>>, %arg18: memref<2x2x1x32xf32, #tpu.memory_space<vmem>>, %arg19: memref<2x2x1x32xf32, #tpu.memory_space<vmem>>, %arg20: memref<2x32x64xf32, #tpu.memory_space<vmem>>, %arg21: memref<2x1x64xf32, #tpu.memory_space<vmem>>, %arg22: memref<16x32xf32, #tpu.memory_space<vmem>>, %arg23: memref<2x16x32xf32, #tpu.memory_space<vmem>>) attributes {dimension_semantics = [#tpu.dimension_semantics<arbitrary>], iteration_bounds = array<i64: 1>, scalar_prefetch = 0 : i64, scratch_operands = 1 : i64, tpu.core_type = #tpu.core_type<tc>, window_params = [{pipeline_mode = #tpu.pipeline_mode<synchronous>, transform_indices = @transform_0, window_bounds = array<i64: 6, 16, 32>}, {pipeline_mode = #tpu.pipeline_mode<synchronous>, transform_indices = @transform_1, window_bounds = array<i64: 6, 16, 1>}, {pipeline_mode = #tpu.pipeline_mode<synchronous>, transform_indices = @transform_2, window_bounds = array<i64: 6, 16, 1>}, {pipeline_mode = #tpu.pipeline_mode<synchronous>, transform_indices = @transform_3, window_bounds = array<i64: 6, 16, 1>}, {pipeline_mode = #tpu.pipeline_mode<synchronous>, transform_indices = @transform_4, window_bounds = array<i64: 6, 16, 1>}, {pipeline_mode = #tpu.pipeline_mode<synchronous>, transform_indices = @transform_5, window_bounds = array<i64: 6, 2, 16, 32>}, {pipeline_mode = #tpu.pipeline_mode<synchronous>, transform_indices = @transform_6, window_bounds = array<i64: 16, 16>}, {pipeline_mode = #tpu.pipeline_mode<synchronous>, transform_indices = @transform_7, window_bounds = array<i64: 16, 16>}, {pipeline_mode = #tpu.pipeline_mode<synchronous>, transform_indices = @transform_8, window_bounds = array<i64: 2, 16, 32>}, {pipeline_mode = #tpu.pipeline_mode<synchronous>, transform_indices = @transform_9, window_bounds = array<i64: 2, 192, 64>}, {pipeline_mode = #tpu.pipeline_mode<synchronous>, transform_indices = @transform_10, window_bounds = array<i64: 2, 1, 64>}, {pipeline_mode = #tpu.pipeline_mode<synchronous>, transform_indices = @transform_11, window_bounds = array<i64: 2, 32, 96>}, {pipeline_mode = #tpu.pipeline_mode<synchronous>, transform_indices = @transform_12, window_bounds = array<i64: 2, 1, 96>}, {pipeline_mode = #tpu.pipeline_mode<synchronous>, transform_indices = @transform_13, window_bounds = array<i64: 2, 32, 32>}, {pipeline_mode = #tpu.pipeline_mode<synchronous>, transform_indices = @transform_14, window_bounds = array<i64: 2, 1, 32>}, {pipeline_mode = #tpu.pipeline_mode<synchronous>, transform_indices = @transform_15, window_bounds = array<i64: 2, 2, 1, 32>}, {pipeline_mode = #tpu.pipeline_mode<synchronous>, transform_indices = @transform_16, window_bounds = array<i64: 2, 2, 32, 32>}, {pipeline_mode = #tpu.pipeline_mode<synchronous>, transform_indices = @transform_17, window_bounds = array<i64: 2, 2, 1, 32>}, {pipeline_mode = #tpu.pipeline_mode<synchronous>, transform_indices = @transform_18, window_bounds = array<i64: 2, 2, 1, 32>}, {pipeline_mode = #tpu.pipeline_mode<synchronous>, transform_indices = @transform_19, window_bounds = array<i64: 2, 32, 64>}, {pipeline_mode = #tpu.pipeline_mode<synchronous>, transform_indices = @transform_20, window_bounds = array<i64: 2, 1, 64>}, {pipeline_mode = #tpu.pipeline_mode<synchronous>, transform_indices = @transform_21, window_bounds = array<i64: 16, 32>}]} {
    %cst = arith.constant 0.000000e+00 : f32
    %0 = vector.broadcast %cst : f32 to vector<2x16x32xf32>
    %c0 = arith.constant 0 : index
    %c0_0 = arith.constant 0 : index
    %c0_1 = arith.constant 0 : index
    %1 = vector.load %arg23[%c0, %c0_0, %c0_1] : memref<2x16x32xf32, #tpu.memory_space<vmem>>, vector<2x16x32xf32>
    tpu.vector_store %arg23[%c0, %c0_0, %c0_1], %0 {strides = array<i32>} : memref<2x16x32xf32, #tpu.memory_space<vmem>>, vector<2x16x32xf32>,
    %cst_2 = arith.constant 0.000000e+00 : f32
    %2 = vector.broadcast %cst_2 : f32 to vector<16x32xf32>
    %c0_3 = arith.constant 0 : index
    %c0_4 = arith.constant 0 : index
    %3 = vector.load %arg22[%c0_3, %c0_4] : memref<16x32xf32, #tpu.memory_space<vmem>>, vector<16x32xf32>
    tpu.vector_store %arg22[%c0_3, %c0_4], %2 {strides = array<i32>} : memref<16x32xf32, #tpu.memory_space<vmem>>, vector<16x32xf32>,
    %c0_5 = arith.constant 0 : index
    %c0_6 = arith.constant 0 : index
    %4 = vector.load %arg7[%c0_5, %c0_6] : memref<16x16xf32, #tpu.memory_space<vmem>>, vector<16x16xf32>
    %c0_7 = arith.constant 0 : index
    %c0_8 = arith.constant 0 : index
    %5 = vector.load %arg8[%c0_7, %c0_8] : memref<16x16xf32, #tpu.memory_space<vmem>>, vector<16x16xf32>
    %c0_i32 = arith.constant 0 : i32
    %c6_i32 = arith.constant 6 : i32
    %6 = arith.addi %c0_i32, %c6_i32 : i32
    %c1_i32 = arith.constant 1 : i32
    scf.for %arg24 = %c0_i32 to %6 step %c1_i32  : i32 {
      %7 = arith.index_cast %arg24 : i32 to index
      %c0_10 = arith.constant 0 : index
      %c0_11 = arith.constant 0 : index
      %8 = vector.load %arg2[%7, %c0_10, %c0_11] : memref<6x16x1xf32, #tpu.memory_space<vmem>>, vector<1x16x1xf32>
      %9 = vector.shape_cast %8 : vector<1x16x1xf32> to vector<16x1xf32>
      %10 = arith.index_cast %arg24 : i32 to index
      %c0_12 = arith.constant 0 : index
      %c0_13 = arith.constant 0 : index
      %11 = vector.load %arg3[%10, %c0_12, %c0_13] : memref<6x16x1xf32, #tpu.memory_space<vmem>>, vector<1x16x1xf32>
      %12 = vector.shape_cast %11 : vector<1x16x1xf32> to vector<16x1xf32>
      %13 = arith.index_cast %arg24 : i32 to index
      %c0_14 = arith.constant 0 : index
      %c0_15 = arith.constant 0 : index
      %14 = vector.load %arg4[%13, %c0_14, %c0_15] : memref<6x16x1xf32, #tpu.memory_space<vmem>>, vector<1x16x1xf32>
      %15 = vector.shape_cast %14 : vector<1x16x1xf32> to vector<16x1xf32>
      %16 = arith.index_cast %arg24 : i32 to index
      %c0_16 = arith.constant 0 : index
      %c0_17 = arith.constant 0 : index
      %17 = vector.load %arg5[%16, %c0_16, %c0_17] : memref<6x16x1xf32, #tpu.memory_space<vmem>>, vector<1x16x1xf32>
      %18 = vector.shape_cast %17 : vector<1x16x1xf32> to vector<16x1xf32>
      %19 = arith.index_cast %arg24 : i32 to index
      %c0_18 = arith.constant 0 : index
      %c0_19 = arith.constant 0 : index
      %c0_20 = arith.constant 0 : index
      %20 = vector.load %arg6[%19, %c0_18, %c0_19, %c0_20] : memref<6x2x16x32xf32, #tpu.memory_space<vmem>>, vector<1x2x16x32xf32>
      %21 = vector.shape_cast %20 : vector<1x2x16x32xf32> to vector<2x16x32xf32>
      %22 = arith.index_cast %arg24 : i32 to index
      %c0_21 = arith.constant 0 : index
      %c0_22 = arith.constant 0 : index
      %23 = vector.load %arg1[%22, %c0_21, %c0_22] : memref<6x16x32xf32, #tpu.memory_space<vmem>>, vector<1x16x32xf32>
      %24 = vector.shape_cast %23 : vector<1x16x32xf32> to vector<16x32xf32>
      %c0_i32_23 = arith.constant 0 : i32
      %25 = arith.cmpi sgt, %arg24, %c0_i32_23 : i32
      %26 = arith.extui %25 : i1 to i32
      %c0_i32_24 = arith.constant 0 : i32
      %27 = arith.cmpi ne, %26, %c0_i32_24 : i32
      scf.if %27 {
        %c0_63 = arith.constant 0 : index
        %c0_64 = arith.constant 0 : index
        %c0_65 = arith.constant 0 : index
        %92 = vector.load %arg23[%c0_63, %c0_64, %c0_65] : memref<2x16x32xf32, #tpu.memory_space<vmem>>, vector<1x16x32xf32>
        %93 = vector.shape_cast %92 : vector<1x16x32xf32> to vector<16x32xf32>
        %c0_66 = arith.constant 0 : index
        %c0_67 = arith.constant 0 : index
        %c0_68 = arith.constant 0 : index
        %94 = vector.load %arg9[%c0_66, %c0_67, %c0_68] : memref<2x16x32xf32, #tpu.memory_space<vmem>>, vector<1x16x32xf32>
        %95 = vector.shape_cast %94 : vector<1x16x32xf32> to vector<16x32xf32>
        %96 = vector.broadcast %9 : vector<16x1xf32> to vector<16x32xf32>
        %97 = arith.mulf %95, %96 : vector<16x32xf32>
        %98 = arith.addf %93, %97 : vector<16x32xf32>
        %c0_69 = arith.constant 0 : index
        %c0_70 = arith.constant 0 : index
        %c0_71 = arith.constant 0 : index
        %99 = vector.load %arg12[%c0_69, %c0_70, %c0_71] : memref<2x32x96xf32, #tpu.memory_space<vmem>>, vector<1x32x96xf32>
        %100 = vector.shape_cast %99 : vector<1x32x96xf32> to vector<32x96xf32>
        %cst_72 = arith.constant dense<0.000000e+00> : vector<16x96xf32>
        %101 = tpu.matmul %98, %100, %cst_72 {dimension_numbers = #tpu.dot_dimension_numbers<[1], [0], [0], [1], [0, 0, 1, 1], [], []>} : vector<16x32xf32>, vector<32x96xf32>, vector<16x96xf32> -> vector<16x96xf32>
        %c0_73 = arith.constant 0 : index
        %c0_74 = arith.constant 0 : index
        %c0_75 = arith.constant 0 : index
        %102 = vector.load %arg13[%c0_73, %c0_74, %c0_75] : memref<2x1x96xf32, #tpu.memory_space<vmem>>, vector<1x1x96xf32>
        %103 = vector.shape_cast %102 : vector<1x1x96xf32> to vector<1x96xf32>
        %104 = vector.broadcast %103 : vector<1x96xf32> to vector<16x96xf32>
        %105 = arith.addf %101, %104 : vector<16x96xf32>
        %106 = vector.extract_strided_slice %105 {offsets = [0, 0], sizes = [8, 16], strides = [1, 1]} : vector<16x96xf32> to vector<8x16xf32>
        %107 = vector.extract_strided_slice %105 {offsets = [0, 32], sizes = [8, 16], strides = [1, 1]} : vector<16x96xf32> to vector<8x16xf32>
        %108 = vector.extract_strided_slice %105 {offsets = [0, 64], sizes = [8, 16], strides = [1, 1]} : vector<16x96xf32> to vector<8x16xf32>
        %cst_76 = arith.constant dense<0.000000e+00> : vector<8x8xf32>
        %109 = tpu.matmul %106, %107, %cst_76 {dimension_numbers = #tpu.dot_dimension_numbers<[1], [1], [0], [0], [0, 0, 1, 0], [], []>} : vector<8x16xf32>, vector<8x16xf32>, vector<8x8xf32> -> vector<8x8xf32>
        %cst_77 = arith.constant 2.500000e-01 : f32
        %110 = vector.broadcast %cst_77 : f32 to vector<8x8xf32>
        %111 = arith.mulf %109, %110 : vector<8x8xf32>
        %cst_78 = arith.constant dense<0xFF800000> : vector<8xf32>
        %112 = vector.multi_reduction <maximumf>, %111, %cst_78 [1] : vector<8x8xf32> to vector<8xf32>
        %113 = vector.shape_cast %112 : vector<8xf32> to vector<8x1xf32>
        %114 = vector.broadcast %113 : vector<8x1xf32> to vector<8x8xf32>
        %115 = arith.subf %111, %114 : vector<8x8xf32>
        %116 = math.exp %115 : vector<8x8xf32>
        %cst_79 = arith.constant dense<0.000000e+00> : vector<8xf32>
        %117 = vector.multi_reduction <add>, %116, %cst_79 [1] : vector<8x8xf32> to vector<8xf32>
        %118 = vector.shape_cast %117 : vector<8xf32> to vector<8x1xf32>
        %119 = tpu.reciprocal %118 {approx = true} : vector<8x1xf32> -> vector<8x1xf32>
        %120 = vector.broadcast %119 : vector<8x1xf32> to vector<8x8xf32>
        %121 = arith.mulf %116, %120 : vector<8x8xf32>
        %cst_80 = arith.constant dense<0.000000e+00> : vector<8x16xf32>
        %122 = tpu.matmul %121, %108, %cst_80 {dimension_numbers = #tpu.dot_dimension_numbers<[1], [0], [0], [1], [0, 0, 1, 1], [], []>} : vector<8x8xf32>, vector<8x16xf32>, vector<8x16xf32> -> vector<8x16xf32>
        %123 = vector.extract_strided_slice %105 {offsets = [0, 16], sizes = [8, 16], strides = [1, 1]} : vector<16x96xf32> to vector<8x16xf32>
        %124 = vector.extract_strided_slice %105 {offsets = [0, 48], sizes = [8, 16], strides = [1, 1]} : vector<16x96xf32> to vector<8x16xf32>
        %125 = vector.extract_strided_slice %105 {offsets = [0, 80], sizes = [8, 16], strides = [1, 1]} : vector<16x96xf32> to vector<8x16xf32>
        %cst_81 = arith.constant dense<0.000000e+00> : vector<8x8xf32>
        %126 = tpu.matmul %123, %124, %cst_81 {dimension_numbers = #tpu.dot_dimension_numbers<[1], [1], [0], [0], [0, 0, 1, 0], [], []>} : vector<8x16xf32>, vector<8x16xf32>, vector<8x8xf32> -> vector<8x8xf32>
        %cst_82 = arith.constant 2.500000e-01 : f32
        %127 = vector.broadcast %cst_82 : f32 to vector<8x8xf32>
        %128 = arith.mulf %126, %127 : vector<8x8xf32>
        %cst_83 = arith.constant dense<0xFF800000> : vector<8xf32>
        %129 = vector.multi_reduction <maximumf>, %128, %cst_83 [1] : vector<8x8xf32> to vector<8xf32>
        %130 = vector.shape_cast %129 : vector<8xf32> to vector<8x1xf32>
        %131 = vector.broadcast %130 : vector<8x1xf32> to vector<8x8xf32>
        %132 = arith.subf %128, %131 : vector<8x8xf32>
        %133 = math.exp %132 : vector<8x8xf32>
        %cst_84 = arith.constant dense<0.000000e+00> : vector<8xf32>
        %134 = vector.multi_reduction <add>, %133, %cst_84 [1] : vector<8x8xf32> to vector<8xf32>
        %135 = vector.shape_cast %134 : vector<8xf32> to vector<8x1xf32>
        %136 = tpu.reciprocal %135 {approx = true} : vector<8x1xf32> -> vector<8x1xf32>
        %137 = vector.broadcast %136 : vector<8x1xf32> to vector<8x8xf32>
        %138 = arith.mulf %133, %137 : vector<8x8xf32>
        %cst_85 = arith.constant dense<0.000000e+00> : vector<8x16xf32>
        %139 = tpu.matmul %138, %125, %cst_85 {dimension_numbers = #tpu.dot_dimension_numbers<[1], [0], [0], [1], [0, 0, 1, 1], [], []>} : vector<8x8xf32>, vector<8x16xf32>, vector<8x16xf32> -> vector<8x16xf32>
        %140 = tpu.concatenate %122, %139 in 1 : vector<8x16xf32>, vector<8x16xf32> -> vector<8x32xf32>
        %141 = vector.extract_strided_slice %105 {offsets = [8, 0], sizes = [8, 16], strides = [1, 1]} : vector<16x96xf32> to vector<8x16xf32>
        %142 = vector.extract_strided_slice %105 {offsets = [8, 32], sizes = [8, 16], strides = [1, 1]} : vector<16x96xf32> to vector<8x16xf32>
        %143 = vector.extract_strided_slice %105 {offsets = [8, 64], sizes = [8, 16], strides = [1, 1]} : vector<16x96xf32> to vector<8x16xf32>
        %cst_86 = arith.constant dense<0.000000e+00> : vector<8x8xf32>
        %144 = tpu.matmul %141, %142, %cst_86 {dimension_numbers = #tpu.dot_dimension_numbers<[1], [1], [0], [0], [0, 0, 1, 0], [], []>} : vector<8x16xf32>, vector<8x16xf32>, vector<8x8xf32> -> vector<8x8xf32>
        %cst_87 = arith.constant 2.500000e-01 : f32
        %145 = vector.broadcast %cst_87 : f32 to vector<8x8xf32>
        %146 = arith.mulf %144, %145 : vector<8x8xf32>
        %cst_88 = arith.constant dense<0xFF800000> : vector<8xf32>
        %147 = vector.multi_reduction <maximumf>, %146, %cst_88 [1] : vector<8x8xf32> to vector<8xf32>
        %148 = vector.shape_cast %147 : vector<8xf32> to vector<8x1xf32>
        %149 = vector.broadcast %148 : vector<8x1xf32> to vector<8x8xf32>
        %150 = arith.subf %146, %149 : vector<8x8xf32>
        %151 = math.exp %150 : vector<8x8xf32>
        %cst_89 = arith.constant dense<0.000000e+00> : vector<8xf32>
        %152 = vector.multi_reduction <add>, %151, %cst_89 [1] : vector<8x8xf32> to vector<8xf32>
        %153 = vector.shape_cast %152 : vector<8xf32> to vector<8x1xf32>
        %154 = tpu.reciprocal %153 {approx = true} : vector<8x1xf32> -> vector<8x1xf32>
        %155 = vector.broadcast %154 : vector<8x1xf32> to vector<8x8xf32>
        %156 = arith.mulf %151, %155 : vector<8x8xf32>
        %cst_90 = arith.constant dense<0.000000e+00> : vector<8x16xf32>
        %157 = tpu.matmul %156, %143, %cst_90 {dimension_numbers = #tpu.dot_dimension_numbers<[1], [0], [0], [1], [0, 0, 1, 1], [], []>} : vector<8x8xf32>, vector<8x16xf32>, vector<8x16xf32> -> vector<8x16xf32>
        %158 = vector.extract_strided_slice %105 {offsets = [8, 16], sizes = [8, 16], strides = [1, 1]} : vector<16x96xf32> to vector<8x16xf32>
        %159 = vector.extract_strided_slice %105 {offsets = [8, 48], sizes = [8, 16], strides = [1, 1]} : vector<16x96xf32> to vector<8x16xf32>
        %160 = vector.extract_strided_slice %105 {offsets = [8, 80], sizes = [8, 16], strides = [1, 1]} : vector<16x96xf32> to vector<8x16xf32>
        %cst_91 = arith.constant dense<0.000000e+00> : vector<8x8xf32>
        %161 = tpu.matmul %158, %159, %cst_91 {dimension_numbers = #tpu.dot_dimension_numbers<[1], [1], [0], [0], [0, 0, 1, 0], [], []>} : vector<8x16xf32>, vector<8x16xf32>, vector<8x8xf32> -> vector<8x8xf32>
        %cst_92 = arith.constant 2.500000e-01 : f32
        %162 = vector.broadcast %cst_92 : f32 to vector<8x8xf32>
        %163 = arith.mulf %161, %162 : vector<8x8xf32>
        %cst_93 = arith.constant dense<0xFF800000> : vector<8xf32>
        %164 = vector.multi_reduction <maximumf>, %163, %cst_93 [1] : vector<8x8xf32> to vector<8xf32>
        %165 = vector.shape_cast %164 : vector<8xf32> to vector<8x1xf32>
        %166 = vector.broadcast %165 : vector<8x1xf32> to vector<8x8xf32>
        %167 = arith.subf %163, %166 : vector<8x8xf32>
        %168 = math.exp %167 : vector<8x8xf32>
        %cst_94 = arith.constant dense<0.000000e+00> : vector<8xf32>
        %169 = vector.multi_reduction <add>, %168, %cst_94 [1] : vector<8x8xf32> to vector<8xf32>
        %170 = vector.shape_cast %169 : vector<8xf32> to vector<8x1xf32>
        %171 = tpu.reciprocal %170 {approx = true} : vector<8x1xf32> -> vector<8x1xf32>
        %172 = vector.broadcast %171 : vector<8x1xf32> to vector<8x8xf32>
        %173 = arith.mulf %168, %172 : vector<8x8xf32>
        %cst_95 = arith.constant dense<0.000000e+00> : vector<8x16xf32>
        %174 = tpu.matmul %173, %160, %cst_95 {dimension_numbers = #tpu.dot_dimension_numbers<[1], [0], [0], [1], [0, 0, 1, 1], [], []>} : vector<8x8xf32>, vector<8x16xf32>, vector<8x16xf32> -> vector<8x16xf32>
        %175 = tpu.concatenate %157, %174 in 1 : vector<8x16xf32>, vector<8x16xf32> -> vector<8x32xf32>
        %176 = tpu.concatenate %140, %175 in 0 : vector<8x32xf32>, vector<8x32xf32> -> vector<16x32xf32>
        %c0_96 = arith.constant 0 : index
        %c0_97 = arith.constant 0 : index
        %c0_98 = arith.constant 0 : index
        %177 = vector.load %arg14[%c0_96, %c0_97, %c0_98] : memref<2x32x32xf32, #tpu.memory_space<vmem>>, vector<1x32x32xf32>
        %178 = vector.shape_cast %177 : vector<1x32x32xf32> to vector<32x32xf32>
        %cst_99 = arith.constant dense<0.000000e+00> : vector<16x32xf32>
        %179 = tpu.matmul %176, %178, %cst_99 {dimension_numbers = #tpu.dot_dimension_numbers<[1], [0], [0], [1], [0, 0, 1, 1], [], []>} : vector<16x32xf32>, vector<32x32xf32>, vector<16x32xf32> -> vector<16x32xf32>
        %c0_100 = arith.constant 0 : index
        %c0_101 = arith.constant 0 : index
        %c0_102 = arith.constant 0 : index
        %180 = vector.load %arg15[%c0_100, %c0_101, %c0_102] : memref<2x1x32xf32, #tpu.memory_space<vmem>>, vector<1x1x32xf32>
        %181 = vector.shape_cast %180 : vector<1x1x32xf32> to vector<1x32xf32>
        %182 = vector.broadcast %181 : vector<1x32xf32> to vector<16x32xf32>
        %183 = arith.addf %179, %182 : vector<16x32xf32>
        %184 = arith.addf %98, %183 : vector<16x32xf32>
        %c0_103 = arith.constant 0 : index
        %c0_104 = arith.constant 0 : index
        %c0_105 = arith.constant 0 : index
        %c0_106 = arith.constant 0 : index
        %185 = vector.load %arg16[%c0_103, %c0_104, %c0_105, %c0_106] : memref<2x2x1x32xf32, #tpu.memory_space<vmem>>, vector<1x1x1x32xf32>
        %186 = vector.shape_cast %185 : vector<1x1x1x32xf32> to vector<1x32xf32>
        %c0_107 = arith.constant 0 : index
        %c1_108 = arith.constant 1 : index
        %c0_109 = arith.constant 0 : index
        %c0_110 = arith.constant 0 : index
        %187 = vector.load %arg16[%c0_107, %c1_108, %c0_109, %c0_110] : memref<2x2x1x32xf32, #tpu.memory_space<vmem>>, vector<1x1x1x32xf32>
        %188 = vector.shape_cast %187 : vector<1x1x1x32xf32> to vector<1x32xf32>
        %cst_111 = arith.constant dense<0.000000e+00> : vector<16xf32>
        %189 = vector.multi_reduction <add>, %184, %cst_111 [1] : vector<16x32xf32> to vector<16xf32>
        %190 = vector.shape_cast %189 : vector<16xf32> to vector<16x1xf32>
        %cst_112 = arith.constant 3.200000e+01 : f32
        %191 = vector.broadcast %cst_112 : f32 to vector<16x1xf32>
        %192 = arith.divf %190, %191 : vector<16x1xf32>
        %193 = vector.broadcast %192 : vector<16x1xf32> to vector<16x32xf32>
        %194 = arith.subf %184, %193 : vector<16x32xf32>
        %195 = vector.broadcast %192 : vector<16x1xf32> to vector<16x32xf32>
        %196 = arith.subf %184, %195 : vector<16x32xf32>
        %197 = arith.mulf %194, %196 : vector<16x32xf32>
        %cst_113 = arith.constant dense<0.000000e+00> : vector<16xf32>
        %198 = vector.multi_reduction <add>, %197, %cst_113 [1] : vector<16x32xf32> to vector<16xf32>
        %199 = vector.shape_cast %198 : vector<16xf32> to vector<16x1xf32>
        %cst_114 = arith.constant 3.200000e+01 : f32
        %200 = vector.broadcast %cst_114 : f32 to vector<16x1xf32>
        %201 = arith.divf %199, %200 : vector<16x1xf32>
        %202 = vector.broadcast %192 : vector<16x1xf32> to vector<16x32xf32>
        %203 = arith.subf %184, %202 : vector<16x32xf32>
        %cst_115 = arith.constant 9.99999974E-6 : f32
        %204 = vector.broadcast %cst_115 : f32 to vector<16x1xf32>
        %205 = arith.addf %201, %204 : vector<16x1xf32>
        %206 = math.rsqrt %205 : vector<16x1xf32>
        %207 = vector.broadcast %206 : vector<16x1xf32> to vector<16x32xf32>
        %208 = arith.mulf %203, %207 : vector<16x32xf32>
        %209 = vector.broadcast %186 : vector<1x32xf32> to vector<16x32xf32>
        %210 = arith.mulf %208, %209 : vector<16x32xf32>
        %211 = vector.broadcast %188 : vector<1x32xf32> to vector<16x32xf32>
        %212 = arith.addf %210, %211 : vector<16x32xf32>
        %c0_116 = arith.constant 0 : index
        %c0_117 = arith.constant 0 : index
        %c0_118 = arith.constant 0 : index
        %c0_119 = arith.constant 0 : index
        %213 = vector.load %arg17[%c0_116, %c0_117, %c0_118, %c0_119] : memref<2x2x32x32xf32, #tpu.memory_space<vmem>>, vector<1x1x32x32xf32>
        %214 = vector.shape_cast %213 : vector<1x1x32x32xf32> to vector<32x32xf32>
        %cst_120 = arith.constant dense<0.000000e+00> : vector<16x32xf32>
        %215 = tpu.matmul %212, %214, %cst_120 {dimension_numbers = #tpu.dot_dimension_numbers<[1], [0], [0], [1], [0, 0, 1, 1], [], []>} : vector<16x32xf32>, vector<32x32xf32>, vector<16x32xf32> -> vector<16x32xf32>
        %c0_121 = arith.constant 0 : index
        %c0_122 = arith.constant 0 : index
        %c0_123 = arith.constant 0 : index
        %c0_124 = arith.constant 0 : index
        %216 = vector.load %arg18[%c0_121, %c0_122, %c0_123, %c0_124] : memref<2x2x1x32xf32, #tpu.memory_space<vmem>>, vector<1x1x1x32xf32>
        %217 = vector.shape_cast %216 : vector<1x1x1x32xf32> to vector<1x32xf32>
        %218 = vector.broadcast %217 : vector<1x32xf32> to vector<16x32xf32>
        %219 = arith.addf %215, %218 : vector<16x32xf32>
        %cst_125 = arith.constant 0.000000e+00 : f32
        %220 = vector.broadcast %cst_125 : f32 to vector<16x32xf32>
        %221 = arith.maximumf %219, %220 : vector<16x32xf32>
        %c0_126 = arith.constant 0 : index
        %c1_127 = arith.constant 1 : index
        %c0_128 = arith.constant 0 : index
        %c0_129 = arith.constant 0 : index
        %222 = vector.load %arg17[%c0_126, %c1_127, %c0_128, %c0_129] : memref<2x2x32x32xf32, #tpu.memory_space<vmem>>, vector<1x1x32x32xf32>
        %223 = vector.shape_cast %222 : vector<1x1x32x32xf32> to vector<32x32xf32>
        %cst_130 = arith.constant dense<0.000000e+00> : vector<16x32xf32>
        %224 = tpu.matmul %221, %223, %cst_130 {dimension_numbers = #tpu.dot_dimension_numbers<[1], [0], [0], [1], [0, 0, 1, 1], [], []>} : vector<16x32xf32>, vector<32x32xf32>, vector<16x32xf32> -> vector<16x32xf32>
        %c0_131 = arith.constant 0 : index
        %c1_132 = arith.constant 1 : index
        %c0_133 = arith.constant 0 : index
        %c0_134 = arith.constant 0 : index
        %225 = vector.load %arg18[%c0_131, %c1_132, %c0_133, %c0_134] : memref<2x2x1x32xf32, #tpu.memory_space<vmem>>, vector<1x1x1x32xf32>
        %226 = vector.shape_cast %225 : vector<1x1x1x32xf32> to vector<1x32xf32>
        %227 = vector.broadcast %226 : vector<1x32xf32> to vector<16x32xf32>
        %228 = arith.addf %224, %227 : vector<16x32xf32>
        %229 = arith.addf %212, %228 : vector<16x32xf32>
        %c0_135 = arith.constant 0 : index
        %c0_136 = arith.constant 0 : index
        %c0_137 = arith.constant 0 : index
        %c0_138 = arith.constant 0 : index
        %230 = vector.load %arg19[%c0_135, %c0_136, %c0_137, %c0_138] : memref<2x2x1x32xf32, #tpu.memory_space<vmem>>, vector<1x1x1x32xf32>
        %231 = vector.shape_cast %230 : vector<1x1x1x32xf32> to vector<1x32xf32>
        %c0_139 = arith.constant 0 : index
        %c1_140 = arith.constant 1 : index
        %c0_141 = arith.constant 0 : index
        %c0_142 = arith.constant 0 : index
        %232 = vector.load %arg19[%c0_139, %c1_140, %c0_141, %c0_142] : memref<2x2x1x32xf32, #tpu.memory_space<vmem>>, vector<1x1x1x32xf32>
        %233 = vector.shape_cast %232 : vector<1x1x1x32xf32> to vector<1x32xf32>
        %cst_143 = arith.constant dense<0.000000e+00> : vector<16xf32>
        %234 = vector.multi_reduction <add>, %229, %cst_143 [1] : vector<16x32xf32> to vector<16xf32>
        %235 = vector.shape_cast %234 : vector<16xf32> to vector<16x1xf32>
        %cst_144 = arith.constant 3.200000e+01 : f32
        %236 = vector.broadcast %cst_144 : f32 to vector<16x1xf32>
        %237 = arith.divf %235, %236 : vector<16x1xf32>
        %238 = vector.broadcast %237 : vector<16x1xf32> to vector<16x32xf32>
        %239 = arith.subf %229, %238 : vector<16x32xf32>
        %240 = vector.broadcast %237 : vector<16x1xf32> to vector<16x32xf32>
        %241 = arith.subf %229, %240 : vector<16x32xf32>
        %242 = arith.mulf %239, %241 : vector<16x32xf32>
        %cst_145 = arith.constant dense<0.000000e+00> : vector<16xf32>
        %243 = vector.multi_reduction <add>, %242, %cst_145 [1] : vector<16x32xf32> to vector<16xf32>
        %244 = vector.shape_cast %243 : vector<16xf32> to vector<16x1xf32>
        %cst_146 = arith.constant 3.200000e+01 : f32
        %245 = vector.broadcast %cst_146 : f32 to vector<16x1xf32>
        %246 = arith.divf %244, %245 : vector<16x1xf32>
        %247 = vector.broadcast %237 : vector<16x1xf32> to vector<16x32xf32>
        %248 = arith.subf %229, %247 : vector<16x32xf32>
        %cst_147 = arith.constant 9.99999974E-6 : f32
        %249 = vector.broadcast %cst_147 : f32 to vector<16x1xf32>
        %250 = arith.addf %246, %249 : vector<16x1xf32>
        %251 = math.rsqrt %250 : vector<16x1xf32>
        %252 = vector.broadcast %251 : vector<16x1xf32> to vector<16x32xf32>
        %253 = arith.mulf %248, %252 : vector<16x32xf32>
        %254 = vector.broadcast %231 : vector<1x32xf32> to vector<16x32xf32>
        %255 = arith.mulf %253, %254 : vector<16x32xf32>
        %256 = vector.broadcast %233 : vector<1x32xf32> to vector<16x32xf32>
        %257 = arith.addf %255, %256 : vector<16x32xf32>
        %c0_148 = arith.constant 0 : index
        %c0_149 = arith.constant 0 : index
        %c0_150 = arith.constant 0 : index
        %258 = vector.load %arg20[%c0_148, %c0_149, %c0_150] : memref<2x32x64xf32, #tpu.memory_space<vmem>>, vector<1x32x64xf32>
        %259 = vector.shape_cast %258 : vector<1x32x64xf32> to vector<32x64xf32>
        %cst_151 = arith.constant dense<0.000000e+00> : vector<16x64xf32>
        %260 = tpu.matmul %257, %259, %cst_151 {dimension_numbers = #tpu.dot_dimension_numbers<[1], [0], [0], [1], [0, 0, 1, 1], [], []>} : vector<16x32xf32>, vector<32x64xf32>, vector<16x64xf32> -> vector<16x64xf32>
        %c0_152 = arith.constant 0 : index
        %c0_153 = arith.constant 0 : index
        %c0_154 = arith.constant 0 : index
        %261 = vector.load %arg21[%c0_152, %c0_153, %c0_154] : memref<2x1x64xf32, #tpu.memory_space<vmem>>, vector<1x1x64xf32>
        %262 = vector.shape_cast %261 : vector<1x1x64xf32> to vector<1x64xf32>
        %263 = vector.broadcast %262 : vector<1x64xf32> to vector<16x64xf32>
        %264 = arith.addf %260, %263 : vector<16x64xf32>
        %265 = vector.extract_strided_slice %264 {offsets = [0, 0], sizes = [16, 32], strides = [1, 1]} : vector<16x64xf32> to vector<16x32xf32>
        %266 = vector.extract_strided_slice %21 {offsets = [0, 0, 0], sizes = [1, 16, 32], strides = [1, 1, 1]} : vector<2x16x32xf32> to vector<1x16x32xf32>
        %267 = vector.shape_cast %266 : vector<1x16x32xf32> to vector<16x32xf32>
        %268 = vector.extract_strided_slice %264 {offsets = [0, 32], sizes = [16, 32], strides = [1, 1]} : vector<16x64xf32> to vector<16x32xf32>
        %269 = arith.mulf %267, %268 : vector<16x32xf32>
        %270 = arith.addf %265, %269 : vector<16x32xf32>
        %c0_155 = arith.constant 0 : index
        %c0_156 = arith.constant 0 : index
        %c0_157 = arith.constant 0 : index
        %271 = vector.load %arg23[%c0_155, %c0_156, %c0_157] : memref<2x16x32xf32, #tpu.memory_space<vmem>>, vector<1x16x32xf32>
        %272 = vector.shape_cast %271 : vector<1x16x32xf32> to vector<16x32xf32>
        %273 = vector.broadcast %12 : vector<16x1xf32> to vector<16x32xf32>
        %274 = arith.mulf %273, %272 : vector<16x32xf32>
        %275 = vector.broadcast %15 : vector<16x1xf32> to vector<16x32xf32>
        %276 = arith.mulf %275, %270 : vector<16x32xf32>
        %277 = arith.addf %274, %276 : vector<16x32xf32>
        %c0_158 = arith.constant 0 : index
        %c0_159 = arith.constant 0 : index
        %c0_160 = arith.constant 0 : index
        %278 = vector.load %arg23[%c0_158, %c0_159, %c0_160] : memref<2x16x32xf32, #tpu.memory_space<vmem>>, vector<1x16x32xf32>
        %279 = vector.shape_cast %278 : vector<1x16x32xf32> to vector<16x32xf32>
        %280 = vector.shape_cast %277 : vector<16x32xf32> to vector<1x16x32xf32>
        tpu.vector_store %arg23[%c0_158, %c0_159, %c0_160], %280 {strides = array<i32>} : memref<2x16x32xf32, #tpu.memory_space<vmem>>, vector<1x16x32xf32>,
      } else {
      }
      %c0_25 = arith.constant 0 : index
      %c0_26 = arith.constant 0 : index
      %c0_27 = arith.constant 0 : index
      %28 = vector.load %arg23[%c0_25, %c0_26, %c0_27] : memref<2x16x32xf32, #tpu.memory_space<vmem>>, vector<1x16x32xf32>
      %29 = vector.shape_cast %28 : vector<1x16x32xf32> to vector<16x32xf32>
      %30 = tpu.concatenate %24, %29 in 1 : vector<16x32xf32>, vector<16x32xf32> -> vector<16x64xf32>
      %cst_28 = arith.constant dense<0.000000e+00> : vector<16x64xf32>
      %31 = tpu.matmul %4, %30, %cst_28 {dimension_numbers = #tpu.dot_dimension_numbers<[1], [0], [0], [1], [0, 0, 1, 1], [], []>} : vector<16x16xf32>, vector<16x64xf32>, vector<16x64xf32> -> vector<16x64xf32>
      %cst_29 = arith.constant dense<0.000000e+00> : vector<16x64xf32>
      %32 = tpu.matmul %5, %30, %cst_29 {dimension_numbers = #tpu.dot_dimension_numbers<[1], [0], [0], [1], [0, 0, 1, 1], [], []>} : vector<16x16xf32>, vector<16x64xf32>, vector<16x64xf32> -> vector<16x64xf32>
      %33 = tpu.concatenate %30, %31, %32 in 1 : vector<16x64xf32>, vector<16x64xf32>, vector<16x64xf32> -> vector<16x192xf32>
      %c0_30 = arith.constant 0 : index
      %c0_31 = arith.constant 0 : index
      %c0_32 = arith.constant 0 : index
      %34 = vector.load %arg10[%c0_30, %c0_31, %c0_32] : memref<2x192x64xf32, #tpu.memory_space<vmem>>, vector<1x192x64xf32>
      %35 = vector.shape_cast %34 : vector<1x192x64xf32> to vector<192x64xf32>
      %cst_33 = arith.constant dense<0.000000e+00> : vector<16x64xf32>
      %36 = tpu.matmul %33, %35, %cst_33 {dimension_numbers = #tpu.dot_dimension_numbers<[1], [0], [0], [1], [0, 0, 1, 1], [], []>} : vector<16x192xf32>, vector<192x64xf32>, vector<16x64xf32> -> vector<16x64xf32>
      %c0_34 = arith.constant 0 : index
      %c0_35 = arith.constant 0 : index
      %c0_36 = arith.constant 0 : index
      %37 = vector.load %arg11[%c0_34, %c0_35, %c0_36] : memref<2x1x64xf32, #tpu.memory_space<vmem>>, vector<1x1x64xf32>
      %38 = vector.shape_cast %37 : vector<1x1x64xf32> to vector<1x64xf32>
      %39 = vector.broadcast %38 : vector<1x64xf32> to vector<16x64xf32>
      %40 = arith.addf %36, %39 : vector<16x64xf32>
      %41 = vector.extract_strided_slice %40 {offsets = [0, 0], sizes = [16, 32], strides = [1, 1]} : vector<16x64xf32> to vector<16x32xf32>
      %42 = arith.negf %41 : vector<16x32xf32>
      %43 = math.exp %42 : vector<16x32xf32>
      %cst_37 = arith.constant 1.000000e+00 : f32
      %44 = vector.broadcast %cst_37 : f32 to vector<16x32xf32>
      %45 = arith.addf %44, %43 : vector<16x32xf32>
      %46 = arith.divf %44, %45 : vector<16x32xf32>
      %47 = vector.extract_strided_slice %40 {offsets = [0, 32], sizes = [16, 32], strides = [1, 1]} : vector<16x64xf32> to vector<16x32xf32>
      %48 = math.tanh %47 : vector<16x32xf32>
      %49 = arith.subf %29, %48 : vector<16x32xf32>
      %50 = arith.mulf %46, %49 : vector<16x32xf32>
      %51 = arith.addf %48, %50 : vector<16x32xf32>
      %c0_38 = arith.constant 0 : index
      %c0_39 = arith.constant 0 : index
      %c0_40 = arith.constant 0 : index
      %52 = vector.load %arg23[%c0_38, %c0_39, %c0_40] : memref<2x16x32xf32, #tpu.memory_space<vmem>>, vector<1x16x32xf32>
      %53 = vector.shape_cast %52 : vector<1x16x32xf32> to vector<16x32xf32>
      %54 = vector.shape_cast %51 : vector<16x32xf32> to vector<1x16x32xf32>
      tpu.vector_store %arg23[%c0_38, %c0_39, %c0_40], %54 {strides = array<i32>} : memref<2x16x32xf32, #tpu.memory_space<vmem>>, vector<1x16x32xf32>,
      %c0_i32_41 = arith.constant 0 : i32
      %55 = arith.cmpi sgt, %arg24, %c0_i32_41 : i32
      %56 = arith.extui %55 : i1 to i32
      %c0_i32_42 = arith.constant 0 : i32
      %57 = arith.cmpi ne, %56, %c0_i32_42 : i32
      scf.if %57 {
        %c1_63 = arith.constant 1 : index
        %c0_64 = arith.constant 0 : index
        %c0_65 = arith.constant 0 : index
        %92 = vector.load %arg23[%c1_63, %c0_64, %c0_65] : memref<2x16x32xf32, #tpu.memory_space<vmem>>, vector<1x16x32xf32>
        %93 = vector.shape_cast %92 : vector<1x16x32xf32> to vector<16x32xf32>
        %c1_66 = arith.constant 1 : index
        %c0_67 = arith.constant 0 : index
        %c0_68 = arith.constant 0 : index
        %94 = vector.load %arg9[%c1_66, %c0_67, %c0_68] : memref<2x16x32xf32, #tpu.memory_space<vmem>>, vector<1x16x32xf32>
        %95 = vector.shape_cast %94 : vector<1x16x32xf32> to vector<16x32xf32>
        %96 = vector.broadcast %9 : vector<16x1xf32> to vector<16x32xf32>
        %97 = arith.mulf %95, %96 : vector<16x32xf32>
        %98 = arith.addf %93, %97 : vector<16x32xf32>
        %c1_69 = arith.constant 1 : index
        %c0_70 = arith.constant 0 : index
        %c0_71 = arith.constant 0 : index
        %99 = vector.load %arg12[%c1_69, %c0_70, %c0_71] : memref<2x32x96xf32, #tpu.memory_space<vmem>>, vector<1x32x96xf32>
        %100 = vector.shape_cast %99 : vector<1x32x96xf32> to vector<32x96xf32>
        %cst_72 = arith.constant dense<0.000000e+00> : vector<16x96xf32>
        %101 = tpu.matmul %98, %100, %cst_72 {dimension_numbers = #tpu.dot_dimension_numbers<[1], [0], [0], [1], [0, 0, 1, 1], [], []>} : vector<16x32xf32>, vector<32x96xf32>, vector<16x96xf32> -> vector<16x96xf32>
        %c1_73 = arith.constant 1 : index
        %c0_74 = arith.constant 0 : index
        %c0_75 = arith.constant 0 : index
        %102 = vector.load %arg13[%c1_73, %c0_74, %c0_75] : memref<2x1x96xf32, #tpu.memory_space<vmem>>, vector<1x1x96xf32>
        %103 = vector.shape_cast %102 : vector<1x1x96xf32> to vector<1x96xf32>
        %104 = vector.broadcast %103 : vector<1x96xf32> to vector<16x96xf32>
        %105 = arith.addf %101, %104 : vector<16x96xf32>
        %106 = vector.extract_strided_slice %105 {offsets = [0, 0], sizes = [8, 16], strides = [1, 1]} : vector<16x96xf32> to vector<8x16xf32>
        %107 = vector.extract_strided_slice %105 {offsets = [0, 32], sizes = [8, 16], strides = [1, 1]} : vector<16x96xf32> to vector<8x16xf32>
        %108 = vector.extract_strided_slice %105 {offsets = [0, 64], sizes = [8, 16], strides = [1, 1]} : vector<16x96xf32> to vector<8x16xf32>
        %cst_76 = arith.constant dense<0.000000e+00> : vector<8x8xf32>
        %109 = tpu.matmul %106, %107, %cst_76 {dimension_numbers = #tpu.dot_dimension_numbers<[1], [1], [0], [0], [0, 0, 1, 0], [], []>} : vector<8x16xf32>, vector<8x16xf32>, vector<8x8xf32> -> vector<8x8xf32>
        %cst_77 = arith.constant 2.500000e-01 : f32
        %110 = vector.broadcast %cst_77 : f32 to vector<8x8xf32>
        %111 = arith.mulf %109, %110 : vector<8x8xf32>
        %cst_78 = arith.constant dense<0xFF800000> : vector<8xf32>
        %112 = vector.multi_reduction <maximumf>, %111, %cst_78 [1] : vector<8x8xf32> to vector<8xf32>
        %113 = vector.shape_cast %112 : vector<8xf32> to vector<8x1xf32>
        %114 = vector.broadcast %113 : vector<8x1xf32> to vector<8x8xf32>
        %115 = arith.subf %111, %114 : vector<8x8xf32>
        %116 = math.exp %115 : vector<8x8xf32>
        %cst_79 = arith.constant dense<0.000000e+00> : vector<8xf32>
        %117 = vector.multi_reduction <add>, %116, %cst_79 [1] : vector<8x8xf32> to vector<8xf32>
        %118 = vector.shape_cast %117 : vector<8xf32> to vector<8x1xf32>
        %119 = tpu.reciprocal %118 {approx = true} : vector<8x1xf32> -> vector<8x1xf32>
        %120 = vector.broadcast %119 : vector<8x1xf32> to vector<8x8xf32>
        %121 = arith.mulf %116, %120 : vector<8x8xf32>
        %cst_80 = arith.constant dense<0.000000e+00> : vector<8x16xf32>
        %122 = tpu.matmul %121, %108, %cst_80 {dimension_numbers = #tpu.dot_dimension_numbers<[1], [0], [0], [1], [0, 0, 1, 1], [], []>} : vector<8x8xf32>, vector<8x16xf32>, vector<8x16xf32> -> vector<8x16xf32>
        %123 = vector.extract_strided_slice %105 {offsets = [0, 16], sizes = [8, 16], strides = [1, 1]} : vector<16x96xf32> to vector<8x16xf32>
        %124 = vector.extract_strided_slice %105 {offsets = [0, 48], sizes = [8, 16], strides = [1, 1]} : vector<16x96xf32> to vector<8x16xf32>
        %125 = vector.extract_strided_slice %105 {offsets = [0, 80], sizes = [8, 16], strides = [1, 1]} : vector<16x96xf32> to vector<8x16xf32>
        %cst_81 = arith.constant dense<0.000000e+00> : vector<8x8xf32>
        %126 = tpu.matmul %123, %124, %cst_81 {dimension_numbers = #tpu.dot_dimension_numbers<[1], [1], [0], [0], [0, 0, 1, 0], [], []>} : vector<8x16xf32>, vector<8x16xf32>, vector<8x8xf32> -> vector<8x8xf32>
        %cst_82 = arith.constant 2.500000e-01 : f32
        %127 = vector.broadcast %cst_82 : f32 to vector<8x8xf32>
        %128 = arith.mulf %126, %127 : vector<8x8xf32>
        %cst_83 = arith.constant dense<0xFF800000> : vector<8xf32>
        %129 = vector.multi_reduction <maximumf>, %128, %cst_83 [1] : vector<8x8xf32> to vector<8xf32>
        %130 = vector.shape_cast %129 : vector<8xf32> to vector<8x1xf32>
        %131 = vector.broadcast %130 : vector<8x1xf32> to vector<8x8xf32>
        %132 = arith.subf %128, %131 : vector<8x8xf32>
        %133 = math.exp %132 : vector<8x8xf32>
        %cst_84 = arith.constant dense<0.000000e+00> : vector<8xf32>
        %134 = vector.multi_reduction <add>, %133, %cst_84 [1] : vector<8x8xf32> to vector<8xf32>
        %135 = vector.shape_cast %134 : vector<8xf32> to vector<8x1xf32>
        %136 = tpu.reciprocal %135 {approx = true} : vector<8x1xf32> -> vector<8x1xf32>
        %137 = vector.broadcast %136 : vector<8x1xf32> to vector<8x8xf32>
        %138 = arith.mulf %133, %137 : vector<8x8xf32>
        %cst_85 = arith.constant dense<0.000000e+00> : vector<8x16xf32>
        %139 = tpu.matmul %138, %125, %cst_85 {dimension_numbers = #tpu.dot_dimension_numbers<[1], [0], [0], [1], [0, 0, 1, 1], [], []>} : vector<8x8xf32>, vector<8x16xf32>, vector<8x16xf32> -> vector<8x16xf32>
        %140 = tpu.concatenate %122, %139 in 1 : vector<8x16xf32>, vector<8x16xf32> -> vector<8x32xf32>
        %141 = vector.extract_strided_slice %105 {offsets = [8, 0], sizes = [8, 16], strides = [1, 1]} : vector<16x96xf32> to vector<8x16xf32>
        %142 = vector.extract_strided_slice %105 {offsets = [8, 32], sizes = [8, 16], strides = [1, 1]} : vector<16x96xf32> to vector<8x16xf32>
        %143 = vector.extract_strided_slice %105 {offsets = [8, 64], sizes = [8, 16], strides = [1, 1]} : vector<16x96xf32> to vector<8x16xf32>
        %cst_86 = arith.constant dense<0.000000e+00> : vector<8x8xf32>
        %144 = tpu.matmul %141, %142, %cst_86 {dimension_numbers = #tpu.dot_dimension_numbers<[1], [1], [0], [0], [0, 0, 1, 0], [], []>} : vector<8x16xf32>, vector<8x16xf32>, vector<8x8xf32> -> vector<8x8xf32>
        %cst_87 = arith.constant 2.500000e-01 : f32
        %145 = vector.broadcast %cst_87 : f32 to vector<8x8xf32>
        %146 = arith.mulf %144, %145 : vector<8x8xf32>
        %cst_88 = arith.constant dense<0xFF800000> : vector<8xf32>
        %147 = vector.multi_reduction <maximumf>, %146, %cst_88 [1] : vector<8x8xf32> to vector<8xf32>
        %148 = vector.shape_cast %147 : vector<8xf32> to vector<8x1xf32>
        %149 = vector.broadcast %148 : vector<8x1xf32> to vector<8x8xf32>
        %150 = arith.subf %146, %149 : vector<8x8xf32>
        %151 = math.exp %150 : vector<8x8xf32>
        %cst_89 = arith.constant dense<0.000000e+00> : vector<8xf32>
        %152 = vector.multi_reduction <add>, %151, %cst_89 [1] : vector<8x8xf32> to vector<8xf32>
        %153 = vector.shape_cast %152 : vector<8xf32> to vector<8x1xf32>
        %154 = tpu.reciprocal %153 {approx = true} : vector<8x1xf32> -> vector<8x1xf32>
        %155 = vector.broadcast %154 : vector<8x1xf32> to vector<8x8xf32>
        %156 = arith.mulf %151, %155 : vector<8x8xf32>
        %cst_90 = arith.constant dense<0.000000e+00> : vector<8x16xf32>
        %157 = tpu.matmul %156, %143, %cst_90 {dimension_numbers = #tpu.dot_dimension_numbers<[1], [0], [0], [1], [0, 0, 1, 1], [], []>} : vector<8x8xf32>, vector<8x16xf32>, vector<8x16xf32> -> vector<8x16xf32>
        %158 = vector.extract_strided_slice %105 {offsets = [8, 16], sizes = [8, 16], strides = [1, 1]} : vector<16x96xf32> to vector<8x16xf32>
        %159 = vector.extract_strided_slice %105 {offsets = [8, 48], sizes = [8, 16], strides = [1, 1]} : vector<16x96xf32> to vector<8x16xf32>
        %160 = vector.extract_strided_slice %105 {offsets = [8, 80], sizes = [8, 16], strides = [1, 1]} : vector<16x96xf32> to vector<8x16xf32>
        %cst_91 = arith.constant dense<0.000000e+00> : vector<8x8xf32>
        %161 = tpu.matmul %158, %159, %cst_91 {dimension_numbers = #tpu.dot_dimension_numbers<[1], [1], [0], [0], [0, 0, 1, 0], [], []>} : vector<8x16xf32>, vector<8x16xf32>, vector<8x8xf32> -> vector<8x8xf32>
        %cst_92 = arith.constant 2.500000e-01 : f32
        %162 = vector.broadcast %cst_92 : f32 to vector<8x8xf32>
        %163 = arith.mulf %161, %162 : vector<8x8xf32>
        %cst_93 = arith.constant dense<0xFF800000> : vector<8xf32>
        %164 = vector.multi_reduction <maximumf>, %163, %cst_93 [1] : vector<8x8xf32> to vector<8xf32>
        %165 = vector.shape_cast %164 : vector<8xf32> to vector<8x1xf32>
        %166 = vector.broadcast %165 : vector<8x1xf32> to vector<8x8xf32>
        %167 = arith.subf %163, %166 : vector<8x8xf32>
        %168 = math.exp %167 : vector<8x8xf32>
        %cst_94 = arith.constant dense<0.000000e+00> : vector<8xf32>
        %169 = vector.multi_reduction <add>, %168, %cst_94 [1] : vector<8x8xf32> to vector<8xf32>
        %170 = vector.shape_cast %169 : vector<8xf32> to vector<8x1xf32>
        %171 = tpu.reciprocal %170 {approx = true} : vector<8x1xf32> -> vector<8x1xf32>
        %172 = vector.broadcast %171 : vector<8x1xf32> to vector<8x8xf32>
        %173 = arith.mulf %168, %172 : vector<8x8xf32>
        %cst_95 = arith.constant dense<0.000000e+00> : vector<8x16xf32>
        %174 = tpu.matmul %173, %160, %cst_95 {dimension_numbers = #tpu.dot_dimension_numbers<[1], [0], [0], [1], [0, 0, 1, 1], [], []>} : vector<8x8xf32>, vector<8x16xf32>, vector<8x16xf32> -> vector<8x16xf32>
        %175 = tpu.concatenate %157, %174 in 1 : vector<8x16xf32>, vector<8x16xf32> -> vector<8x32xf32>
        %176 = tpu.concatenate %140, %175 in 0 : vector<8x32xf32>, vector<8x32xf32> -> vector<16x32xf32>
        %c1_96 = arith.constant 1 : index
        %c0_97 = arith.constant 0 : index
        %c0_98 = arith.constant 0 : index
        %177 = vector.load %arg14[%c1_96, %c0_97, %c0_98] : memref<2x32x32xf32, #tpu.memory_space<vmem>>, vector<1x32x32xf32>
        %178 = vector.shape_cast %177 : vector<1x32x32xf32> to vector<32x32xf32>
        %cst_99 = arith.constant dense<0.000000e+00> : vector<16x32xf32>
        %179 = tpu.matmul %176, %178, %cst_99 {dimension_numbers = #tpu.dot_dimension_numbers<[1], [0], [0], [1], [0, 0, 1, 1], [], []>} : vector<16x32xf32>, vector<32x32xf32>, vector<16x32xf32> -> vector<16x32xf32>
        %c1_100 = arith.constant 1 : index
        %c0_101 = arith.constant 0 : index
        %c0_102 = arith.constant 0 : index
        %180 = vector.load %arg15[%c1_100, %c0_101, %c0_102] : memref<2x1x32xf32, #tpu.memory_space<vmem>>, vector<1x1x32xf32>
        %181 = vector.shape_cast %180 : vector<1x1x32xf32> to vector<1x32xf32>
        %182 = vector.broadcast %181 : vector<1x32xf32> to vector<16x32xf32>
        %183 = arith.addf %179, %182 : vector<16x32xf32>
        %184 = arith.addf %98, %183 : vector<16x32xf32>
        %c1_103 = arith.constant 1 : index
        %c0_104 = arith.constant 0 : index
        %c0_105 = arith.constant 0 : index
        %c0_106 = arith.constant 0 : index
        %185 = vector.load %arg16[%c1_103, %c0_104, %c0_105, %c0_106] : memref<2x2x1x32xf32, #tpu.memory_space<vmem>>, vector<1x1x1x32xf32>
        %186 = vector.shape_cast %185 : vector<1x1x1x32xf32> to vector<1x32xf32>
        %c1_107 = arith.constant 1 : index
        %c1_108 = arith.constant 1 : index
        %c0_109 = arith.constant 0 : index
        %c0_110 = arith.constant 0 : index
        %187 = vector.load %arg16[%c1_107, %c1_108, %c0_109, %c0_110] : memref<2x2x1x32xf32, #tpu.memory_space<vmem>>, vector<1x1x1x32xf32>
        %188 = vector.shape_cast %187 : vector<1x1x1x32xf32> to vector<1x32xf32>
        %cst_111 = arith.constant dense<0.000000e+00> : vector<16xf32>
        %189 = vector.multi_reduction <add>, %184, %cst_111 [1] : vector<16x32xf32> to vector<16xf32>
        %190 = vector.shape_cast %189 : vector<16xf32> to vector<16x1xf32>
        %cst_112 = arith.constant 3.200000e+01 : f32
        %191 = vector.broadcast %cst_112 : f32 to vector<16x1xf32>
        %192 = arith.divf %190, %191 : vector<16x1xf32>
        %193 = vector.broadcast %192 : vector<16x1xf32> to vector<16x32xf32>
        %194 = arith.subf %184, %193 : vector<16x32xf32>
        %195 = vector.broadcast %192 : vector<16x1xf32> to vector<16x32xf32>
        %196 = arith.subf %184, %195 : vector<16x32xf32>
        %197 = arith.mulf %194, %196 : vector<16x32xf32>
        %cst_113 = arith.constant dense<0.000000e+00> : vector<16xf32>
        %198 = vector.multi_reduction <add>, %197, %cst_113 [1] : vector<16x32xf32> to vector<16xf32>
        %199 = vector.shape_cast %198 : vector<16xf32> to vector<16x1xf32>
        %cst_114 = arith.constant 3.200000e+01 : f32
        %200 = vector.broadcast %cst_114 : f32 to vector<16x1xf32>
        %201 = arith.divf %199, %200 : vector<16x1xf32>
        %202 = vector.broadcast %192 : vector<16x1xf32> to vector<16x32xf32>
        %203 = arith.subf %184, %202 : vector<16x32xf32>
        %cst_115 = arith.constant 9.99999974E-6 : f32
        %204 = vector.broadcast %cst_115 : f32 to vector<16x1xf32>
        %205 = arith.addf %201, %204 : vector<16x1xf32>
        %206 = math.rsqrt %205 : vector<16x1xf32>
        %207 = vector.broadcast %206 : vector<16x1xf32> to vector<16x32xf32>
        %208 = arith.mulf %203, %207 : vector<16x32xf32>
        %209 = vector.broadcast %186 : vector<1x32xf32> to vector<16x32xf32>
        %210 = arith.mulf %208, %209 : vector<16x32xf32>
        %211 = vector.broadcast %188 : vector<1x32xf32> to vector<16x32xf32>
        %212 = arith.addf %210, %211 : vector<16x32xf32>
        %c1_116 = arith.constant 1 : index
        %c0_117 = arith.constant 0 : index
        %c0_118 = arith.constant 0 : index
        %c0_119 = arith.constant 0 : index
        %213 = vector.load %arg17[%c1_116, %c0_117, %c0_118, %c0_119] : memref<2x2x32x32xf32, #tpu.memory_space<vmem>>, vector<1x1x32x32xf32>
        %214 = vector.shape_cast %213 : vector<1x1x32x32xf32> to vector<32x32xf32>
        %cst_120 = arith.constant dense<0.000000e+00> : vector<16x32xf32>
        %215 = tpu.matmul %212, %214, %cst_120 {dimension_numbers = #tpu.dot_dimension_numbers<[1], [0], [0], [1], [0, 0, 1, 1], [], []>} : vector<16x32xf32>, vector<32x32xf32>, vector<16x32xf32> -> vector<16x32xf32>
        %c1_121 = arith.constant 1 : index
        %c0_122 = arith.constant 0 : index
        %c0_123 = arith.constant 0 : index
        %c0_124 = arith.constant 0 : index
        %216 = vector.load %arg18[%c1_121, %c0_122, %c0_123, %c0_124] : memref<2x2x1x32xf32, #tpu.memory_space<vmem>>, vector<1x1x1x32xf32>
        %217 = vector.shape_cast %216 : vector<1x1x1x32xf32> to vector<1x32xf32>
        %218 = vector.broadcast %217 : vector<1x32xf32> to vector<16x32xf32>
        %219 = arith.addf %215, %218 : vector<16x32xf32>
        %cst_125 = arith.constant 0.000000e+00 : f32
        %220 = vector.broadcast %cst_125 : f32 to vector<16x32xf32>
        %221 = arith.maximumf %219, %220 : vector<16x32xf32>
        %c1_126 = arith.constant 1 : index
        %c1_127 = arith.constant 1 : index
        %c0_128 = arith.constant 0 : index
        %c0_129 = arith.constant 0 : index
        %222 = vector.load %arg17[%c1_126, %c1_127, %c0_128, %c0_129] : memref<2x2x32x32xf32, #tpu.memory_space<vmem>>, vector<1x1x32x32xf32>
        %223 = vector.shape_cast %222 : vector<1x1x32x32xf32> to vector<32x32xf32>
        %cst_130 = arith.constant dense<0.000000e+00> : vector<16x32xf32>
        %224 = tpu.matmul %221, %223, %cst_130 {dimension_numbers = #tpu.dot_dimension_numbers<[1], [0], [0], [1], [0, 0, 1, 1], [], []>} : vector<16x32xf32>, vector<32x32xf32>, vector<16x32xf32> -> vector<16x32xf32>
        %c1_131 = arith.constant 1 : index
        %c1_132 = arith.constant 1 : index
        %c0_133 = arith.constant 0 : index
        %c0_134 = arith.constant 0 : index
        %225 = vector.load %arg18[%c1_131, %c1_132, %c0_133, %c0_134] : memref<2x2x1x32xf32, #tpu.memory_space<vmem>>, vector<1x1x1x32xf32>
        %226 = vector.shape_cast %225 : vector<1x1x1x32xf32> to vector<1x32xf32>
        %227 = vector.broadcast %226 : vector<1x32xf32> to vector<16x32xf32>
        %228 = arith.addf %224, %227 : vector<16x32xf32>
        %229 = arith.addf %212, %228 : vector<16x32xf32>
        %c1_135 = arith.constant 1 : index
        %c0_136 = arith.constant 0 : index
        %c0_137 = arith.constant 0 : index
        %c0_138 = arith.constant 0 : index
        %230 = vector.load %arg19[%c1_135, %c0_136, %c0_137, %c0_138] : memref<2x2x1x32xf32, #tpu.memory_space<vmem>>, vector<1x1x1x32xf32>
        %231 = vector.shape_cast %230 : vector<1x1x1x32xf32> to vector<1x32xf32>
        %c1_139 = arith.constant 1 : index
        %c1_140 = arith.constant 1 : index
        %c0_141 = arith.constant 0 : index
        %c0_142 = arith.constant 0 : index
        %232 = vector.load %arg19[%c1_139, %c1_140, %c0_141, %c0_142] : memref<2x2x1x32xf32, #tpu.memory_space<vmem>>, vector<1x1x1x32xf32>
        %233 = vector.shape_cast %232 : vector<1x1x1x32xf32> to vector<1x32xf32>
        %cst_143 = arith.constant dense<0.000000e+00> : vector<16xf32>
        %234 = vector.multi_reduction <add>, %229, %cst_143 [1] : vector<16x32xf32> to vector<16xf32>
        %235 = vector.shape_cast %234 : vector<16xf32> to vector<16x1xf32>
        %cst_144 = arith.constant 3.200000e+01 : f32
        %236 = vector.broadcast %cst_144 : f32 to vector<16x1xf32>
        %237 = arith.divf %235, %236 : vector<16x1xf32>
        %238 = vector.broadcast %237 : vector<16x1xf32> to vector<16x32xf32>
        %239 = arith.subf %229, %238 : vector<16x32xf32>
        %240 = vector.broadcast %237 : vector<16x1xf32> to vector<16x32xf32>
        %241 = arith.subf %229, %240 : vector<16x32xf32>
        %242 = arith.mulf %239, %241 : vector<16x32xf32>
        %cst_145 = arith.constant dense<0.000000e+00> : vector<16xf32>
        %243 = vector.multi_reduction <add>, %242, %cst_145 [1] : vector<16x32xf32> to vector<16xf32>
        %244 = vector.shape_cast %243 : vector<16xf32> to vector<16x1xf32>
        %cst_146 = arith.constant 3.200000e+01 : f32
        %245 = vector.broadcast %cst_146 : f32 to vector<16x1xf32>
        %246 = arith.divf %244, %245 : vector<16x1xf32>
        %247 = vector.broadcast %237 : vector<16x1xf32> to vector<16x32xf32>
        %248 = arith.subf %229, %247 : vector<16x32xf32>
        %cst_147 = arith.constant 9.99999974E-6 : f32
        %249 = vector.broadcast %cst_147 : f32 to vector<16x1xf32>
        %250 = arith.addf %246, %249 : vector<16x1xf32>
        %251 = math.rsqrt %250 : vector<16x1xf32>
        %252 = vector.broadcast %251 : vector<16x1xf32> to vector<16x32xf32>
        %253 = arith.mulf %248, %252 : vector<16x32xf32>
        %254 = vector.broadcast %231 : vector<1x32xf32> to vector<16x32xf32>
        %255 = arith.mulf %253, %254 : vector<16x32xf32>
        %256 = vector.broadcast %233 : vector<1x32xf32> to vector<16x32xf32>
        %257 = arith.addf %255, %256 : vector<16x32xf32>
        %c1_148 = arith.constant 1 : index
        %c0_149 = arith.constant 0 : index
        %c0_150 = arith.constant 0 : index
        %258 = vector.load %arg20[%c1_148, %c0_149, %c0_150] : memref<2x32x64xf32, #tpu.memory_space<vmem>>, vector<1x32x64xf32>
        %259 = vector.shape_cast %258 : vector<1x32x64xf32> to vector<32x64xf32>
        %cst_151 = arith.constant dense<0.000000e+00> : vector<16x64xf32>
        %260 = tpu.matmul %257, %259, %cst_151 {dimension_numbers = #tpu.dot_dimension_numbers<[1], [0], [0], [1], [0, 0, 1, 1], [], []>} : vector<16x32xf32>, vector<32x64xf32>, vector<16x64xf32> -> vector<16x64xf32>
        %c1_152 = arith.constant 1 : index
        %c0_153 = arith.constant 0 : index
        %c0_154 = arith.constant 0 : index
        %261 = vector.load %arg21[%c1_152, %c0_153, %c0_154] : memref<2x1x64xf32, #tpu.memory_space<vmem>>, vector<1x1x64xf32>
        %262 = vector.shape_cast %261 : vector<1x1x64xf32> to vector<1x64xf32>
        %263 = vector.broadcast %262 : vector<1x64xf32> to vector<16x64xf32>
        %264 = arith.addf %260, %263 : vector<16x64xf32>
        %265 = vector.extract_strided_slice %264 {offsets = [0, 0], sizes = [16, 32], strides = [1, 1]} : vector<16x64xf32> to vector<16x32xf32>
        %266 = vector.extract_strided_slice %21 {offsets = [1, 0, 0], sizes = [1, 16, 32], strides = [1, 1, 1]} : vector<2x16x32xf32> to vector<1x16x32xf32>
        %267 = vector.shape_cast %266 : vector<1x16x32xf32> to vector<16x32xf32>
        %268 = vector.extract_strided_slice %264 {offsets = [0, 32], sizes = [16, 32], strides = [1, 1]} : vector<16x64xf32> to vector<16x32xf32>
        %269 = arith.mulf %267, %268 : vector<16x32xf32>
        %270 = arith.addf %265, %269 : vector<16x32xf32>
        %c1_155 = arith.constant 1 : index
        %c0_156 = arith.constant 0 : index
        %c0_157 = arith.constant 0 : index
        %271 = vector.load %arg23[%c1_155, %c0_156, %c0_157] : memref<2x16x32xf32, #tpu.memory_space<vmem>>, vector<1x16x32xf32>
        %272 = vector.shape_cast %271 : vector<1x16x32xf32> to vector<16x32xf32>
        %273 = vector.broadcast %12 : vector<16x1xf32> to vector<16x32xf32>
        %274 = arith.mulf %273, %272 : vector<16x32xf32>
        %275 = vector.broadcast %15 : vector<16x1xf32> to vector<16x32xf32>
        %276 = arith.mulf %275, %270 : vector<16x32xf32>
        %277 = arith.addf %274, %276 : vector<16x32xf32>
        %c1_158 = arith.constant 1 : index
        %c0_159 = arith.constant 0 : index
        %c0_160 = arith.constant 0 : index
        %278 = vector.load %arg23[%c1_158, %c0_159, %c0_160] : memref<2x16x32xf32, #tpu.memory_space<vmem>>, vector<1x16x32xf32>
        %279 = vector.shape_cast %278 : vector<1x16x32xf32> to vector<16x32xf32>
        %280 = vector.shape_cast %277 : vector<16x32xf32> to vector<1x16x32xf32>
        tpu.vector_store %arg23[%c1_158, %c0_159, %c0_160], %280 {strides = array<i32>} : memref<2x16x32xf32, #tpu.memory_space<vmem>>, vector<1x16x32xf32>,
      } else {
      }
      %c1 = arith.constant 1 : index
      %c0_43 = arith.constant 0 : index
      %c0_44 = arith.constant 0 : index
      %58 = vector.load %arg23[%c1, %c0_43, %c0_44] : memref<2x16x32xf32, #tpu.memory_space<vmem>>, vector<1x16x32xf32>
      %59 = vector.shape_cast %58 : vector<1x16x32xf32> to vector<16x32xf32>
      %60 = tpu.concatenate %51, %59 in 1 : vector<16x32xf32>, vector<16x32xf32> -> vector<16x64xf32>
      %cst_45 = arith.constant dense<0.000000e+00> : vector<16x64xf32>
      %61 = tpu.matmul %4, %60, %cst_45 {dimension_numbers = #tpu.dot_dimension_numbers<[1], [0], [0], [1], [0, 0, 1, 1], [], []>} : vector<16x16xf32>, vector<16x64xf32>, vector<16x64xf32> -> vector<16x64xf32>
      %cst_46 = arith.constant dense<0.000000e+00> : vector<16x64xf32>
      %62 = tpu.matmul %5, %60, %cst_46 {dimension_numbers = #tpu.dot_dimension_numbers<[1], [0], [0], [1], [0, 0, 1, 1], [], []>} : vector<16x16xf32>, vector<16x64xf32>, vector<16x64xf32> -> vector<16x64xf32>
      %63 = tpu.concatenate %60, %61, %62 in 1 : vector<16x64xf32>, vector<16x64xf32>, vector<16x64xf32> -> vector<16x192xf32>
      %c1_47 = arith.constant 1 : index
      %c0_48 = arith.constant 0 : index
      %c0_49 = arith.constant 0 : index
      %64 = vector.load %arg10[%c1_47, %c0_48, %c0_49] : memref<2x192x64xf32, #tpu.memory_space<vmem>>, vector<1x192x64xf32>
      %65 = vector.shape_cast %64 : vector<1x192x64xf32> to vector<192x64xf32>
      %cst_50 = arith.constant dense<0.000000e+00> : vector<16x64xf32>
      %66 = tpu.matmul %63, %65, %cst_50 {dimension_numbers = #tpu.dot_dimension_numbers<[1], [0], [0], [1], [0, 0, 1, 1], [], []>} : vector<16x192xf32>, vector<192x64xf32>, vector<16x64xf32> -> vector<16x64xf32>
      %c1_51 = arith.constant 1 : index
      %c0_52 = arith.constant 0 : index
      %c0_53 = arith.constant 0 : index
      %67 = vector.load %arg11[%c1_51, %c0_52, %c0_53] : memref<2x1x64xf32, #tpu.memory_space<vmem>>, vector<1x1x64xf32>
      %68 = vector.shape_cast %67 : vector<1x1x64xf32> to vector<1x64xf32>
      %69 = vector.broadcast %68 : vector<1x64xf32> to vector<16x64xf32>
      %70 = arith.addf %66, %69 : vector<16x64xf32>
      %71 = vector.extract_strided_slice %70 {offsets = [0, 0], sizes = [16, 32], strides = [1, 1]} : vector<16x64xf32> to vector<16x32xf32>
      %72 = arith.negf %71 : vector<16x32xf32>
      %73 = math.exp %72 : vector<16x32xf32>
      %cst_54 = arith.constant 1.000000e+00 : f32
      %74 = vector.broadcast %cst_54 : f32 to vector<16x32xf32>
      %75 = arith.addf %74, %73 : vector<16x32xf32>
      %76 = arith.divf %74, %75 : vector<16x32xf32>
      %77 = vector.extract_strided_slice %70 {offsets = [0, 32], sizes = [16, 32], strides = [1, 1]} : vector<16x64xf32> to vector<16x32xf32>
      %78 = math.tanh %77 : vector<16x32xf32>
      %79 = arith.subf %59, %78 : vector<16x32xf32>
      %80 = arith.mulf %76, %79 : vector<16x32xf32>
      %81 = arith.addf %78, %80 : vector<16x32xf32>
      %c1_55 = arith.constant 1 : index
      %c0_56 = arith.constant 0 : index
      %c0_57 = arith.constant 0 : index
      %82 = vector.load %arg23[%c1_55, %c0_56, %c0_57] : memref<2x16x32xf32, #tpu.memory_space<vmem>>, vector<1x16x32xf32>
      %83 = vector.shape_cast %82 : vector<1x16x32xf32> to vector<16x32xf32>
      %84 = vector.shape_cast %81 : vector<16x32xf32> to vector<1x16x32xf32>
      tpu.vector_store %arg23[%c1_55, %c0_56, %c0_57], %84 {strides = array<i32>} : memref<2x16x32xf32, #tpu.memory_space<vmem>>, vector<1x16x32xf32>,
      %cst_58 = arith.constant 5.000000e-01 : f32
      %85 = vector.broadcast %cst_58 : f32 to vector<16x1xf32>
      %86 = arith.cmpf ogt, %18, %85 : vector<16x1xf32>
      %c0_59 = arith.constant 0 : index
      %c0_60 = arith.constant 0 : index
      %87 = vector.load %arg22[%c0_59, %c0_60] : memref<16x32xf32, #tpu.memory_space<vmem>>, vector<16x32xf32>
      %88 = vector.shape_cast %86 : vector<16x1xi1> to vector<16x1xi1>
      %89 = vector.broadcast %88 : vector<16x1xi1> to vector<16x32xi1>
      %90 = arith.select %89, %81, %87 : vector<16x32xi1>, vector<16x32xf32>
      %c0_61 = arith.constant 0 : index
      %c0_62 = arith.constant 0 : index
      %91 = vector.load %arg22[%c0_61, %c0_62] : memref<16x32xf32, #tpu.memory_space<vmem>>, vector<16x32xf32>
      tpu.vector_store %arg22[%c0_61, %c0_62], %90 {strides = array<i32>} : memref<16x32xf32, #tpu.memory_space<vmem>>, vector<16x32xf32>,
    }
    %c6_i32_9 = arith.constant 6 : i32
    return
  }
  func.func @transform_0(%arg0: i32) -> (i32, i32, i32) {
    %c0_i32 = arith.constant 0 : i32
    %c0_i32_0 = arith.constant 0 : i32
    %c0_i32_1 = arith.constant 0 : i32
    %c0_i32_2 = arith.constant 0 : i32
    return %c0_i32, %c0_i32_0, %c0_i32_1 : i32, i32, i32
  }
  func.func @transform_1(%arg0: i32) -> (i32, i32, i32) {
    %c0_i32 = arith.constant 0 : i32
    %c0_i32_0 = arith.constant 0 : i32
    %c0_i32_1 = arith.constant 0 : i32
    %c0_i32_2 = arith.constant 0 : i32
    return %c0_i32, %c0_i32_0, %c0_i32_1 : i32, i32, i32
  }
  func.func @transform_2(%arg0: i32) -> (i32, i32, i32) {
    %c0_i32 = arith.constant 0 : i32
    %c0_i32_0 = arith.constant 0 : i32
    %c0_i32_1 = arith.constant 0 : i32
    %c0_i32_2 = arith.constant 0 : i32
    return %c0_i32, %c0_i32_0, %c0_i32_1 : i32, i32, i32
  }
  func.func @transform_3(%arg0: i32) -> (i32, i32, i32) {
    %c0_i32 = arith.constant 0 : i32
    %c0_i32_0 = arith.constant 0 : i32
    %c0_i32_1 = arith.constant 0 : i32
    %c0_i32_2 = arith.constant 0 : i32
    return %c0_i32, %c0_i32_0, %c0_i32_1 : i32, i32, i32
  }
  func.func @transform_4(%arg0: i32) -> (i32, i32, i32) {
    %c0_i32 = arith.constant 0 : i32
    %c0_i32_0 = arith.constant 0 : i32
    %c0_i32_1 = arith.constant 0 : i32
    %c0_i32_2 = arith.constant 0 : i32
    return %c0_i32, %c0_i32_0, %c0_i32_1 : i32, i32, i32
  }
  func.func @transform_5(%arg0: i32) -> (i32, i32, i32, i32) {
    %c0_i32 = arith.constant 0 : i32
    %c0_i32_0 = arith.constant 0 : i32
    %c0_i32_1 = arith.constant 0 : i32
    %c0_i32_2 = arith.constant 0 : i32
    %c0_i32_3 = arith.constant 0 : i32
    return %c0_i32, %c0_i32_0, %c0_i32_1, %c0_i32_2 : i32, i32, i32, i32
  }
  func.func @transform_6(%arg0: i32) -> (i32, i32) {
    %c0_i32 = arith.constant 0 : i32
    %c0_i32_0 = arith.constant 0 : i32
    %c0_i32_1 = arith.constant 0 : i32
    return %c0_i32, %c0_i32_0 : i32, i32
  }
  func.func @transform_7(%arg0: i32) -> (i32, i32) {
    %c0_i32 = arith.constant 0 : i32
    %c0_i32_0 = arith.constant 0 : i32
    %c0_i32_1 = arith.constant 0 : i32
    return %c0_i32, %c0_i32_0 : i32, i32
  }
  func.func @transform_8(%arg0: i32) -> (i32, i32, i32) {
    %c0_i32 = arith.constant 0 : i32
    %c0_i32_0 = arith.constant 0 : i32
    %c0_i32_1 = arith.constant 0 : i32
    %c0_i32_2 = arith.constant 0 : i32
    return %c0_i32, %c0_i32_0, %c0_i32_1 : i32, i32, i32
  }
  func.func @transform_9(%arg0: i32) -> (i32, i32, i32) {
    %c0_i32 = arith.constant 0 : i32
    %c0_i32_0 = arith.constant 0 : i32
    %c0_i32_1 = arith.constant 0 : i32
    %c0_i32_2 = arith.constant 0 : i32
    return %c0_i32, %c0_i32_0, %c0_i32_1 : i32, i32, i32
  }
  func.func @transform_10(%arg0: i32) -> (i32, i32, i32) {
    %c0_i32 = arith.constant 0 : i32
    %c0_i32_0 = arith.constant 0 : i32
    %c0_i32_1 = arith.constant 0 : i32
    %c0_i32_2 = arith.constant 0 : i32
    return %c0_i32, %c0_i32_0, %c0_i32_1 : i32, i32, i32
  }
  func.func @transform_11(%arg0: i32) -> (i32, i32, i32) {
    %c0_i32 = arith.constant 0 : i32
    %c0_i32_0 = arith.constant 0 : i32
    %c0_i32_1 = arith.constant 0 : i32
    %c0_i32_2 = arith.constant 0 : i32
    return %c0_i32, %c0_i32_0, %c0_i32_1 : i32, i32, i32
  }
  func.func @transform_12(%arg0: i32) -> (i32, i32, i32) {
    %c0_i32 = arith.constant 0 : i32
    %c0_i32_0 = arith.constant 0 : i32
    %c0_i32_1 = arith.constant 0 : i32
    %c0_i32_2 = arith.constant 0 : i32
    return %c0_i32, %c0_i32_0, %c0_i32_1 : i32, i32, i32
  }
  func.func @transform_13(%arg0: i32) -> (i32, i32, i32) {
    %c0_i32 = arith.constant 0 : i32
    %c0_i32_0 = arith.constant 0 : i32
    %c0_i32_1 = arith.constant 0 : i32
    %c0_i32_2 = arith.constant 0 : i32
    return %c0_i32, %c0_i32_0, %c0_i32_1 : i32, i32, i32
  }
  func.func @transform_14(%arg0: i32) -> (i32, i32, i32) {
    %c0_i32 = arith.constant 0 : i32
    %c0_i32_0 = arith.constant 0 : i32
    %c0_i32_1 = arith.constant 0 : i32
    %c0_i32_2 = arith.constant 0 : i32
    return %c0_i32, %c0_i32_0, %c0_i32_1 : i32, i32, i32
  }
  func.func @transform_15(%arg0: i32) -> (i32, i32, i32, i32) {
    %c0_i32 = arith.constant 0 : i32
    %c0_i32_0 = arith.constant 0 : i32
    %c0_i32_1 = arith.constant 0 : i32
    %c0_i32_2 = arith.constant 0 : i32
    %c0_i32_3 = arith.constant 0 : i32
    return %c0_i32, %c0_i32_0, %c0_i32_1, %c0_i32_2 : i32, i32, i32, i32
  }
  func.func @transform_16(%arg0: i32) -> (i32, i32, i32, i32) {
    %c0_i32 = arith.constant 0 : i32
    %c0_i32_0 = arith.constant 0 : i32
    %c0_i32_1 = arith.constant 0 : i32
    %c0_i32_2 = arith.constant 0 : i32
    %c0_i32_3 = arith.constant 0 : i32
    return %c0_i32, %c0_i32_0, %c0_i32_1, %c0_i32_2 : i32, i32, i32, i32
  }
  func.func @transform_17(%arg0: i32) -> (i32, i32, i32, i32) {
    %c0_i32 = arith.constant 0 : i32
    %c0_i32_0 = arith.constant 0 : i32
    %c0_i32_1 = arith.constant 0 : i32
    %c0_i32_2 = arith.constant 0 : i32
    %c0_i32_3 = arith.constant 0 : i32
    return %c0_i32, %c0_i32_0, %c0_i32_1, %c0_i32_2 : i32, i32, i32, i32
  }
  func.func @transform_18(%arg0: i32) -> (i32, i32, i32, i32) {
    %c0_i32 = arith.constant 0 : i32
    %c0_i32_0 = arith.constant 0 : i32
    %c0_i32_1 = arith.constant 0 : i32
    %c0_i32_2 = arith.constant 0 : i32
    %c0_i32_3 = arith.constant 0 : i32
    return %c0_i32, %c0_i32_0, %c0_i32_1, %c0_i32_2 : i32, i32, i32, i32
  }
  func.func @transform_19(%arg0: i32) -> (i32, i32, i32) {
    %c0_i32 = arith.constant 0 : i32
    %c0_i32_0 = arith.constant 0 : i32
    %c0_i32_1 = arith.constant 0 : i32
    %c0_i32_2 = arith.constant 0 : i32
    return %c0_i32, %c0_i32_0, %c0_i32_1 : i32, i32, i32
  }
  func.func @transform_20(%arg0: i32) -> (i32, i32, i32) {
    %c0_i32 = arith.constant 0 : i32
    %c0_i32_0 = arith.constant 0 : i32
    %c0_i32_1 = arith.constant 0 : i32
    %c0_i32_2 = arith.constant 0 : i32
    return %c0_i32, %c0_i32_0, %c0_i32_1 : i32, i32, i32
  }
  func.func @transform_21(%arg0: i32) -> (i32, i32) {
    %c0_i32 = arith.constant 0 : i32
    %c0_i32_0 = arith.constant 0 : i32
    %c0_i32_1 = arith.constant 0 : i32
    return %c0_i32, %c0_i32_0 : i32, i32
  }
}

</mosaic_0001>

<bundles_post_ra>
// kernel: tpu_custom_call.1
= control target key start
LH: loop header
LB: loop body
LE: loop exit
PB: predicated region body
PF: predicated region fallthrough
CT: control target
= control target key end

     0   :  { %s5017_s0 = inlined_call_operand.vmem [shape: f32[6,16,32], index: 0, kind: input, shape index: {}]   ;;  %s5018_s1 = inlined_call_operand.vmem [shape: f32[6,16,1], index: 1, kind: input, shape index: {}]   ;;  %s5019_s2 = inlined_call_operand.vmem [shape: f32[6,16,1], index: 2, kind: input, shape index: {}]   ;;  %s5020_s3 = inlined_call_operand.vmem [shape: f32[6,16,1], index: 3, kind: input, shape index: {}]   ;;  %s5021_s4 = inlined_call_operand.vmem [shape: f32[6,16,1], index: 4, kind: input, shape index: {}]   ;;  %s5022_s5 = inlined_call_operand.vmem [shape: f32[6,2,16,32], index: 5, kind: input, shape index: {}]   ;;  %s5023_s6 = inlined_call_operand.vmem [shape: f32[16,16], index: 6, kind: input, shape index: {}]   ;;  %s5024_s7 = inlined_call_operand.vmem [shape: f32[16,16], index: 7, kind: input, shape index: {}]   ;;  %s5025_s8 = inlined_call_operand.vmem [shape: f32[2,16,32], index: 8, kind: input, shape index: {}]   ;;  %s5026_s9 = inlined_call_operand.vmem [shape: f32[2,192,64], index: 9, kind: input, shape index: {}]   ;;  %s5027_s10 = inlined_call_operand.vmem [shape: f32[2,1,64], index: 10, kind: input, shape index: {}]   ;;  %s5028_s11 = inlined_call_operand.vmem [shape: f32[2,32,96], index: 11, kind: input, shape index: {}]   ;;  %s5029_s12 = inlined_call_operand.vmem [shape: f32[2,1,96], index: 12, kind: input, shape index: {}]   ;;  %s5030_s13 = inlined_call_operand.vmem [shape: f32[2,32,32], index: 13, kind: input, shape index: {}]   ;;  %s5031_s14 = inlined_call_operand.vmem [shape: f32[2,1,32], index: 14, kind: input, shape index: {}]   ;;  %s5032_s15 = inlined_call_operand.vmem [shape: f32[2,2,1,32], index: 15, kind: input, shape index: {}]   ;;  %s5033_s16 = inlined_call_operand.vmem [shape: f32[2,2,32,32], index: 16, kind: input, shape index: {}]   ;;  %s5034_s17 = inlined_call_operand.vmem [shape: f32[2,2,1,32], index: 17, kind: input, shape index: {}]   ;;  %s5035_s18 = inlined_call_operand.vmem [shape: f32[2,2,1,32], index: 18, kind: input, shape index: {}]   ;;  %s5036_s19 = inlined_call_operand.vmem [shape: f32[2,32,64], index: 19, kind: input, shape index: {}]   ;;  %s5037_s20 = inlined_call_operand.vmem [shape: f32[2,1,64], index: 20, kind: input, shape index: {}]   ;;  %s5038_s21 = inlined_call_operand.hbm [shape: f32[16,32], index: 21, kind: output, shape index: {}]  }
   0x1   :  { %5041 = sst [smem:[#allocation6_spill]] %s5017_s0 }
   0x2   :  { %5042 = sst [smem:[#allocation7_spill]] %s5018_s1 }
   0x3   :  { %5043 = sst [smem:[#allocation8_spill]] %s5019_s2 }
   0x4   :  { %5044 = sst [smem:[#allocation9_spill]] %s5020_s3 }
   0x5   :  { %5045 = sst [smem:[#allocation10_spill]] %s5021_s4 }
   0x6   :  { %5046 = sst [smem:[#allocation11_spill]] %s5022_s5 }
   0x7   :  { %5047 = sst [smem:[#allocation12_spill]] %s5026_s9 }
   0x8   :  { %5048 = sst [smem:[#allocation13_spill]] %s5027_s10 }
   0x9   :  { %5049 = sst [smem:[#allocation14_spill]] %s5038_s21 }
   0xa   :  { %26 = vsyncpa [#allocation4], 0  ;;  %vm69_vm0 = vcmask 261120   ;;  %v4208_v0 = vld [vmem:[%s5023_s6] sm:$0xff]  ;;  %v4213_v1 = vld [vmem:[%s5023_s6 + $0x8] sm:$0xff]  ;;  %v4068_v2 = vmov 0.0  }
   0xb   :  { %70 = vst.msk [vmem:[#allocation2] sm:$0xff] %vm69_vm0, %v4068_v2  ;;  %71 = vst.msk [vmem:[#allocation2 + $0x8] sm:$0xff] %vm69_vm0, %v4068_v2  ;;  %v4224_v3 = vld [vmem:[%s5024_s7] sm:$0xff]  ;;  %v4229_v4 = vld [vmem:[%s5024_s7 + $0x8] sm:$0xff]  ;;  %s4231_s0 = smov 0  }
   0xc   :  { %72 = vst.msk [vmem:[#allocation2 + $0x10] sm:$0xff] %vm69_vm0, %v4068_v2  ;;  %73 = vst.msk [vmem:[#allocation2 + $0x18] sm:$0xff] %vm69_vm0, %v4068_v2 }
   0xd   :  { %74 = vst.msk [vmem:[#allocation3] sm:$0xff] %vm69_vm0, %v4068_v2  ;;  %75 = vst.msk [vmem:[#allocation3 + $0x8] sm:$0xff] %vm69_vm0, %v4068_v2 }
   0xe LB: > { %s3452_s4 = sshll.u32 %s4066_s0, 4  ;;  %s3453_s30 = sshll.u32 %s4066_s0, 5  ;;  %s4066_s0 = sphi %s4231_s0, %s85_s0  }
   0xf   : > { %s5050_s23 = sld [smem:[#allocation7_spill]]  ;;  %p3454_p0 = scmp.le.s32.totalorder %s4066_s0, 0 }
  0x10   : > { %s5051_s25 = sld [smem:[#allocation8_spill]]  ;;  %s4074_s24 = smov (!%p3454_p0), 80  }
  0x11   : > { %s5052_s3 = sld [smem:[#allocation9_spill]]  ;;  %s4075_s2 = smov (!%p3454_p0), 64  }
  0x12   : > { %s5053_s21 = sld [smem:[#allocation10_spill]] }
  0x15   : > { %s87_s1 = scalar_lea.vmem %s5050_s23, %s3452_s4  ;;  %s5054_s23 = sld [smem:[#allocation11_spill]] }
  0x16   : > { %s90_s7 = scalar_lea.vmem %s5051_s25, %s3452_s4  ;;  %v4244_v5 = vld [vmem:[%s87_s1] sm:$0xff]  ;;  %v4246_v6 = vld [vmem:[%s87_s1 + $0x8] sm:$0xff]  ;;  %s5055_s25 = sld [smem:[#allocation6_spill]] }
  0x17   : > { %v4248_v7 = vld [vmem:[%s90_s7] sm:$0xff]  ;;  %s93_s28 = scalar_lea.vmem %s5052_s3, %s3452_s4  ;;  %v4256_v8 = vld [vmem:[%s90_s7 + $0x8] sm:$0xff]  ;;  %s4077_s3 = smov (!%p3454_p0), 16  }
  0x18   : > { %s96_s10 = scalar_lea.vmem %s5053_s21, %s3452_s4  ;;  %v4258_v9 = vld [vmem:[%s93_s28] sm:$0xff]  ;;  %v4260_v10 = vld [vmem:[%s93_s28 + $0x8] sm:$0xff] }
  0x19   : > { %v4268_v11 = vld [vmem:[%s96_s10] sm:$0xff]  ;;  %v4270_v12 = vld [vmem:[%s96_s10 + $0x8] sm:$0xff]  ;;  %111 = sbr.rel (%p3454_p0) target bundleno = 2856 (0xb28), region = 96 }
  0x1b   : > { %s100_s1 = scalar_lea.vmem %s5054_s23, %s3453_s30  ;;  %s4072_s23 = smov (!%p3454_p0), 112  }
  0x1c   : > { %s105_s9 = scalar_lea.vmem %s5055_s25, %s3452_s4  ;;  %v4272_v13 = vld [vmem:[%s100_s1] sm:$0xff]  ;;  %v4274_v14 = vld [vmem:[%s100_s1 + $0x8] sm:$0xff]  ;;  %v4276_v15 = vld [vmem:[%s100_s1 + $0x10] sm:$0xff]  ;;  %s4076_s25 = smov (!%p3454_p0), 48  }
  0x1d   : > { %v4278_v16 = vld [vmem:[%s100_s1 + $0x18] sm:$0xff]  ;;  %v4280_v17 = vld [vmem:[%s105_s9] sm:$0xff]  ;;  %v4282_v18 = vld [vmem:[%s105_s9 + $0x8] sm:$0xff]  ;;  %s4073_s1 = smov (!%p3454_p0), 96  }
  0x1e   : > { %v133_v19 = vld [vmem:[%s5028_s11 + $0x18] sm:$0xff]  ;;  %v132_v20 = vld [vmem:[%s5028_s11 + $0x10] sm:$0xff]  ;;  %v4069_v21 = vmov 0   ;;  %v131_v22 = vld [vmem:[%s5028_s11 + $0x8] sm:$0xff]  ;;  %v4070_v34 = vmov 0.0   ;;  %vm4071_vm1 = vmmov 0  }
  0x1f   : > { %3960 = vset.pattern.permute.xlu0 %v4069_v21  ;;  %3707 = vmatprep.subr.mxu0 %v133_v19  ;;  %v130_v23 = vld [vmem:[%s5028_s11] sm:$0xff]  ;;  %v115_v28 = vld [vmem:[%s5025_s8 + $0x8] sm:$0xff]  ;;  %vm225_vm2 = vcmask 130048   ;;  %vm301_vm3 = vcmask 64512  }
  0x20   : > { %118 = vperm.xlu0 %3960, %v4244_v5   ;;  %3708 = vmatpush3.msra.mxu0 %v133_v19  ;;  %v114_v24 = vld [vmem:[%s5025_s8] sm:$0xff]  ;;  %v4312_v31 = vld [vmem:[#allocation2 + $0x8] sm:$0xff] }
  0x21   : > { %3709 = vmatprep.subr.mxu0 %v132_v20  ;;  %3961 = vset.pattern.permute.xlu1 %v4069_v21  ;;  %v4304_v26 = vld [vmem:[#allocation2] sm:$0xff] }
  0x22   : > { %3710 = vmatpush3.msra.mxu0 %v132_v20  ;;  %3718 = vmatprep.subr.mxu1 %v4070_v34  ;;  %v3455_v36 = vld [vmem:[%s5029_s12] ss:$0 sm:$0xff] }
  0x23   : > { %3711 = vmatprep.subr.mxu0 %v131_v22  ;;  %3720 = vmatprep.mubr.msk.f32.mxu1 %vm4071_vm1, %v4070_v34 }
  0x24   : > { %123 = vperm.xlu0 %3960, %v4246_v6   ;;  %3712 = vmatpush3.msra.mxu0 %v131_v22 }
  0x25   : > { %3713 = vmatprep.subr.mxu0 %v130_v23 }
  0x26   : > { %3714 = vmatpush3.msra.mxu0 %v130_v23 }
  0x27   : > { %3728 = vmatprep.subr.mxu0 %v4070_v34 }
  0x9b   : > { %v119_v25 = vpop.permute.xlu0 %118 }
  0x9c   : > { %v126_v27 = vmul.f32 %v119_v25, %v114_v24 }
  0x9e   : > { %v4310_v29 = vadd.f32 %v126_v27, %v4304_v26 }
  0x9f   : > { %v124_v30 = vpop.permute.xlu0 %123 }
  0xa0   : > { %v127_v32 = vmul.f32 %v124_v30, %v115_v28  ;;  %3715 = vmatprep.mubr.msk.f32.mxu0 %vm69_vm0, %v4310_v29 }
  0xa2   : > { %v4317_v33 = vadd.f32 %v127_v32, %v4312_v31 }
  0xa4   : > { %3716 = vmatmul.mubr.msk.f32.vlgmr.msra.gmra.mxu0 %vm69_vm0, %v4317_v33 }
  0xa5   : > { %3730 = vmatprep.mubr.msk.f32.mxu0 %vm4071_vm1, %v4070_v34 }
 0x164   : > { %v3717_v35 = vpop.f32.mrf.mxu0 }
 0x165   : > { %v4335_v39 = vadd.f32 %v3717_v35, %v3455_v36 }
 0x166   : > { %v213_v37 = vpop.f32.mrf.mxu0 }
 0x167   : > { %v4330_v38 = vadd.f32 %v3455_v36, %v213_v37 }
 0x169   : > { %389 = vrot.lane.b32.xlu0 %v4330_v38, %s4072_s23  ;;  %223 = vrot.lane.b32.xlu1 %v4330_v38, %s4073_s1 }
 0x16d   : > { %727 = vrot.lane.b32.xlu0 %v4335_v39, %s4074_s24  ;;  %391 = vrot.lane.b32.xlu1 %v4330_v38, %s4074_s24 }
 0x171   : > { %561 = vrot.lane.b32.xlu1 %v4335_v39, %s4073_s1 }
 0x175   : > { %725 = vrot.lane.b32.xlu1 %v4335_v39, %s4072_s23 }
 0x1db   : > { %v224_v40 = vpop.permute.xlu1 %223  ;;  %v390_v42 = vpop.permute.xlu0 %389 }
 0x1dc   : > { %3719 = vmatpush3.xpose.msk.msra.mxu1 %vm225_vm2, %v224_v40 }
 0x1dd   : > { %3723 = vmatprep.subr.mxu1 %v4070_v34 }
 0x1df   : > { %3721 = vmatmul.mubr.msk.f32.vlgmr.msra.gmra.mxu1 %vm225_vm2, %v4330_v38  ;;  %v392_v41 = vpop.permute.xlu1 %391  ;;  %v728_v44 = vpop.permute.xlu0 %727 }
 0x1e0   : > { %3729 = vmatpush3.xpose.msk.msra.mxu0 %vm225_vm2, %v392_v41  ;;  %3725 = vmatprep.mubr.msk.f32.mxu1 %vm4071_vm1, %v4070_v34 }
 0x1e1   : > { %3738 = vmatprep.subr.mxu0 %v4070_v34 }
 0x1e3   : > { %3731 = vmatmul.mubr.msk.f32.vlgmr.msra.gmra.mxu0 %vm225_vm2, %v390_v42  ;;  %v562_v43 = vpop.permute.xlu1 %561 }
 0x1e4   : > { %3739 = vmatpush3.xpose.msk.msra.mxu0 %vm225_vm2, %v562_v43  ;;  %3740 = vmatprep.mubr.msk.f32.mxu0 %vm4071_vm1, %v4070_v34 }
 0x1e5   : > { %3748 = vmatprep.subr.mxu0 %v4070_v34 }
 0x1e7   : > { %3741 = vmatmul.mubr.msk.f32.vlgmr.msra.gmra.mxu0 %vm225_vm2, %v4335_v39  ;;  %v726_v45 = vpop.permute.xlu1 %725 }
 0x1e8   : > { %3749 = vmatpush3.xpose.msk.msra.mxu0 %vm225_vm2, %v728_v44  ;;  %3750 = vmatprep.mubr.msk.f32.mxu0 %vm4071_vm1, %v4070_v34 }
 0x1eb   : > { %3751 = vmatmul.mubr.msk.f32.vlgmr.msra.gmra.mxu0 %vm225_vm2, %v726_v45 }
 0x29f   : > { %v296_v46 = vpop.f32.mrf.mxu1 }
 0x2a0   : > { %v300_v47 = vmul.f32 0.25, %v296_v46 }
 0x2a1   : > { %v3722_v48 = vpop.f32.mrf.mxu1 }
 0x2a2   : > { %v302_v49 = vsel %vm301_vm3, %v300_v47, -inf }
 0x2a3   : > { %303 = vmax.xlane.f32.xlu0 %v302_v49  ;;  %v463_v50 = vpop.f32.mrf.mxu0 }
 0x2a4   : > { %v467_v51 = vmul.f32 0.25, %v463_v50 }
 0x2a5   : > { %v3732_v52 = vpop.f32.mrf.mxu0 }
 0x2a6   : > { %v468_v53 = vsel %vm301_vm3, %v467_v51, -inf }
 0x2a7   : > { %469 = vmax.xlane.f32.xlu1 %v468_v53  ;;  %v633_v54 = vpop.f32.mrf.mxu0 }
 0x2a8   : > { %v637_v55 = vmul.f32 0.25, %v633_v54 }
 0x2a9   : > { %v3742_v56 = vpop.f32.mrf.mxu0 }
 0x2aa   : > { %v638_v57 = vsel %vm301_vm3, %v637_v55, -inf }
 0x2ab   : > { %639 = vmax.xlane.f32.xlu0 %v638_v57  ;;  %v799_v58 = vpop.f32.mrf.mxu0  ;;  %v899_v57 = vld [vmem:[%s5030_s13 + $0x18] sm:$0xff] }
 0x2ac   : > { %v803_v59 = vmul.f32 0.25, %v799_v58  ;;  %3758 = vmatprep.subr.mxu0 %v899_v57  ;;  %v898_v58 = vld [vmem:[%s5030_s13 + $0x10] sm:$0xff] }
 0x2ad   : > { %v3752_v60 = vpop.f32.mrf.mxu0  ;;  %3759 = vmatpush3.msra.mxu0 %v899_v57 }
 0x2ae   : > { %v804_v61 = vsel %vm301_vm3, %v803_v59, -inf  ;;  %3760 = vmatprep.subr.mxu0 %v898_v58 }
 0x2af   : > { %805 = vmax.xlane.f32.xlu0 %v804_v61  ;;  %3761 = vmatpush3.msra.mxu0 %v898_v58 }
 0x2b8   : > { %313 = vrot.lane.b32.xlu1 %v4330_v38, %s4075_s2 }
 0x32c   : > { %v304_v62 = vpop.xlane.xlu0 %303 }
 0x32d   : > { %v305_v63 = vsub.f32 %v300_v47, %v304_v62 }
 0x32f   : > { %v306_v2 = vmul.f32 1.442695, %v305_v63 }
 0x330   : > { %v470_v19 = vpop.xlane.xlu1 %469 }
 0x331   : > { %3962 = vpow2.f32 %v306_v2  ;;  %v471_v20 = vsub.f32 %v467_v51, %v470_v19 }
 0x333   : > { %v472_v21 = vmul.f32 1.442695, %v471_v20 }
 0x334   : > { %v640_v22 = vpop.xlane.xlu0 %639  ;;  %v314_v23 = vpop.permute.xlu1 %313 }
 0x335   : > { %3964 = vpow2.f32 %v472_v21  ;;  %v641_v24 = vsub.f32 %v637_v55, %v640_v22  ;;  %3724 = vmatpush3.msra.mxu1 %v314_v23 }
 0x336   : > { %3733 = vmatprep.subr.mxu1 %v4070_v34 }
 0x337   : > { %v642_v25 = vmul.f32 1.442695, %v641_v24 }
 0x338   : > { %v806_v27 = vpop.xlane.xlu0 %805 }
 0x339   : > { %3966 = vpow2.f32 %v642_v25  ;;  %v807_v28 = vsub.f32 %v803_v59, %v806_v27  ;;  %v897_v59 = vld [vmem:[%s5030_s13 + $0x8] sm:$0xff]  ;;  %v3470_v27 = vld [vmem:[%s5031_s14] ss:$0 sm:$0xff] }
 0x33a   : > { %3762 = vmatprep.subr.mxu0 %v897_v59 }
 0x33b   : > { %v808_v30 = vmul.f32 1.442695, %v807_v28  ;;  %3763 = vmatpush3.msra.mxu0 %v897_v59  ;;  %v3474_v59 = vld [vmem:[%s5032_s15] ss:$0 sm:$0xff] }
 0x33d   : > { %3968 = vpow2.f32 %v808_v30 }
 0x33e   : > { %v3963_v32 = vpop.eup %3962 }
 0x33f   : > { %v308_v35 = vsel %vm301_vm3, %v3963_v32, 0.0 }
 0x340   : > { %309 = vadd.xlane.f32.xlu1 %v308_v35 }
 0x342   : > { %v3965_v36 = vpop.eup %3964 }
 0x343   : > { %v474_v37 = vsel %vm301_vm3, %v3965_v36, 0.0 }
 0x344   : > { %475 = vadd.xlane.f32.xlu0 %v474_v37 }
 0x346   : > { %v3967_v40 = vpop.eup %3966 }
 0x347   : > { %v644_v41 = vsel %vm301_vm3, %v3967_v40, 0.0 }
 0x348   : > { %645 = vadd.xlane.f32.xlu1 %v644_v41 }
 0x34a   : > { %v3969_v42 = vpop.eup %3968 }
 0x34b   : > { %v810_v43 = vsel %vm301_vm3, %v3969_v42, 0.0 }
 0x34c   : > { %811 = vadd.xlane.f32.xlu0 %v810_v43 }
 0x359   : > { %649 = vrot.lane.b32.xlu1 %v4335_v39, %s4075_s2 }
 0x35d   : > { %815 = vrot.lane.b32.xlu1 %v4335_v39, %s4076_s25 }
 0x362   : > { %479 = vrot.lane.b32.xlu0 %v4330_v38, %s4076_s25 }
 0x3c9   : > { %v310_v44 = vpop.xlane.xlu1 %309 }
 0x3ca   : > { %3970 = vrcp.f32 %v310_v44 }
 0x3cd   : > { %v476_v45 = vpop.xlane.xlu0 %475 }
 0x3ce   : > { %3972 = vrcp.f32 %v476_v45 }
 0x3d1   : > { %v646_v46 = vpop.xlane.xlu1 %645 }
 0x3d2   : > { %3974 = vrcp.f32 %v646_v46 }
 0x3d5   : > { %v812_v47 = vpop.xlane.xlu0 %811  ;;  %v650_v39 = vpop.permute.xlu1 %649 }
 0x3d6   : > { %3976 = vrcp.f32 %v812_v47 }
 0x3d7   : > { %v3971_v48 = vpop.eup %3970 }
 0x3d8   : > { %v312_v49 = vmul.f32 %v3971_v48, %v3963_v32 }
 0x3d9   : > { %v480_v50 = vpop.permute.xlu0 %479  ;;  %v816_v54 = vpop.permute.xlu1 %815 }
 0x3da   : > { %3726 = vmatmul.mubr.msk.f32.vlgmr.msra.gmra.mxu1 %vm301_vm3, %v312_v49 }
 0x3db   : > { %v3973_v51 = vpop.eup %3972  ;;  %3734 = vmatpush3.msra.mxu1 %v480_v50  ;;  %3735 = vmatprep.mubr.msk.f32.mxu1 %vm4071_vm1, %v4070_v34 }
 0x3dc   : > { %3743 = vmatprep.subr.mxu1 %v4070_v34  ;;  %v478_v38 = vmul.f32 %v3973_v51, %v3965_v36  ;;  %v1038_v51 = vld [vmem:[%s5033_s16 + $0x10] sm:$0xff] }
 0x3de   : > { %3736 = vmatmul.mubr.msk.f32.vlgmr.msra.gmra.mxu1 %vm301_vm3, %v478_v38  ;;  %v1036_v38 = vld [vmem:[%s5033_s16] sm:$0xff] }
 0x3df   : > { %v3975_v52 = vpop.eup %3974  ;;  %3744 = vmatpush3.msra.mxu1 %v650_v39  ;;  %3745 = vmatprep.mubr.msk.f32.mxu1 %vm4071_vm1, %v4070_v34  ;;  %v1037_v39 = vld [vmem:[%s5033_s16 + $0x8] sm:$0xff] }
 0x3e0   : > { %3753 = vmatprep.subr.mxu1 %v4070_v34  ;;  %v648_v53 = vmul.f32 %v3975_v52, %v3967_v40 }
 0x3e2   : > { %3746 = vmatmul.mubr.msk.f32.vlgmr.msra.gmra.mxu1 %vm301_vm3, %v648_v53 }
 0x3e3   : > { %v3977_v55 = vpop.eup %3976  ;;  %3754 = vmatpush3.msra.mxu1 %v816_v54  ;;  %3755 = vmatprep.mubr.msk.f32.mxu1 %vm4071_vm1, %v4070_v34  ;;  %v896_v34 = vld [vmem:[%s5030_s13] sm:$0xff] }
 0x3e4   : > { %v814_v56 = vmul.f32 %v3977_v55, %v3969_v42  ;;  %3764 = vmatprep.subr.mxu0 %v896_v34 }
 0x3e5   : > { %3765 = vmatpush3.msra.mxu0 %v896_v34 }
 0x3e6   : > { %3756 = vmatmul.mubr.msk.f32.vlgmr.msra.gmra.mxu1 %vm301_vm3, %v814_v56 }
 0x49a   : > { %v385_v60 = vpop.f32.mrf.mxu1 }
 0x49c   : > { %v3727_v61 = vpop.f32.mrf.mxu1 }
 0x49e   : > { %v551_v62 = vpop.f32.mrf.mxu1 }
 0x49f   : > { %556 = vrot.lane.b32.xlu0 %v551_v62, %s4077_s3 }
 0x4a0   : > { %v3737_v63 = vpop.f32.mrf.mxu1 }
 0x4a2   : > { %v721_v2 = vpop.f32.mrf.mxu1 }
 0x4a4   : > { %v3747_v19 = vpop.f32.mrf.mxu1 }
 0x4a6   : > { %v887_v20 = vpop.f32.mrf.mxu1 }
 0x4a7   : > { %892 = vrot.lane.b32.xlu1 %v887_v20, %s4077_s3 }
 0x4a8   : > { %v3757_v21 = vpop.f32.mrf.mxu1 }
 0x4a9   : > { %v3482_v21 = vld [vmem:[%s5033_s16 + $0x38] sm:$0xff] }
 0x4aa   : > { %3780 = vmatprep.subr.mxu0 %v3482_v21 }
 0x511   : > { %v557_v22 = vpop.permute.xlu0 %556 }
 0x512   : > { %v559_v23 = vsel %vm225_vm2, %v385_v60, %v557_v22  ;;  %v3475_v60 = vld [vmem:[%s5032_s15 + $0x1] ss:$0 sm:$0xff]  ;;  %v3481_v22 = vld [vmem:[%s5033_s16 + $0x30] sm:$0xff] }
 0x513   : > { %3766 = vmatprep.mubr.msk.f32.mxu0 %vm69_vm0, %v559_v23  ;;  %v3480_v23 = vld [vmem:[%s5033_s16 + $0x28] sm:$0xff] }
 0x519   : > { %v893_v24 = vpop.permute.xlu1 %892 }
 0x51a   : > { %v895_v25 = vsel %vm225_vm2, %v721_v2, %v893_v24  ;;  %v3479_v24 = vld [vmem:[%s5033_s16 + $0x20] sm:$0xff] }
 0x51b   : > { %3767 = vmatmul.mubr.msk.f32.vlgmr.msra.gmra.mxu0 %vm69_vm0, %v895_v25  ;;  %v3476_v25 = vld [vmem:[%s5034_s17] ss:$0 sm:$0xff] }
 0x51c   : > { %3781 = vmatpush3.msra.mxu0 %v3482_v21 }
 0x51d   : > { %3782 = vmatprep.subr.mxu0 %v3481_v22 }
 0x51e   : > { %3783 = vmatpush3.msra.mxu0 %v3481_v22 }
 0x51f   : > { %3784 = vmatprep.subr.mxu0 %v3480_v23 }
 0x520   : > { %3785 = vmatpush3.msra.mxu0 %v3480_v23  ;;  %v3489_v23 = vld [vmem:[%s5035_s18 + $0x1] ss:$0 sm:$0xff] }
 0x521   : > { %3786 = vmatprep.subr.mxu0 %v3479_v24 }
 0x522   : > { %3787 = vmatpush3.msra.mxu0 %v3479_v24 }
 0x5db   : > { %v3768_v28 = vpop.f32.mrf.mxu0 }
 0x5dc   : > { %v985_v30 = vadd.f32 %v3768_v28, %v3470_v27 }
 0x5dd   : > { %v979_v32 = vpop.f32.mrf.mxu0 }
 0x5de   : > { %v980_v35 = vadd.f32 %v3470_v27, %v979_v32  ;;  %v989_v36 = vadd.f32 %v985_v30, %v4317_v33 }
 0x5e0   : > { %v996_v37 = vsel %vm69_vm0, %v989_v36, 0.0  ;;  %v988_v40 = vadd.f32 %v980_v35, %v4310_v29  ;;  %v1039_v29 = vld [vmem:[%s5033_s16 + $0x18] sm:$0xff] }
 0x5e1   : > { %997 = vadd.xlane.f32.xlu1 %v996_v37  ;;  %3769 = vmatprep.subr.mxu1 %v1039_v29  ;;  %v3484_v37 = vld [vmem:[%s5034_s17 + $0x1] ss:$0 sm:$0xff] }
 0x5e2   : > { %v993_v41 = vsel %vm69_vm0, %v988_v40, 0.0  ;;  %3770 = vmatpush3.msra.mxu1 %v1039_v29 }
 0x5e3   : > { %994 = vadd.xlane.f32.xlu0 %v993_v41  ;;  %3771 = vmatprep.subr.mxu1 %v1038_v51 }
 0x5e4   : > { %3772 = vmatpush3.msra.mxu1 %v1038_v51 }
 0x5e5   : > { %3773 = vmatprep.subr.mxu1 %v1037_v39 }
 0x5e6   : > { %3774 = vmatpush3.msra.mxu1 %v1037_v39 }
 0x5e7   : > { %3775 = vmatprep.subr.mxu1 %v1036_v38 }
 0x5e8   : > { %3776 = vmatpush3.msra.mxu1 %v1036_v38 }
 0x66a   : > { %v998_v42 = vpop.xlane.xlu1 %997 }
 0x66b   : > { %v1001_v43 = vmul.f32 0.03125, %v998_v42 }
 0x66c   : > { %v995_v44 = vpop.xlane.xlu0 %994 }
 0x66d   : > { %v1000_v45 = vmul.f32 0.03125, %v995_v44  ;;  %v1003_v46 = vsub.f32 %v989_v36, %v1001_v43 }
 0x66f   : > { %v1002_v47 = vsub.f32 %v988_v40, %v1000_v45  ;;  %v1005_v50 = vmul.f32 %v1003_v46, %v1003_v46 }
 0x671   : > { %v1004_v48 = vmul.f32 %v1002_v47, %v1002_v47  ;;  %v1009_v33 = vsel %vm69_vm0, %v1005_v50, 0.0 }
 0x673   : > { %v1006_v49 = vsel %vm69_vm0, %v1004_v48, 0.0 }
 0x674   : > { %1007 = vadd.xlane.f32.xlu0 %v1006_v49 }
 0x678   : > { %1010 = vadd.xlane.f32.xlu0 %v1009_v33 }
 0x6fd   : > { %v1008_v52 = vpop.xlane.xlu0 %1007 }
 0x6fe   : > { %v1012_v53 = vmul.f32 0.03125, %v1008_v52 }
 0x700   : > { %v1014_v54 = vadd.f32 1e-05, %v1012_v53 }
 0x701   : > { %v1011_v55 = vpop.xlane.xlu0 %1010 }
 0x702   : > { %3978 = vrsqrt.f32 %v1014_v54  ;;  %v1013_v56 = vmul.f32 0.03125, %v1011_v55  ;;  %v1274_v54 = vld [vmem:[%s5036_s19 + $0x18] sm:$0xff]  ;;  %v1273_v55 = vld [vmem:[%s5036_s19 + $0x10] sm:$0xff] }
 0x703   : > { %3791 = vmatprep.subr.mxu1 %v1274_v54 }
 0x704   : > { %v1015_v57 = vadd.f32 1e-05, %v1013_v56  ;;  %v1272_v56 = vld [vmem:[%s5036_s19 + $0x8] sm:$0xff] }
 0x706   : > { %3980 = vrsqrt.f32 %v1015_v57  ;;  %v1271_v57 = vld [vmem:[%s5036_s19] sm:$0xff] }
 0x70f   : > { %v3979_v58 = vpop.eup %3978 }
 0x710   : > { %v1018_v34 = vmul.f32 %v3979_v58, %v1002_v47 }
 0x712   : > { %v1026_v61 = vmul.f32 %v3474_v59, %v1018_v34 }
 0x713   : > { %v3981_v62 = vpop.eup %3980 }
 0x714   : > { %v1019_v63 = vmul.f32 %v3981_v62, %v1003_v46  ;;  %v1034_v2 = vadd.f32 %v3475_v60, %v1026_v61 }
 0x716   : > { %v1027_v19 = vmul.f32 %v3474_v59, %v1019_v63  ;;  %3777 = vmatprep.mubr.msk.f32.mxu1 %vm69_vm0, %v1034_v2 }
 0x718   : > { %v1035_v20 = vadd.f32 %v3475_v60, %v1027_v19 }
 0x71a   : > { %3778 = vmatmul.mubr.msk.f32.vlgmr.msra.gmra.mxu1 %vm69_vm0, %v1035_v20 }
 0x71b   : > { %3792 = vmatpush3.msra.mxu1 %v1274_v54 }
 0x71c   : > { %3793 = vmatprep.subr.mxu1 %v1273_v55 }
 0x71d   : > { %3794 = vmatpush3.msra.mxu1 %v1273_v55 }
 0x71e   : > { %3795 = vmatprep.subr.mxu1 %v1272_v56 }
 0x71f   : > { %3796 = vmatpush3.msra.mxu1 %v1272_v56 }
 0x720   : > { %3797 = vmatprep.subr.mxu1 %v1271_v57 }
 0x721   : > { %3798 = vmatpush3.msra.mxu1 %v1271_v57 }
 0x7da   : > { %v3779_v27 = vpop.f32.mrf.mxu1 }
 0x7db   : > { %v1125_v28 = vadd.f32 %v3779_v27, %v3476_v25 }
 0x7dc   : > { %v1119_v30 = vpop.f32.mrf.mxu1 }
 0x7dd   : > { %v1120_v32 = vadd.f32 %v3476_v25, %v1119_v30  ;;  %v1129_v36 = vmax.f32 %v1125_v28, 0.0  ;;  %v3490_v28 = vld [vmem:[%s5037_s20] ss:$0 sm:$0xff] }
 0x7df   : > { %v1128_v35 = vmax.f32 %v1120_v32, 0.0 }
 0x7e1   : > { %3788 = vmatprep.mubr.msk.f32.mxu0 %vm69_vm0, %v1128_v35 }
 0x7e2   : > { %3789 = vmatmul.mubr.msk.f32.vlgmr.msra.gmra.mxu0 %vm69_vm0, %v1129_v36 }
 0x8a2   : > { %v3790_v40 = vpop.f32.mrf.mxu0 }
 0x8a3   : > { %v1221_v41 = vadd.f32 %v3790_v40, %v3484_v37 }
 0x8a4   : > { %v1215_v42 = vpop.f32.mrf.mxu0 }
 0x8a5   : > { %v1216_v43 = vadd.f32 %v3484_v37, %v1215_v42  ;;  %v1225_v44 = vadd.f32 %v1221_v41, %v1035_v20 }
 0x8a7   : > { %v1232_v45 = vsel %vm69_vm0, %v1225_v44, 0.0  ;;  %v1224_v46 = vadd.f32 %v1216_v43, %v1034_v2  ;;  %v3488_v2 = vld [vmem:[%s5035_s18] ss:$0 sm:$0xff] }
 0x8a8   : > { %1233 = vadd.xlane.f32.xlu0 %v1232_v45 }
 0x8a9   : > { %v1229_v47 = vsel %vm69_vm0, %v1224_v46, 0.0 }
 0x8aa   : > { %1230 = vadd.xlane.f32.xlu1 %v1229_v47 }
 0x931   : > { %v1234_v48 = vpop.xlane.xlu0 %1233 }
 0x932   : > { %v1236_v49 = vmul.f32 0.03125, %v1234_v48 }
 0x933   : > { %v1231_v50 = vpop.xlane.xlu1 %1230 }
 0x934   : > { %v1238_v33 = vsub.f32 %v1225_v44, %v1236_v49  ;;  %v1235_v29 = vmul.f32 0.03125, %v1231_v50 }
 0x936   : > { %v1237_v51 = vsub.f32 %v1224_v46, %v1235_v29  ;;  %v1240_v39 = vmul.f32 %v1238_v33, %v1238_v33 }
 0x938   : > { %v1244_v38 = vsel %vm69_vm0, %v1240_v39, 0.0  ;;  %v1239_v52 = vmul.f32 %v1237_v51, %v1237_v51 }
 0x939   : > { %1245 = vadd.xlane.f32.xlu0 %v1244_v38 }
 0x93a   : > { %v1241_v53 = vsel %vm69_vm0, %v1239_v52, 0.0 }
 0x93b   : > { %1242 = vadd.xlane.f32.xlu1 %v1241_v53 }
 0x94c   : > { %1377 = vperm.xlu1 %3961, %v4248_v7  }
 0x950   : > { %1382 = vperm.xlu1 %3961, %v4256_v8  }
 0x9c2   : > { %v1246_v58 = vpop.xlane.xlu0 %1245 }
 0x9c3   : > { %v1248_v59 = vmul.f32 0.03125, %v1246_v58 }
 0x9c4   : > { %v1243_v34 = vpop.xlane.xlu1 %1242 }
 0x9c5   : > { %v1250_v60 = vadd.f32 1e-05, %v1248_v59  ;;  %v1247_v61 = vmul.f32 0.03125, %v1243_v34 }
 0x9c7   : > { %3982 = vrsqrt.f32 %v1250_v60  ;;  %v1249_v62 = vadd.f32 1e-05, %v1247_v61 }
 0x9c8   : > { %v1378_v37 = vpop.permute.xlu1 %1377 }
 0x9c9   : > { %3984 = vrsqrt.f32 %v1249_v62  ;;  %v1385_v47 = vmul.f32 %v1378_v37, %v4304_v26 }
 0x9cc   : > { %v1383_v40 = vpop.permute.xlu1 %1382 }
 0x9d4   : > { %v3983_v63 = vpop.eup %3982 }
 0x9d5   : > { %v1254_v19 = vmul.f32 %v3983_v63, %v1238_v33  ;;  %v1386_v33 = vmul.f32 %v1383_v40, %v4312_v31 }
 0x9d6   : > { %v3985_v20 = vpop.eup %3984 }
 0x9d7   : > { %v1253_v21 = vmul.f32 %v3985_v20, %v1237_v51  ;;  %v1262_v22 = vmul.f32 %v3488_v2, %v1254_v19 }
 0x9d9   : > { %v1261_v24 = vmul.f32 %v3488_v2, %v1253_v21  ;;  %v1270_v27 = vadd.f32 %v3489_v23, %v1262_v22 }
 0x9db   : > { %v1269_v25 = vadd.f32 %v3489_v23, %v1261_v24 }
 0x9dd   : > { %3799 = vmatprep.mubr.msk.f32.mxu1 %vm69_vm0, %v1269_v25 }
 0x9de   : > { %3800 = vmatmul.mubr.msk.f32.vlgmr.msra.gmra.mxu1 %vm69_vm0, %v1270_v27 }
 0xa9e   : > { %v3801_v30 = vpop.f32.mrf.mxu1 }
 0xa9f   : > { %v1360_v32 = vadd.f32 %v3801_v30, %v3490_v28 }
 0xaa0   : > { %v1354_v35 = vpop.f32.mrf.mxu1 }
 0xaa1   : > { %v1355_v36 = vadd.f32 %v3490_v28, %v1354_v35  ;;  %1367 = vrot.lane.b32.xlu0 %v1360_v32, %s4073_s1 }
 0xaa3   : > { %1365 = vrot.lane.b32.xlu1 %v1355_v36, %s4073_s1 }
 0xaa5   : > { %1389 = vperm.xlu0 %3960, %v4258_v9  }
 0xaa7   : > { %1394 = vperm.xlu1 %3961, %v4260_v10  }
 0xb13   : > { %v1368_v42 = vpop.permute.xlu0 %1367 }
 0xb14   : > { %v1372_v44 = vmul.f32 %v1368_v42, %v4274_v14 }
 0xb15   : > { %v1366_v41 = vpop.permute.xlu1 %1365 }
 0xb16   : > { %v1371_v43 = vmul.f32 %v1366_v41, %v4272_v13  ;;  %v1374_v49 = vadd.f32 %v1372_v44, %v1360_v32 }
 0xb18   : > { %v1373_v45 = vadd.f32 %v1371_v43, %v1355_v36 }
 0xb20   : > { %v1390_v46 = vpop.permute.xlu0 %1389 }
 0xb21   : > { %v1397_v48 = vmul.f32 %v1390_v46, %v1373_v45 }
 0xb22   : > { %v1395_v50 = vpop.permute.xlu1 %1394 }
 0xb23   : > { %v1399_v29 = vadd.f32 %v1397_v48, %v1385_v47  ;;  %v1398_v51 = vmul.f32 %v1395_v50, %v1374_v49 }
 0xb25   : > { %1401 = vst.msk [vmem:[#allocation2] sm:$0xff] %vm69_vm0, %v1399_v29  ;;  %v1400_v39 = vadd.f32 %v1398_v51, %v1386_v33 }
 0xb27   : > { %1402 = vst.msk [vmem:[#allocation2 + $0x8] sm:$0xff] %vm69_vm0, %v1400_v39 }
 0xb28 PF: > { %vm1415_vm4 = vcmask 130048   ;;  %s4078_s1 = smov 32   ;;  %s5056_s24 = sld [smem:[#allocation12_spill]]  ;;  %vm1586_vm5 = vcmask 523264  }
 0xb29   : > { %3806 = vmatprep.mubr.msk.f32.mxu1 %vm1415_vm4, %v4208_v0  ;;  %s4080_s6 = smov 64   ;;  %s5057_s5 = sld [smem:[#allocation13_spill]] }
 0xb2a   : > { %s4081_s22 = smov 96   ;;  %s4085_s29 = smov (!%p3454_p0), 112  }
 0xb2b   : > { %s4087_s23 = smov (!%p3454_p0), 80   ;;  %s4088_s2 = smov (!%p3454_p0), 64  }
 0xb2c   : > { %v4498_v14 = vld [vmem:[#allocation2] sm:$0xff]  ;;  %s4089_s25 = smov (!%p3454_p0), 48   ;;  %s4090_s3 = smov (!%p3454_p0), 16  }
 0xb2e   : > { %v4492_v13 = vld [vmem:[#allocation2 + $0x8] sm:$0xff]  ;;  %v1603_v53 = vld [vmem:[%s5056_s24 + $0x70] sm:$0xff]  ;;  %v1601_v55 = vld [vmem:[%s5056_s24 + $0x60] sm:$0xff] }
 0xb2f   : > { %1409 = vrot.lane.b32.xlu0 %v4492_v13, %s4078_s1  ;;  %v1602_v54 = vld [vmem:[%s5056_s24 + $0x68] sm:$0xff]  ;;  %v1600_v56 = vld [vmem:[%s5056_s24 + $0x58] sm:$0xff]  ;;  %v1599_v57 = vld [vmem:[%s5056_s24 + $0x50] sm:$0xff] }
 0xb30   : > { %v1598_v58 = vld [vmem:[%s5056_s24 + $0x48] sm:$0xff]  ;;  %v1597_v59 = vld [vmem:[%s5056_s24 + $0x40] sm:$0xff]  ;;  %v1596_v34 = vld [vmem:[%s5056_s24 + $0x38] sm:$0xff] }
 0xb31   : > { %v1595_v60 = vld [vmem:[%s5056_s24 + $0x30] sm:$0xff]  ;;  %v1594_v61 = vld [vmem:[%s5056_s24 + $0x28] sm:$0xff]  ;;  %v1593_v62 = vld [vmem:[%s5056_s24 + $0x20] sm:$0xff] }
 0xb32   : > { %v1592_v63 = vld [vmem:[%s5056_s24 + $0x18] sm:$0xff]  ;;  %v1591_v2 = vld [vmem:[%s5056_s24 + $0x10] sm:$0xff]  ;;  %v1590_v19 = vld [vmem:[%s5056_s24 + $0x8] sm:$0xff] }
 0xb33   : > { %1407 = vrot.lane.b32.xlu0 %v4498_v14, %s4078_s1  ;;  %v1589_v20 = vld [vmem:[%s5056_s24] sm:$0xff]  ;;  %v1612_v21 = vld [vmem:[%s5056_s24 + $0xb8] sm:$0xff]  ;;  %v1611_v22 = vld [vmem:[%s5056_s24 + $0xb0] sm:$0xff] }
 0xb34   : > { %v1610_v23 = vld [vmem:[%s5056_s24 + $0xa8] sm:$0xff]  ;;  %v1609_v24 = vld [vmem:[%s5056_s24 + $0xa0] sm:$0xff]  ;;  %v1608_v25 = vld [vmem:[%s5056_s24 + $0x98] sm:$0xff] }
 0xb35   : > { %v1607_v27 = vld [vmem:[%s5056_s24 + $0x90] sm:$0xff]  ;;  %v1606_v28 = vld [vmem:[%s5056_s24 + $0x88] sm:$0xff]  ;;  %v1605_v30 = vld [vmem:[%s5056_s24 + $0x80] sm:$0xff] }
 0xb36   : > { %v3497_v44 = vld [vmem:[%s5057_s5] ss:$0 sm:$0xff]  ;;  %s4086_s5 = smov (!%p3454_p0), 96  }
 0xba1   : > { %v1410_v26 = vpop.permute.xlu0 %1409 }
 0xba2   : > { %v4504_v31 = vsel %vm69_vm0, %v4282_v18, %v1410_v26  ;;  %v4079_v18 = vmov 0.0  }
 0xba3   : > { %3802 = vmatprep.subr.mxu1 %v4504_v31  ;;  %1626 = vmatprep.subr.mxu0 %v4079_v18 }
 0xba4   : > { %3803 = vmatpush3.msra.mxu1 %v4504_v31 }
 0xba5   : > { %v1408_v38 = vpop.permute.xlu0 %1407 }
 0xba6   : > { %v4510_v52 = vsel %vm69_vm0, %v4280_v17, %v1408_v38  ;;  %v1604_v17 = vld [vmem:[%s5056_s24 + $0x78] sm:$0xff] }
 0xba7   : > { %3804 = vmatprep.subr.mxu1 %v4510_v52  ;;  %1627 = vmatpush1.msra.mxu0 %v1604_v17 }
 0xba8   : > { %3805 = vmatpush3.msra.mxu1 %v4510_v52  ;;  %1628 = vmatprep.subr.mxu0 %v4079_v18 }
 0xba9   : > { %3807 = vmatmul.mubr.msk.f32.vlgmr.msra.gmra.mxu1 %vm1415_vm4, %v4213_v1  ;;  %3809 = vmatprep.subr.mxu1 %v4504_v31 }
 0xbaa   : > { %3810 = vmatpush3.msra.mxu1 %v4504_v31  ;;  %3813 = vmatprep.mubr.msk.f32.mxu1 %vm1415_vm4, %v4224_v3 }
 0xbab   : > { %3811 = vmatprep.subr.mxu1 %v4510_v52  ;;  %1629 = vmatpush1.msra.mxu0 %v1603_v53 }
 0xbac   : > { %3812 = vmatpush3.msra.mxu1 %v4510_v52  ;;  %1630 = vmatprep.subr.mxu0 %v4079_v18 }
 0xbad   : > { %3814 = vmatmul.mubr.msk.f32.vlgmr.msra.gmra.mxu1 %vm1415_vm4, %v4229_v4  ;;  %1631 = vmatpush1.msra.mxu0 %v1602_v54 }
 0xbae   : > { %1632 = vmatprep.subr.mxu0 %v4079_v18 }
 0xbaf   : > { %1633 = vmatpush1.msra.mxu0 %v1601_v55 }
 0xbb0   : > { %1634 = vmatprep.subr.mxu0 %v4079_v18 }
 0xbb1   : > { %1635 = vmatpush1.msra.mxu0 %v1600_v56 }
 0xbb2   : > { %1636 = vmatprep.subr.mxu0 %v4079_v18 }
 0xbb3   : > { %1637 = vmatpush1.msra.mxu0 %v1599_v57 }
 0xbb4   : > { %1638 = vmatprep.subr.mxu0 %v4079_v18 }
 0xbb5   : > { %1639 = vmatpush1.msra.mxu0 %v1598_v58 }
 0xbb6   : > { %1640 = vmatprep.subr.mxu0 %v4079_v18 }
 0xbb7   : > { %1641 = vmatpush1.msra.mxu0 %v1597_v59 }
 0xbb8   : > { %1642 = vmatprep.subr.mxu0 %v4079_v18 }
 0xbb9   : > { %1643 = vmatpush1.msra.mxu0 %v1596_v34 }
 0xbba   : > { %1644 = vmatprep.subr.mxu0 %v4079_v18 }
 0xbbb   : > { %1645 = vmatpush1.msra.mxu0 %v1595_v60 }
 0xbbc   : > { %1646 = vmatprep.subr.mxu0 %v4079_v18 }
 0xbbd   : > { %1647 = vmatpush1.msra.mxu0 %v1594_v61 }
 0xbbe   : > { %1648 = vmatprep.subr.mxu0 %v4079_v18 }
 0xbbf   : > { %1649 = vmatpush1.msra.mxu0 %v1593_v62 }
 0xbc0   : > { %1650 = vmatprep.subr.mxu0 %v4079_v18 }
 0xbc1   : > { %1651 = vmatpush1.msra.mxu0 %v1592_v63 }
 0xbc2   : > { %1652 = vmatprep.subr.mxu0 %v4079_v18 }
 0xbc3   : > { %1653 = vmatpush1.msra.mxu0 %v1591_v2 }
 0xbc4   : > { %1654 = vmatprep.subr.mxu0 %v4079_v18 }
 0xbc5   : > { %1655 = vmatpush1.msra.mxu0 %v1590_v19 }
 0xbc6   : > { %1656 = vmatprep.subr.mxu0 %v4079_v18 }
 0xbc7   : > { %1657 = vmatpush1.msra.mxu0 %v1589_v20 }
 0xbc8   : > { %1674 = vmatprep.subr.mxu0 %v4079_v18 }
 0xbc9   : > { %1675 = vmatpush2.msra.mxu0 %v1612_v21 }
 0xbca   : > { %1676 = vmatprep.subr.mxu0 %v4079_v18 }
 0xbcb   : > { %1677 = vmatpush2.msra.mxu0 %v1611_v22 }
 0xbcc   : > { %1678 = vmatprep.subr.mxu0 %v4079_v18 }
 0xbcd   : > { %1679 = vmatpush2.msra.mxu0 %v1610_v23 }
 0xbce   : > { %1680 = vmatprep.subr.mxu0 %v4079_v18 }
 0xbcf   : > { %1681 = vmatpush2.msra.mxu0 %v1609_v24 }
 0xbd0   : > { %1682 = vmatprep.subr.mxu0 %v4079_v18 }
 0xbd1   : > { %1683 = vmatpush2.msra.mxu0 %v1608_v25 }
 0xbd2   : > { %1684 = vmatprep.subr.mxu0 %v4079_v18 }
 0xbd3   : > { %1685 = vmatpush2.msra.mxu0 %v1607_v27 }
 0xbd4   : > { %1686 = vmatprep.subr.mxu0 %v4079_v18 }
 0xbd5   : > { %1687 = vmatpush2.msra.mxu0 %v1606_v28 }
 0xbd6   : > { %1688 = vmatprep.subr.mxu0 %v4079_v18 }
 0xbd7   : > { %1689 = vmatpush2.msra.mxu0 %v1605_v30 }
 0xc69   : > { %v3808_v32 = vpop.f32.mrf.mxu1 }
 0xc6b   : > { %v1488_v35 = vpop.f32.mrf.mxu1 }
 0xc6c   : > { %1580 = vrot.lane.b32.xlu1 %v1488_v35, %s4080_s6 }
 0xc6d   : > { %v3815_v36 = vpop.f32.mrf.mxu1 }
 0xc6f   : > { %v1569_v37 = vpop.f32.mrf.mxu1 }
 0xc70   : > { %1582 = vrot.lane.b32.xlu1 %v3808_v32, %s4080_s6  ;;  %3498 = vmatprep.mubr.msk.f32.mxu0 %vm1586_vm5, %v1569_v37 }
 0xcde   : > { %v1581_v40 = vpop.permute.xlu1 %1580 }
 0xcdf   : > { %v1587_v41 = vsel %vm1586_vm5, %v4510_v52, %v1581_v40 }
 0xce0   : > { %1691 = vmatmul.mubr.f32.vlgmr.msra.gmra.mxu0 %v1587_v41 }
 0xce1   : > { %3499 = vmatprep.mubr.msk.f32.mxu0 %vm1586_vm5, %v3815_v36 }
 0xce2   : > { %v1583_v42 = vpop.permute.xlu1 %1582 }
 0xce3   : > { %v1588_v43 = vsel %vm1586_vm5, %v4504_v31, %v1583_v42 }
 0xce4   : > { %1696 = vmatmul.mubr.f32.gmra.mxu0 %v1588_v43 }
 0xda0   : > { %v1692_v45 = vpop.f32.mrf.mxu0 }
 0xda1   : > { %v1693_v46 = vadd.f32 %v3497_v44, %v1692_v45 }
 0xda2   : > { %v1694_v47 = vpop.f32.mrf.mxu0 }
 0xda3   : > { %3986 = vtanh.f32 %v1693_v46  ;;  %v3500_v51 = vmul.f32 -1.442695, %v1693_v46 }
 0xda4   : > { %v1697_v48 = vpop.f32.mrf.mxu0 }
 0xda5   : > { %v1698_v49 = vadd.f32 %v3497_v44, %v1697_v48 }
 0xda6   : > { %v1699_v50 = vpop.f32.mrf.mxu0 }
 0xda7   : > { %3988 = vtanh.f32 %v1698_v49  ;;  %v3501_v39 = vmul.f32 -1.442695, %v1698_v49 }
 0xda8   : > { %3990 = vpow2.f32 %v3500_v51 }
 0xda9   : > { %3992 = vpow2.f32 %v3501_v39 }
 0xdb0   : > { %v3987_v33 = vpop.eup %3986 }
 0xdb1   : > { %1717 = vrot.lane.b32.xlu0 %v3987_v33, %s4081_s22 }
 0xdb4   : > { %v3989_v29 = vpop.eup %3988 }
 0xdb5   : > { %1719 = vrot.lane.b32.xlu1 %v3989_v29, %s4081_s22  ;;  %v3991_v26 = vpop.eup %3990 }
 0xdb6   : > { %v1707_v31 = vadd.f32 1.0, %v3991_v26  ;;  %v3993_v38 = vpop.eup %3992 }
 0xdb7   : > { %v1708_v52 = vadd.f32 1.0, %v3993_v38 }
 0xdb8   : > { %3994 = vrcp.f32 %v1707_v31 }
 0xdb9   : > { %3996 = vrcp.f32 %v1708_v52 }
 0xdc5   : > { %v3995_v54 = vpop.eup %3994 }
 0xdc6   : > { %v3997_v58 = vpop.eup %3996 }
 0xe23   : > { %v1718_v17 = vpop.permute.xlu0 %1717 }
 0xe24   : > { %v1723_v53 = vsub.f32 %v4498_v14, %v1718_v17 }
 0xe26   : > { %v1725_v55 = vmul.f32 %v3995_v54, %v1723_v53 }
 0xe27   : > { %v1720_v56 = vpop.permute.xlu1 %1719 }
 0xe28   : > { %v1724_v57 = vsub.f32 %v4492_v13, %v1720_v56  ;;  %1729 = vrot.lane.b32.xlu0 %v1725_v55, %s4078_s1 }
 0xe2a   : > { %v1726_v59 = vmul.f32 %v3997_v58, %v1724_v57 }
 0xe2c   : > { %1731 = vrot.lane.b32.xlu1 %v1726_v59, %s4078_s1 }
 0xe9a   : > { %v1730_v34 = vpop.permute.xlu0 %1729 }
 0xe9b   : > { %v1735_v60 = vadd.f32 %v3987_v33, %v1730_v34 }
 0xe9d   : > { %1739 = vrot.lane.b32.xlu0 %v1735_v60, %s4081_s22 }
 0xe9e   : > { %v1732_v61 = vpop.permute.xlu1 %1731 }
 0xe9f   : > { %v1736_v62 = vadd.f32 %v3989_v29, %v1732_v61 }
 0xea1   : > { %1741 = vrot.lane.b32.xlu1 %v1736_v62, %s4081_s22 }
 0xf0f   : > { %v4639_v14 = vpop.permute.xlu0 %1739 }
 0xf10   : > { %1745 = vst.msk [vmem:[#allocation2] sm:$0xff] %vm69_vm0, %v4639_v14  ;;  %1749 = sbr.rel (%p3454_p0) target bundleno = 6687 (0x1a1f), region = 100 }
 0xf13   : > { %v4643_v13 = vpop.permute.xlu1 %1741 }
 0xf14   : > { %1746 = vst.msk [vmem:[#allocation2 + $0x8] sm:$0xff] %vm69_vm0, %v4643_v13 }
 0xf15   : > { %v3508_v63 = vld [vmem:[%s5028_s11 + $0x38] sm:$0xff]  ;;  %v3507_v2 = vld [vmem:[%s5028_s11 + $0x30] sm:$0xff]  ;;  %v4082_v19 = vmov 0   ;;  %v3506_v20 = vld [vmem:[%s5028_s11 + $0x28] sm:$0xff]  ;;  %v4083_v35 = vmov 0.0   ;;  %vm4084_vm6 = vmmov 0  }
 0xf16   : > { %3998 = vset.pattern.permute.xlu0 %v4082_v19  ;;  %3816 = vmatprep.subr.mxu0 %v3508_v63  ;;  %v3505_v21 = vld [vmem:[%s5028_s11 + $0x20] sm:$0xff]  ;;  %v4666_v23 = vld [vmem:[#allocation2 + $0x10] sm:$0xff]  ;;  %v3504_v25 = vld [vmem:[%s5025_s8 + $0x18] sm:$0xff]  ;;  %vm1942_vm7 = vcmask 64512  }
 0xf17   : > { %1758 = vperm.xlu0 %3998, %v4244_v5   ;;  %3817 = vmatpush3.msra.mxu0 %v3508_v63  ;;  %v3503_v5 = vld [vmem:[%s5025_s8 + $0x10] sm:$0xff]  ;;  %v3510_v37 = vld [vmem:[%s5029_s12 + $0x1] ss:$0 sm:$0xff] }
 0xf18   : > { %3818 = vmatprep.subr.mxu0 %v3507_v2  ;;  %3999 = vset.pattern.permute.xlu1 %v4082_v19 }
 0xf19   : > { %3819 = vmatpush3.msra.mxu0 %v3507_v2  ;;  %3827 = vmatprep.subr.mxu1 %v4083_v35 }
 0xf1a   : > { %3820 = vmatprep.subr.mxu0 %v3506_v20  ;;  %3829 = vmatprep.mubr.msk.f32.mxu1 %vm4084_vm6, %v4083_v35 }
 0xf1b   : > { %1763 = vperm.xlu0 %3998, %v4246_v6   ;;  %3821 = vmatpush3.msra.mxu0 %v3506_v20  ;;  %v4674_v6 = vld [vmem:[#allocation2 + $0x18] sm:$0xff] }
 0xf1c   : > { %3822 = vmatprep.subr.mxu0 %v3505_v21 }
 0xf1d   : > { %3823 = vmatpush3.msra.mxu0 %v3505_v21 }
 0xf1e   : > { %3837 = vmatprep.subr.mxu0 %v4083_v35 }
 0xf92   : > { %v1759_v22 = vpop.permute.xlu0 %1758 }
 0xf93   : > { %v1766_v24 = vmul.f32 %v3503_v5, %v1759_v22 }
 0xf95   : > { %v4672_v27 = vadd.f32 %v1766_v24, %v4666_v23 }
 0xf96   : > { %v1764_v28 = vpop.permute.xlu0 %1763 }
 0xf97   : > { %v1767_v30 = vmul.f32 %v3504_v25, %v1764_v28  ;;  %3824 = vmatprep.mubr.msk.f32.mxu0 %vm69_vm0, %v4672_v27 }
 0xf99   : > { %v4679_v32 = vadd.f32 %v1767_v30, %v4674_v6 }
 0xf9b   : > { %3825 = vmatmul.mubr.msk.f32.vlgmr.msra.gmra.mxu0 %vm69_vm0, %v4679_v32 }
 0xf9c   : > { %3839 = vmatprep.mubr.msk.f32.mxu0 %vm4084_vm6, %v4083_v35 }
0x105b   : > { %v3826_v36 = vpop.f32.mrf.mxu0 }
0x105c   : > { %v4697_v42 = vadd.f32 %v3826_v36, %v3510_v37 }
0x105d   : > { %v1855_v40 = vpop.f32.mrf.mxu0 }
0x105e   : > { %v4692_v41 = vadd.f32 %v3510_v37, %v1855_v40 }
0x1060   : > { %2030 = vrot.lane.b32.xlu0 %v4692_v41, %s4085_s29  ;;  %1865 = vrot.lane.b32.xlu1 %v4692_v41, %s4086_s5 }
0x1064   : > { %2368 = vrot.lane.b32.xlu0 %v4697_v42, %s4087_s23  ;;  %2032 = vrot.lane.b32.xlu1 %v4692_v41, %s4087_s23 }
0x1068   : > { %2202 = vrot.lane.b32.xlu1 %v4697_v42, %s4086_s5 }
0x106c   : > { %2366 = vrot.lane.b32.xlu1 %v4697_v42, %s4085_s29 }
0x10d2   : > { %v1866_v43 = vpop.permute.xlu1 %1865  ;;  %v2031_v45 = vpop.permute.xlu0 %2030 }
0x10d3   : > { %3828 = vmatpush3.xpose.msk.msra.mxu1 %vm1415_vm4, %v1866_v43 }
0x10d4   : > { %3832 = vmatprep.subr.mxu1 %v4083_v35 }
0x10d6   : > { %3830 = vmatmul.mubr.msk.f32.vlgmr.msra.gmra.mxu1 %vm1415_vm4, %v4692_v41  ;;  %v2033_v44 = vpop.permute.xlu1 %2032  ;;  %v2369_v47 = vpop.permute.xlu0 %2368 }
0x10d7   : > { %3838 = vmatpush3.xpose.msk.msra.mxu0 %vm1415_vm4, %v2033_v44  ;;  %3834 = vmatprep.mubr.msk.f32.mxu1 %vm4084_vm6, %v4083_v35 }
0x10d8   : > { %3847 = vmatprep.subr.mxu0 %v4083_v35 }
0x10da   : > { %3840 = vmatmul.mubr.msk.f32.vlgmr.msra.gmra.mxu0 %vm1415_vm4, %v2031_v45  ;;  %v2203_v46 = vpop.permute.xlu1 %2202 }
0x10db   : > { %3848 = vmatpush3.xpose.msk.msra.mxu0 %vm1415_vm4, %v2203_v46  ;;  %3849 = vmatprep.mubr.msk.f32.mxu0 %vm4084_vm6, %v4083_v35 }
0x10dc   : > { %3857 = vmatprep.subr.mxu0 %v4083_v35 }
0x10de   : > { %3850 = vmatmul.mubr.msk.f32.vlgmr.msra.gmra.mxu0 %vm1415_vm4, %v4697_v42  ;;  %v2367_v48 = vpop.permute.xlu1 %2366 }
0x10df   : > { %3858 = vmatpush3.xpose.msk.msra.mxu0 %vm1415_vm4, %v2369_v47  ;;  %3859 = vmatprep.mubr.msk.f32.mxu0 %vm4084_vm6, %v4083_v35 }
0x10e2   : > { %3860 = vmatmul.mubr.msk.f32.vlgmr.msra.gmra.mxu0 %vm1415_vm4, %v2367_v48 }
0x1196   : > { %v1937_v49 = vpop.f32.mrf.mxu1 }
0x1197   : > { %v1941_v50 = vmul.f32 0.25, %v1937_v49 }
0x1198   : > { %v3831_v33 = vpop.f32.mrf.mxu1 }
0x1199   : > { %v1943_v29 = vsel %vm1942_vm7, %v1941_v50, -inf }
0x119a   : > { %1944 = vmax.xlane.f32.xlu0 %v1943_v29  ;;  %v2104_v51 = vpop.f32.mrf.mxu0 }
0x119b   : > { %v2108_v39 = vmul.f32 0.25, %v2104_v51 }
0x119c   : > { %v3841_v26 = vpop.f32.mrf.mxu0 }
0x119d   : > { %v2109_v31 = vsel %vm1942_vm7, %v2108_v39, -inf }
0x119e   : > { %2110 = vmax.xlane.f32.xlu1 %v2109_v31  ;;  %v2274_v38 = vpop.f32.mrf.mxu0 }
0x119f   : > { %v2278_v52 = vmul.f32 0.25, %v2274_v38  ;;  %v3528_v38 = vld [vmem:[%s5030_s13 + $0x38] sm:$0xff] }
0x11a0   : > { %v3851_v17 = vpop.f32.mrf.mxu0  ;;  %3867 = vmatprep.subr.mxu0 %v3528_v38 }
0x11a1   : > { %v2279_v53 = vsel %vm1942_vm7, %v2278_v52, -inf  ;;  %3868 = vmatpush3.msra.mxu0 %v3528_v38  ;;  %v3526_v17 = vld [vmem:[%s5030_s13 + $0x28] sm:$0xff] }
0x11a2   : > { %2280 = vmax.xlane.f32.xlu0 %v2279_v53  ;;  %v2440_v54 = vpop.f32.mrf.mxu0 }
0x11a3   : > { %v2444_v55 = vmul.f32 0.25, %v2440_v54 }
0x11a4   : > { %v3861_v56 = vpop.f32.mrf.mxu0 }
0x11a5   : > { %v2445_v57 = vsel %vm1942_vm7, %v2444_v55, -inf }
0x11a6   : > { %2446 = vmax.xlane.f32.xlu0 %v2445_v57 }
0x11af   : > { %1954 = vrot.lane.b32.xlu1 %v4692_v41, %s4088_s2 }
0x1223   : > { %v1945_v58 = vpop.xlane.xlu0 %1944 }
0x1224   : > { %v1946_v59 = vsub.f32 %v1941_v50, %v1945_v58 }
0x1226   : > { %v1947_v34 = vmul.f32 1.442695, %v1946_v59 }
0x1227   : > { %v2111_v60 = vpop.xlane.xlu1 %2110 }
0x1228   : > { %4000 = vpow2.f32 %v1947_v34  ;;  %v2112_v61 = vsub.f32 %v2108_v39, %v2111_v60 }
0x122a   : > { %v2113_v62 = vmul.f32 1.442695, %v2112_v61 }
0x122b   : > { %v2281_v63 = vpop.xlane.xlu0 %2280  ;;  %v1955_v2 = vpop.permute.xlu1 %1954 }
0x122c   : > { %4002 = vpow2.f32 %v2113_v62  ;;  %v2282_v19 = vsub.f32 %v2278_v52, %v2281_v63  ;;  %3833 = vmatpush3.msra.mxu1 %v1955_v2  ;;  %v3527_v52 = vld [vmem:[%s5030_s13 + $0x30] sm:$0xff]  ;;  %v3530_v2 = vld [vmem:[%s5031_s14 + $0x1] ss:$0 sm:$0xff] }
0x122d   : > { %3842 = vmatprep.subr.mxu1 %v4083_v35  ;;  %3869 = vmatprep.subr.mxu0 %v3527_v52 }
0x122e   : > { %v2283_v20 = vmul.f32 1.442695, %v2282_v19  ;;  %3870 = vmatpush3.msra.mxu0 %v3527_v52  ;;  %v3536_v52 = vld [vmem:[%s5032_s15 + $0x3] ss:$0 sm:$0xff] }
0x122f   : > { %v2447_v21 = vpop.xlane.xlu0 %2446  ;;  %3871 = vmatprep.subr.mxu0 %v3526_v17 }
0x1230   : > { %4004 = vpow2.f32 %v2283_v20  ;;  %v2448_v5 = vsub.f32 %v2444_v55, %v2447_v21  ;;  %3872 = vmatpush3.msra.mxu0 %v3526_v17 }
0x1232   : > { %v2449_v22 = vmul.f32 1.442695, %v2448_v5 }
0x1234   : > { %4006 = vpow2.f32 %v2449_v22 }
0x1235   : > { %v4001_v24 = vpop.eup %4000 }
0x1236   : > { %v1949_v25 = vsel %vm1942_vm7, %v4001_v24, 0.0 }
0x1237   : > { %1950 = vadd.xlane.f32.xlu1 %v1949_v25 }
0x1239   : > { %v4003_v28 = vpop.eup %4002 }
0x123a   : > { %v2115_v30 = vsel %vm1942_vm7, %v4003_v28, 0.0 }
0x123b   : > { %2116 = vadd.xlane.f32.xlu0 %v2115_v30 }
0x123d   : > { %v4005_v36 = vpop.eup %4004 }
0x123e   : > { %v2285_v37 = vsel %vm1942_vm7, %v4005_v36, 0.0 }
0x123f   : > { %2286 = vadd.xlane.f32.xlu1 %v2285_v37 }
0x1241   : > { %v4007_v40 = vpop.eup %4006 }
0x1242   : > { %v2451_v43 = vsel %vm1942_vm7, %v4007_v40, 0.0 }
0x1243   : > { %2452 = vadd.xlane.f32.xlu0 %v2451_v43 }
0x1250   : > { %2290 = vrot.lane.b32.xlu1 %v4697_v42, %s4088_s2 }
0x1254   : > { %2456 = vrot.lane.b32.xlu1 %v4697_v42, %s4089_s25 }
0x1259   : > { %2120 = vrot.lane.b32.xlu0 %v4692_v41, %s4089_s25 }
0x12c0   : > { %v1951_v44 = vpop.xlane.xlu1 %1950 }
0x12c1   : > { %4008 = vrcp.f32 %v1951_v44 }
0x12c4   : > { %v2117_v45 = vpop.xlane.xlu0 %2116 }
0x12c5   : > { %4010 = vrcp.f32 %v2117_v45 }
0x12c8   : > { %v2287_v46 = vpop.xlane.xlu1 %2286 }
0x12c9   : > { %4012 = vrcp.f32 %v2287_v46 }
0x12cc   : > { %v2453_v47 = vpop.xlane.xlu0 %2452  ;;  %v2291_v42 = vpop.permute.xlu1 %2290 }
0x12cd   : > { %4014 = vrcp.f32 %v2453_v47 }
0x12ce   : > { %v4009_v48 = vpop.eup %4008 }
0x12cf   : > { %v1953_v49 = vmul.f32 %v4009_v48, %v4001_v24  ;;  %v3539_v48 = vld [vmem:[%s5033_s16 + $0x50] sm:$0xff] }
0x12d0   : > { %v2121_v50 = vpop.permute.xlu0 %2120  ;;  %v2457_v39 = vpop.permute.xlu1 %2456 }
0x12d1   : > { %3835 = vmatmul.mubr.msk.f32.vlgmr.msra.gmra.mxu1 %vm1942_vm7, %v1953_v49  ;;  %v3538_v49 = vld [vmem:[%s5033_s16 + $0x48] sm:$0xff] }
0x12d2   : > { %v4011_v33 = vpop.eup %4010  ;;  %3843 = vmatpush3.msra.mxu1 %v2121_v50  ;;  %3844 = vmatprep.mubr.msk.f32.mxu1 %vm4084_vm6, %v4083_v35  ;;  %v3537_v50 = vld [vmem:[%s5033_s16 + $0x40] sm:$0xff] }
0x12d3   : > { %3852 = vmatprep.subr.mxu1 %v4083_v35  ;;  %v2119_v41 = vmul.f32 %v4011_v33, %v4003_v28 }
0x12d5   : > { %3845 = vmatmul.mubr.msk.f32.vlgmr.msra.gmra.mxu1 %vm1942_vm7, %v2119_v41 }
0x12d6   : > { %v4013_v29 = vpop.eup %4012  ;;  %3853 = vmatpush3.msra.mxu1 %v2291_v42  ;;  %3854 = vmatprep.mubr.msk.f32.mxu1 %vm4084_vm6, %v4083_v35 }
0x12d7   : > { %3862 = vmatprep.subr.mxu1 %v4083_v35  ;;  %v2289_v51 = vmul.f32 %v4013_v29, %v4005_v36 }
0x12d9   : > { %3855 = vmatmul.mubr.msk.f32.vlgmr.msra.gmra.mxu1 %vm1942_vm7, %v2289_v51 }
0x12da   : > { %v4015_v26 = vpop.eup %4014  ;;  %3863 = vmatpush3.msra.mxu1 %v2457_v39  ;;  %3864 = vmatprep.mubr.msk.f32.mxu1 %vm4084_vm6, %v4083_v35  ;;  %v3525_v35 = vld [vmem:[%s5030_s13 + $0x20] sm:$0xff] }
0x12db   : > { %v2455_v31 = vmul.f32 %v4015_v26, %v4007_v40  ;;  %3873 = vmatprep.subr.mxu0 %v3525_v35 }
0x12dc   : > { %3874 = vmatpush3.msra.mxu0 %v3525_v35 }
0x12dd   : > { %3865 = vmatmul.mubr.msk.f32.vlgmr.msra.gmra.mxu1 %vm1942_vm7, %v2455_v31  ;;  %v3535_v31 = vld [vmem:[%s5032_s15 + $0x2] ss:$0 sm:$0xff] }
0x1391   : > { %v2026_v53 = vpop.f32.mrf.mxu1 }
0x1393   : > { %v3836_v54 = vpop.f32.mrf.mxu1 }
0x1395   : > { %v2192_v55 = vpop.f32.mrf.mxu1 }
0x1396   : > { %2197 = vrot.lane.b32.xlu0 %v2192_v55, %s4090_s3 }
0x1397   : > { %v3846_v56 = vpop.f32.mrf.mxu1 }
0x1399   : > { %v2362_v57 = vpop.f32.mrf.mxu1 }
0x139b   : > { %v3856_v58 = vpop.f32.mrf.mxu1 }
0x139c   : > { %v3547_v58 = vld [vmem:[%s5033_s16 + $0x70] sm:$0xff] }
0x139d   : > { %v2528_v59 = vpop.f32.mrf.mxu1 }
0x139e   : > { %2533 = vrot.lane.b32.xlu1 %v2528_v59, %s4090_s3  ;;  %v3546_v59 = vld [vmem:[%s5033_s16 + $0x68] sm:$0xff] }
0x139f   : > { %v3866_v34 = vpop.f32.mrf.mxu1 }
0x13a0   : > { %v3545_v34 = vld [vmem:[%s5033_s16 + $0x60] sm:$0xff] }
0x1408   : > { %v2198_v60 = vpop.permute.xlu0 %2197 }
0x1409   : > { %v2200_v61 = vsel %vm1415_vm4, %v2026_v53, %v2198_v60  ;;  %v3542_v60 = vld [vmem:[%s5034_s17 + $0x2] ss:$0 sm:$0xff] }
0x140a   : > { %3875 = vmatprep.mubr.msk.f32.mxu0 %vm69_vm0, %v2200_v61 }
0x1410   : > { %v2534_v62 = vpop.permute.xlu1 %2533 }
0x1411   : > { %v2536_v63 = vsel %vm1415_vm4, %v2362_v57, %v2534_v62  ;;  %v3548_v57 = vld [vmem:[%s5033_s16 + $0x78] sm:$0xff] }
0x1412   : > { %3876 = vmatmul.mubr.msk.f32.vlgmr.msra.gmra.mxu0 %vm69_vm0, %v2536_v63  ;;  %3889 = vmatprep.subr.mxu0 %v3548_v57 }
0x1413   : > { %3890 = vmatpush3.msra.mxu0 %v3548_v57 }
0x1414   : > { %3891 = vmatprep.subr.mxu0 %v3547_v58 }
0x1415   : > { %3892 = vmatpush3.msra.mxu0 %v3547_v58  ;;  %v3562_v58 = vld [vmem:[%s5037_s20 + $0x1] ss:$0 sm:$0xff] }
0x1416   : > { %3893 = vmatprep.subr.mxu0 %v3546_v59 }
0x1417   : > { %3894 = vmatpush3.msra.mxu0 %v3546_v59 }
0x1418   : > { %3895 = vmatprep.subr.mxu0 %v3545_v34 }
0x1419   : > { %3896 = vmatpush3.msra.mxu0 %v3545_v34 }
0x14d2   : > { %v3877_v19 = vpop.f32.mrf.mxu0 }
0x14d3   : > { %v2628_v20 = vadd.f32 %v3877_v19, %v3530_v2 }
0x14d4   : > { %v2622_v21 = vpop.f32.mrf.mxu0 }
0x14d5   : > { %v2623_v5 = vadd.f32 %v3530_v2, %v2622_v21  ;;  %v2632_v22 = vadd.f32 %v2628_v20, %v4679_v32  ;;  %v3550_v21 = vld [vmem:[%s5034_s17 + $0x3] ss:$0 sm:$0xff] }
0x14d7   : > { %v2640_v24 = vsel %vm69_vm0, %v2632_v22, 0.0  ;;  %v2631_v25 = vadd.f32 %v2623_v5, %v4672_v27  ;;  %v3540_v27 = vld [vmem:[%s5033_s16 + $0x58] sm:$0xff] }
0x14d8   : > { %2641 = vadd.xlane.f32.xlu1 %v2640_v24  ;;  %3878 = vmatprep.subr.mxu1 %v3540_v27 }
0x14d9   : > { %v2637_v28 = vsel %vm69_vm0, %v2631_v25, 0.0  ;;  %3879 = vmatpush3.msra.mxu1 %v3540_v27 }
0x14da   : > { %2638 = vadd.xlane.f32.xlu0 %v2637_v28  ;;  %3880 = vmatprep.subr.mxu1 %v3539_v48 }
0x14db   : > { %3881 = vmatpush3.msra.mxu1 %v3539_v48 }
0x14dc   : > { %3882 = vmatprep.subr.mxu1 %v3538_v49 }
0x14dd   : > { %3883 = vmatpush3.msra.mxu1 %v3538_v49 }
0x14de   : > { %3884 = vmatprep.subr.mxu1 %v3537_v50 }
0x14df   : > { %3885 = vmatpush3.msra.mxu1 %v3537_v50  ;;  %v3560_v50 = vld [vmem:[%s5036_s19 + $0x38] sm:$0xff] }
0x14e0   : > { %3900 = vmatprep.subr.mxu1 %v3560_v50 }
0x1561   : > { %v2642_v30 = vpop.xlane.xlu1 %2641 }
0x1562   : > { %v2645_v36 = vmul.f32 0.03125, %v2642_v30 }
0x1563   : > { %v2639_v37 = vpop.xlane.xlu0 %2638 }
0x1564   : > { %v2644_v40 = vmul.f32 0.03125, %v2639_v37  ;;  %v2647_v43 = vsub.f32 %v2632_v22, %v2645_v36 }
0x1566   : > { %v2646_v44 = vsub.f32 %v2631_v25, %v2644_v40  ;;  %v2649_v47 = vmul.f32 %v2647_v43, %v2647_v43 }
0x1568   : > { %v2648_v45 = vmul.f32 %v2646_v44, %v2646_v44  ;;  %v2653_v32 = vsel %vm69_vm0, %v2649_v47, 0.0 }
0x156a   : > { %v2650_v46 = vsel %vm69_vm0, %v2648_v45, 0.0 }
0x156b   : > { %2651 = vadd.xlane.f32.xlu0 %v2650_v46 }
0x156f   : > { %2654 = vadd.xlane.f32.xlu0 %v2653_v32 }
0x15f4   : > { %v2652_v33 = vpop.xlane.xlu0 %2651 }
0x15f5   : > { %v2656_v42 = vmul.f32 0.03125, %v2652_v33  ;;  %v3559_v33 = vld [vmem:[%s5036_s19 + $0x30] sm:$0xff] }
0x15f7   : > { %v2658_v41 = vadd.f32 1e-05, %v2656_v42  ;;  %v3558_v42 = vld [vmem:[%s5036_s19 + $0x28] sm:$0xff] }
0x15f8   : > { %v2655_v29 = vpop.xlane.xlu0 %2654 }
0x15f9   : > { %4016 = vrsqrt.f32 %v2658_v41  ;;  %v2657_v51 = vmul.f32 0.03125, %v2655_v29  ;;  %v3557_v41 = vld [vmem:[%s5036_s19 + $0x20] sm:$0xff] }
0x15fb   : > { %v2659_v39 = vadd.f32 1e-05, %v2657_v51 }
0x15fd   : > { %4018 = vrsqrt.f32 %v2659_v39 }
0x1606   : > { %v4017_v26 = vpop.eup %4016 }
0x1607   : > { %v2662_v38 = vmul.f32 %v4017_v26, %v2646_v44 }
0x1609   : > { %v2670_v17 = vmul.f32 %v3535_v31, %v2662_v38 }
0x160a   : > { %v4019_v35 = vpop.eup %4018 }
0x160b   : > { %v2663_v53 = vmul.f32 %v4019_v35, %v2647_v43  ;;  %v2678_v54 = vadd.f32 %v3536_v52, %v2670_v17 }
0x160d   : > { %v2671_v55 = vmul.f32 %v3535_v31, %v2663_v53  ;;  %3886 = vmatprep.mubr.msk.f32.mxu1 %vm69_vm0, %v2678_v54 }
0x160f   : > { %v2679_v56 = vadd.f32 %v3536_v52, %v2671_v55  ;;  %v3555_v52 = vld [vmem:[%s5035_s18 + $0x2] ss:$0 sm:$0xff] }
0x1611   : > { %3887 = vmatmul.mubr.msk.f32.vlgmr.msra.gmra.mxu1 %vm69_vm0, %v2679_v56 }
0x1612   : > { %3901 = vmatpush3.msra.mxu1 %v3560_v50 }
0x1613   : > { %3902 = vmatprep.subr.mxu1 %v3559_v33 }
0x1614   : > { %3903 = vmatpush3.msra.mxu1 %v3559_v33 }
0x1615   : > { %3904 = vmatprep.subr.mxu1 %v3558_v42 }
0x1616   : > { %3905 = vmatpush3.msra.mxu1 %v3558_v42 }
0x1617   : > { %3906 = vmatprep.subr.mxu1 %v3557_v41 }
0x1618   : > { %3907 = vmatpush3.msra.mxu1 %v3557_v41 }
0x16d1   : > { %v3888_v61 = vpop.f32.mrf.mxu1 }
0x16d2   : > { %v2771_v62 = vadd.f32 %v3888_v61, %v3542_v60 }
0x16d3   : > { %v2765_v63 = vpop.f32.mrf.mxu1 }
0x16d4   : > { %v2766_v2 = vadd.f32 %v3542_v60, %v2765_v63  ;;  %v2775_v20 = vmax.f32 %v2771_v62, 0.0 }
0x16d6   : > { %v2774_v19 = vmax.f32 %v2766_v2, 0.0 }
0x16d8   : > { %3897 = vmatprep.mubr.msk.f32.mxu0 %vm69_vm0, %v2774_v19 }
0x16d9   : > { %3898 = vmatmul.mubr.msk.f32.vlgmr.msra.gmra.mxu0 %vm69_vm0, %v2775_v20 }
0x1799   : > { %v3899_v5 = vpop.f32.mrf.mxu0 }
0x179a   : > { %v2867_v22 = vadd.f32 %v3899_v5, %v3550_v21 }
0x179b   : > { %v2861_v24 = vpop.f32.mrf.mxu0 }
0x179c   : > { %v2862_v25 = vadd.f32 %v3550_v21, %v2861_v24  ;;  %v2871_v28 = vadd.f32 %v2867_v22, %v2679_v56 }
0x179e   : > { %v2879_v30 = vsel %vm69_vm0, %v2871_v28, 0.0  ;;  %v2870_v36 = vadd.f32 %v2862_v25, %v2678_v54 }
0x179f   : > { %2880 = vadd.xlane.f32.xlu0 %v2879_v30 }
0x17a0   : > { %v2876_v37 = vsel %vm69_vm0, %v2870_v36, 0.0 }
0x17a1   : > { %2877 = vadd.xlane.f32.xlu1 %v2876_v37 }
0x1828   : > { %v2881_v40 = vpop.xlane.xlu0 %2880 }
0x1829   : > { %v2883_v43 = vmul.f32 0.03125, %v2881_v40 }
0x182a   : > { %v2878_v44 = vpop.xlane.xlu1 %2877 }
0x182b   : > { %v2885_v45 = vsub.f32 %v2871_v28, %v2883_v43  ;;  %v2882_v46 = vmul.f32 0.03125, %v2878_v44 }
0x182d   : > { %v2884_v47 = vsub.f32 %v2870_v36, %v2882_v46  ;;  %v2887_v32 = vmul.f32 %v2885_v45, %v2885_v45 }
0x182f   : > { %v2891_v27 = vsel %vm69_vm0, %v2887_v32, 0.0  ;;  %v2886_v48 = vmul.f32 %v2884_v47, %v2884_v47 }
0x1830   : > { %2892 = vadd.xlane.f32.xlu0 %v2891_v27 }
0x1831   : > { %v2888_v49 = vsel %vm69_vm0, %v2886_v48, 0.0 }
0x1832   : > { %2889 = vadd.xlane.f32.xlu1 %v2888_v49 }
0x1843   : > { %3026 = vperm.xlu1 %3999, %v4248_v7  }
0x1847   : > { %3031 = vperm.xlu1 %3999, %v4256_v8   ;;  %v3556_v8 = vld [vmem:[%s5035_s18 + $0x3] ss:$0 sm:$0xff] }
0x18b9   : > { %v2893_v29 = vpop.xlane.xlu0 %2892 }
0x18ba   : > { %v2895_v51 = vmul.f32 0.03125, %v2893_v29 }
0x18bb   : > { %v2890_v39 = vpop.xlane.xlu1 %2889 }
0x18bc   : > { %v2897_v26 = vadd.f32 1e-05, %v2895_v51  ;;  %v2894_v31 = vmul.f32 0.03125, %v2890_v39 }
0x18be   : > { %4020 = vrsqrt.f32 %v2897_v26  ;;  %v2896_v38 = vadd.f32 1e-05, %v2894_v31 }
0x18bf   : > { %v3027_v62 = vpop.permute.xlu1 %3026 }
0x18c0   : > { %4022 = vrsqrt.f32 %v2896_v38  ;;  %v3034_v24 = vmul.f32 %v3027_v62, %v4666_v23 }
0x18c3   : > { %v3032_v63 = vpop.permute.xlu1 %3031 }
0x18c4   : > { %v3035_v36 = vmul.f32 %v3032_v63, %v4674_v6 }
0x18cb   : > { %v4021_v7 = vpop.eup %4020 }
0x18cc   : > { %v2901_v17 = vmul.f32 %v4021_v7, %v2885_v45 }
0x18cd   : > { %v4023_v35 = vpop.eup %4022 }
0x18ce   : > { %v2900_v53 = vmul.f32 %v4023_v35, %v2884_v47  ;;  %v2909_v54 = vmul.f32 %v3555_v52, %v2901_v17 }
0x18d0   : > { %v2908_v55 = vmul.f32 %v3555_v52, %v2900_v53  ;;  %v2917_v57 = vadd.f32 %v3556_v8, %v2909_v54 }
0x18d2   : > { %v2916_v56 = vadd.f32 %v3556_v8, %v2908_v55 }
0x18d4   : > { %3908 = vmatprep.mubr.msk.f32.mxu1 %vm69_vm0, %v2916_v56 }
0x18d5   : > { %3909 = vmatmul.mubr.msk.f32.vlgmr.msra.gmra.mxu1 %vm69_vm0, %v2917_v57 }
0x1995   : > { %v3910_v59 = vpop.f32.mrf.mxu1 }
0x1996   : > { %v3009_v34 = vadd.f32 %v3910_v59, %v3562_v58 }
0x1997   : > { %v3003_v60 = vpop.f32.mrf.mxu1 }
0x1998   : > { %v3004_v61 = vadd.f32 %v3562_v58, %v3003_v60  ;;  %3016 = vrot.lane.b32.xlu0 %v3009_v34, %s4086_s5 }
0x199a   : > { %3014 = vrot.lane.b32.xlu1 %v3004_v61, %s4086_s5 }
0x199c   : > { %3038 = vperm.xlu0 %3998, %v4258_v9  }
0x199e   : > { %3043 = vperm.xlu1 %3999, %v4260_v10  }
0x1a0a   : > { %v3017_v19 = vpop.permute.xlu0 %3016 }
0x1a0b   : > { %v3021_v21 = vmul.f32 %v3017_v19, %v4278_v16 }
0x1a0c   : > { %v3015_v2 = vpop.permute.xlu1 %3014 }
0x1a0d   : > { %v3020_v20 = vmul.f32 %v3015_v2, %v4276_v15  ;;  %v3023_v28 = vadd.f32 %v3021_v21, %v3009_v34 }
0x1a0f   : > { %v3022_v5 = vadd.f32 %v3020_v20, %v3004_v61 }
0x1a17   : > { %v3039_v22 = vpop.permute.xlu0 %3038 }
0x1a18   : > { %v3046_v25 = vmul.f32 %v3039_v22, %v3022_v5 }
0x1a19   : > { %v3044_v30 = vpop.permute.xlu1 %3043 }
0x1a1a   : > { %v3048_v9 = vadd.f32 %v3046_v25, %v3034_v24  ;;  %v3047_v37 = vmul.f32 %v3044_v30, %v3023_v28 }
0x1a1c   : > { %3050 = vst.msk [vmem:[#allocation2 + $0x10] sm:$0xff] %vm69_vm0, %v3048_v9  ;;  %v3049_v10 = vadd.f32 %v3047_v37, %v3035_v36 }
0x1a1e   : > { %3051 = vst.msk [vmem:[#allocation2 + $0x18] sm:$0xff] %vm69_vm0, %v3049_v10 }
0x1a1f PF: > { %3915 = vmatprep.mubr.msk.f32.mxu1 %vm1415_vm4, %v4208_v0  ;;  %3264 = vmatprep.subr.mxu0 %v4079_v18  ;;  %s5058_s7 = sld [smem:[#allocation12_spill]]  ;;  %v4091_v59 = vmov 0   ;;  %vm3385_vm8 = vcmp.gt.f32.partialorder %v4268_v11, 0.5  ;;  %vm3386_vm9 = vcmp.gt.f32.partialorder %v4270_v12, 0.5  ;;  %s85_s0 = sadd.s32 1, %s4066_s0  }
0x1a20   : > { %4025 = vset.pattern.permute.xlu1 %v4091_v59  ;;  %4024 = vset.pattern.permute.xlu0 %v4091_v59  ;;  %v3389_v21 = vsel %vm3385_vm8, 1, %v4091_v59  ;;  %v3390_v22 = vsel %vm3386_vm9, 1, %v4091_v59  ;;  %p82_p1 = scmp.ge.s32.totalorder %s85_s0, 6  }
0x1a23   : > { %v4861_v16 = vld [vmem:[#allocation2 + $0x10] sm:$0xff] }
0x1a25   : > { %v4854_v15 = vld [vmem:[#allocation2 + $0x18] sm:$0xff]  ;;  %v3582_v44 = vld [vmem:[%s5058_s7 + $0x128] sm:$0xff]  ;;  %v3581_v45 = vld [vmem:[%s5058_s7 + $0x120] sm:$0xff] }
0x1a26   : > { %3059 = vrot.lane.b32.xlu0 %v4854_v15, %s4078_s1  ;;  %v3580_v46 = vld [vmem:[%s5058_s7 + $0x118] sm:$0xff]  ;;  %v3579_v47 = vld [vmem:[%s5058_s7 + $0x110] sm:$0xff]  ;;  %v3578_v32 = vld [vmem:[%s5058_s7 + $0x108] sm:$0xff] }
0x1a27   : > { %v3577_v27 = vld [vmem:[%s5058_s7 + $0x100] sm:$0xff]  ;;  %v3576_v48 = vld [vmem:[%s5058_s7 + $0xf8] sm:$0xff]  ;;  %v3575_v49 = vld [vmem:[%s5058_s7 + $0xf0] sm:$0xff] }
0x1a28   : > { %v3574_v50 = vld [vmem:[%s5058_s7 + $0xe8] sm:$0xff]  ;;  %v3573_v33 = vld [vmem:[%s5058_s7 + $0xe0] sm:$0xff]  ;;  %v3572_v42 = vld [vmem:[%s5058_s7 + $0xd8] sm:$0xff] }
0x1a29   : > { %v3571_v41 = vld [vmem:[%s5058_s7 + $0xd0] sm:$0xff]  ;;  %v3570_v29 = vld [vmem:[%s5058_s7 + $0xc8] sm:$0xff]  ;;  %v3569_v51 = vld [vmem:[%s5058_s7 + $0xc0] sm:$0xff] }
0x1a2a   : > { %3057 = vrot.lane.b32.xlu0 %v4861_v16, %s4078_s1  ;;  %v3592_v39 = vld [vmem:[%s5058_s7 + $0x178] sm:$0xff]  ;;  %v3591_v26 = vld [vmem:[%s5058_s7 + $0x170] sm:$0xff]  ;;  %v3590_v31 = vld [vmem:[%s5058_s7 + $0x168] sm:$0xff] }
0x1a2b   : > { %v3589_v38 = vld [vmem:[%s5058_s7 + $0x160] sm:$0xff]  ;;  %v3588_v7 = vld [vmem:[%s5058_s7 + $0x158] sm:$0xff]  ;;  %v3587_v52 = vld [vmem:[%s5058_s7 + $0x150] sm:$0xff] }
0x1a2c   : > { %v3586_v17 = vld [vmem:[%s5058_s7 + $0x148] sm:$0xff]  ;;  %v3585_v35 = vld [vmem:[%s5058_s7 + $0x140] sm:$0xff] }
0x1a98   : > { %v3060_v23 = vpop.permute.xlu0 %3059 }
0x1a99   : > { %v4867_v6 = vsel %vm69_vm0, %v4643_v13, %v3060_v23  ;;  %v3583_v13 = vld [vmem:[%s5058_s7 + $0x130] sm:$0xff] }
0x1a9a   : > { %3911 = vmatprep.subr.mxu1 %v4867_v6 }
0x1a9b   : > { %3912 = vmatpush3.msra.mxu1 %v4867_v6 }
0x1a9c   : > { %v3058_v40 = vpop.permute.xlu0 %3057 }
0x1a9d   : > { %v4873_v43 = vsel %vm69_vm0, %v4639_v14, %v3058_v40  ;;  %v3584_v14 = vld [vmem:[%s5058_s7 + $0x138] sm:$0xff] }
0x1a9e   : > { %3913 = vmatprep.subr.mxu1 %v4873_v43  ;;  %3265 = vmatpush1.msra.mxu0 %v3584_v14 }
0x1a9f   : > { %3914 = vmatpush3.msra.mxu1 %v4873_v43  ;;  %3266 = vmatprep.subr.mxu0 %v4079_v18 }
0x1aa0   : > { %3916 = vmatmul.mubr.msk.f32.vlgmr.msra.gmra.mxu1 %vm1415_vm4, %v4213_v1  ;;  %3918 = vmatprep.subr.mxu1 %v4867_v6 }
0x1aa1   : > { %3919 = vmatpush3.msra.mxu1 %v4867_v6  ;;  %3922 = vmatprep.mubr.msk.f32.mxu1 %vm1415_vm4, %v4224_v3 }
0x1aa2   : > { %3920 = vmatprep.subr.mxu1 %v4873_v43  ;;  %3267 = vmatpush1.msra.mxu0 %v3583_v13  ;;  %v3388_v13 = vld [vmem:[#allocation3 + $0x8] sm:$0xff] }
0x1aa3   : > { %3921 = vmatpush3.msra.mxu1 %v4873_v43  ;;  %3268 = vmatprep.subr.mxu0 %v4079_v18 }
0x1aa4   : > { %3923 = vmatmul.mubr.msk.f32.vlgmr.msra.gmra.mxu1 %vm1415_vm4, %v4229_v4  ;;  %3269 = vmatpush1.msra.mxu0 %v3582_v44 }
0x1aa5   : > { %3270 = vmatprep.subr.mxu0 %v4079_v18 }
0x1aa6   : > { %3271 = vmatpush1.msra.mxu0 %v3581_v45 }
0x1aa7   : > { %3272 = vmatprep.subr.mxu0 %v4079_v18 }
0x1aa8   : > { %3273 = vmatpush1.msra.mxu0 %v3580_v46 }
0x1aa9   : > { %3274 = vmatprep.subr.mxu0 %v4079_v18 }
0x1aaa   : > { %3275 = vmatpush1.msra.mxu0 %v3579_v47 }
0x1aab   : > { %3276 = vmatprep.subr.mxu0 %v4079_v18 }
0x1aac   : > { %3277 = vmatpush1.msra.mxu0 %v3578_v32 }
0x1aad   : > { %3278 = vmatprep.subr.mxu0 %v4079_v18 }
0x1aae   : > { %3279 = vmatpush1.msra.mxu0 %v3577_v27 }
0x1aaf   : > { %3280 = vmatprep.subr.mxu0 %v4079_v18 }
0x1ab0   : > { %3281 = vmatpush1.msra.mxu0 %v3576_v48 }
0x1ab1   : > { %3282 = vmatprep.subr.mxu0 %v4079_v18 }
0x1ab2   : > { %3283 = vmatpush1.msra.mxu0 %v3575_v49 }
0x1ab3   : > { %3284 = vmatprep.subr.mxu0 %v4079_v18 }
0x1ab4   : > { %3285 = vmatpush1.msra.mxu0 %v3574_v50 }
0x1ab5   : > { %3286 = vmatprep.subr.mxu0 %v4079_v18 }
0x1ab6   : > { %3287 = vmatpush1.msra.mxu0 %v3573_v33 }
0x1ab7   : > { %3288 = vmatprep.subr.mxu0 %v4079_v18 }
0x1ab8   : > { %3289 = vmatpush1.msra.mxu0 %v3572_v42 }
0x1ab9   : > { %3290 = vmatprep.subr.mxu0 %v4079_v18 }
0x1aba   : > { %3291 = vmatpush1.msra.mxu0 %v3571_v41 }
0x1abb   : > { %3292 = vmatprep.subr.mxu0 %v4079_v18 }
0x1abc   : > { %3293 = vmatpush1.msra.mxu0 %v3570_v29 }
0x1abd   : > { %3294 = vmatprep.subr.mxu0 %v4079_v18 }
0x1abe   : > { %3295 = vmatpush1.msra.mxu0 %v3569_v51 }
0x1abf   : > { %3312 = vmatprep.subr.mxu0 %v4079_v18 }
0x1ac0   : > { %3313 = vmatpush2.msra.mxu0 %v3592_v39 }
0x1ac1   : > { %3314 = vmatprep.subr.mxu0 %v4079_v18 }
0x1ac2   : > { %3315 = vmatpush2.msra.mxu0 %v3591_v26 }
0x1ac3   : > { %3316 = vmatprep.subr.mxu0 %v4079_v18 }
0x1ac4   : > { %3317 = vmatpush2.msra.mxu0 %v3590_v31 }
0x1ac5   : > { %3318 = vmatprep.subr.mxu0 %v4079_v18 }
0x1ac6   : > { %3319 = vmatpush2.msra.mxu0 %v3589_v38 }
0x1ac7   : > { %3320 = vmatprep.subr.mxu0 %v4079_v18 }
0x1ac8   : > { %3321 = vmatpush2.msra.mxu0 %v3588_v7 }
0x1ac9   : > { %3322 = vmatprep.subr.mxu0 %v4079_v18 }
0x1aca   : > { %3323 = vmatpush2.msra.mxu0 %v3587_v52 }
0x1acb   : > { %3324 = vmatprep.subr.mxu0 %v4079_v18 }
0x1acc   : > { %3325 = vmatpush2.msra.mxu0 %v3586_v17 }
0x1acd   : > { %3326 = vmatprep.subr.mxu0 %v4079_v18 }
0x1ace   : > { %3327 = vmatpush2.msra.mxu0 %v3585_v35 }
0x1b60   : > { %v3917_v53 = vpop.f32.mrf.mxu1 }
0x1b62   : > { %v3131_v54 = vpop.f32.mrf.mxu1 }
0x1b63   : > { %3217 = vrot.lane.b32.xlu1 %v3131_v54, %s4080_s6 }
0x1b64   : > { %v3924_v8 = vpop.f32.mrf.mxu1 }
0x1b66   : > { %v3206_v55 = vpop.f32.mrf.mxu1 }
0x1b67   : > { %3219 = vrot.lane.b32.xlu1 %v3917_v53, %s4080_s6  ;;  %3595 = vmatprep.mubr.msk.f32.mxu0 %vm1586_vm5, %v3206_v55  ;;  %s5059_s6 = sld [smem:[#allocation13_spill]] }
0x1b6d   : > { %v3594_v34 = vld [vmem:[%s5059_s6 + $0x1] ss:$0 sm:$0xff] }
0x1bd5   : > { %v3218_v56 = vpop.permute.xlu1 %3217 }
0x1bd6   : > { %v3223_v57 = vsel %vm1586_vm5, %v4873_v43, %v3218_v56  ;;  %v3387_v43 = vld [vmem:[#allocation3] sm:$0xff] }
0x1bd7   : > { %3329 = vmatmul.mubr.f32.vlgmr.msra.gmra.mxu0 %v3223_v57 }
0x1bd8   : > { %3596 = vmatprep.mubr.msk.f32.mxu0 %vm1586_vm5, %v3924_v8 }
0x1bd9   : > { %v3220_v18 = vpop.permute.xlu1 %3219 }
0x1bda   : > { %v3224_v58 = vsel %vm1586_vm5, %v4867_v6, %v3220_v18 }
0x1bdb   : > { %3334 = vmatmul.mubr.f32.gmra.mxu0 %v3224_v58 }
0x1c97   : > { %v3330_v60 = vpop.f32.mrf.mxu0 }
0x1c98   : > { %v3331_v61 = vadd.f32 %v3594_v34, %v3330_v60 }
0x1c99   : > { %v3332_v62 = vpop.f32.mrf.mxu0 }
0x1c9a   : > { %4026 = vtanh.f32 %v3331_v61  ;;  %v3597_v24 = vmul.f32 -1.442695, %v3331_v61 }
0x1c9b   : > { %v3335_v63 = vpop.f32.mrf.mxu0 }
0x1c9c   : > { %v3336_v2 = vadd.f32 %v3594_v34, %v3335_v63 }
0x1c9d   : > { %v3337_v19 = vpop.f32.mrf.mxu0 }
0x1c9e   : > { %4028 = vtanh.f32 %v3336_v2  ;;  %v3598_v25 = vmul.f32 -1.442695, %v3336_v2 }
0x1c9f   : > { %4030 = vpow2.f32 %v3597_v24 }
0x1ca0   : > { %4032 = vpow2.f32 %v3598_v25 }
0x1ca7   : > { %v4027_v20 = vpop.eup %4026 }
0x1ca8   : > { %3355 = vrot.lane.b32.xlu0 %v4027_v20, %s4081_s22 }
0x1cab   : > { %v4029_v5 = vpop.eup %4028 }
0x1cac   : > { %3357 = vrot.lane.b32.xlu1 %v4029_v5, %s4081_s22  ;;  %3392 = vperm.xlu0 %4024, %v3389_v21   ;;  %v4031_v28 = vpop.eup %4030 }
0x1cad   : > { %v3345_v30 = vadd.f32 1.0, %v4031_v28  ;;  %v4033_v36 = vpop.eup %4032 }
0x1cae   : > { %v3346_v11 = vadd.f32 1.0, %v4033_v36 }
0x1caf   : > { %4034 = vrcp.f32 %v3345_v30 }
0x1cb0   : > { %3395 = vperm.xlu1 %4025, %v3390_v22   ;;  %4036 = vrcp.f32 %v3346_v11 }
0x1cbc   : > { %v4035_v12 = vpop.eup %4034 }
0x1cbd   : > { %v4037_v40 = vpop.eup %4036 }
0x1d1a   : > { %v3356_v9 = vpop.permute.xlu0 %3355 }
0x1d1b   : > { %v3361_v37 = vsub.f32 %v4861_v16, %v3356_v9 }
0x1d1d   : > { %v3363_v10 = vmul.f32 %v4035_v12, %v3361_v37 }
0x1d1e   : > { %v3358_v23 = vpop.permute.xlu1 %3357 }
0x1d1f   : > { %v3362_v6 = vsub.f32 %v4854_v15, %v3358_v23  ;;  %3367 = vrot.lane.b32.xlu1 %v3363_v10, %s4078_s1 }
0x1d21   : > { %v3364_v14 = vmul.f32 %v4037_v40, %v3362_v6 }
0x1d23   : > { %3369 = vrot.lane.b32.xlu0 %v3364_v14, %s4078_s1  ;;  %3401 = vrot.lane.b32.xlu1 %v3387_v43, %s4078_s1 }
0x1d27   : > { %3403 = vrot.lane.b32.xlu0 %v3388_v13, %s4078_s1  ;;  %v3393_v45 = vpop.permute.xlu0 %3392  ;;  %s4092_s1 = smov (%p82_p1), [#allocation3]  }
0x1d28   : > { %vm3397_vm10 = vcmp.eq.s32.totalorder %v3393_v45, 1 }
0x1d2b   : > { %v3396_v44 = vpop.permute.xlu1 %3395 }
0x1d2c   : > { %vm3398_vm11 = vcmp.eq.s32.totalorder %v3396_v44, 1 }
0x1d91   : > { %v3368_v16 = vpop.permute.xlu1 %3367 }
0x1d92   : > { %v3373_v46 = vadd.f32 %v4027_v20, %v3368_v16 }
0x1d94   : > { %3377 = vrot.lane.b32.xlu1 %v3373_v46, %s4081_s22 }
0x1d95   : > { %v3370_v15 = vpop.permute.xlu0 %3369  ;;  %v3402_v47 = vpop.permute.xlu1 %3401 }
0x1d96   : > { %v3374_v32 = vadd.f32 %v4029_v5, %v3370_v15  ;;  %v3407_v27 = vsel %vm3397_vm10, %v3373_v46, %v3402_v47 }
0x1d98   : > { %3379 = vrot.lane.b32.xlu0 %v3374_v32, %s4081_s22  ;;  %3411 = vrot.lane.b32.xlu1 %v3407_v27, %s4081_s22 }
0x1d99   : > { %v3404_v48 = vpop.permute.xlu0 %3403 }
0x1d9a   : > { %v3408_v49 = vsel %vm3398_vm11, %v3374_v32, %v3404_v48 }
0x1d9c   : > { %3413 = vrot.lane.b32.xlu0 %v3408_v49, %s4081_s22  ;;  %s3424_s22 = sshll.u32 (%p82_p1), %s4092_s1, 4  ;;  %s3425_s22 = int_to_ptr.vmem [resolvable:$true] %s3424_s22 }
0x1d9d   :  { %s4038_s3 = scalar_lea.vmem (%p82_p1), %s3425_s22, 256  ;;  %p4043_p3 = scmp.lt.s32.totalorder (%p82_p1), %s3425_s22, %s3425_s22 }
0x1d9e   :  { %p4039_p2 = scmp.ne.s32.totalorder (%p82_p1), %s3425_s22, %s4038_s3  ;;  %p4044_p4 = scmp.lt.s32.totalorder (%p82_p1), %s4038_s3, %s4038_s3 }
0x1da0   :  { %p4045_p5 = por (%p82_p1), %p4044_p4, %p4043_p3 }
0x1da2   :  { %p4046_p6 = pnand (%p82_p1), %p4045_p5, %p4039_p2 }
0x1e06   : > { %v3378_v50 = vpop.permute.xlu1 %3377 }
0x1e07   : > { %3383 = vst.msk [vmem:[#allocation2 + $0x10] sm:$0xff] %vm69_vm0, %v3378_v50 }
0x1e0a   : > { %v3380_v33 = vpop.permute.xlu0 %3379  ;;  %v3412_v42 = vpop.permute.xlu1 %3411 }
0x1e0b   : > { %3384 = vst.msk [vmem:[#allocation2 + $0x18] sm:$0xff] %vm69_vm0, %v3380_v33  ;;  %3417 = vst.msk [vmem:[#allocation3] sm:$0xff] %vm69_vm0, %v3412_v42  ;;  %84 = sbr.rel (!%p82_p1) target bundleno = 14 (0xe), region = 148 }
0x1e0e   : > { %v3414_v41 = vpop.permute.xlu0 %3413 }
0x1e0f   : > { %3418 = vst.msk [vmem:[#allocation3 + $0x8] sm:$0xff] %vm69_vm0, %v3414_v41 }
0x1e10   :  { %4049 = shalt.err (!%p4046_p6)
}
0x1e11   :  { %s4093_s28 = smov 128   ;;  %s4094_s24 = smov 8  }
0x1e12   :  { %s5060_s2 = sld [smem:[#allocation14_spill]] }
0x1e18   :  { %3430 = dma.vmem_to_hbm [thread:$0]  %s3425_s22, 256, %s5060_s2, [#allocation4], %s4093_s28, %s4093_s28, %s4094_s24  }
0x1e19   :  { %4062 = dma.done.wait [#allocation4], 256  }
0x1e1a   :  { %4063 = vsyncadd [#allocation4], 4294967040 }
0x1e1b   :  { %3434 = vsyncpa [#allocation4], 1 }

</bundles_post_ra>
